<compile_context>
chip_gen: v5e
topology: v5e:2x2
jax: 0.10.0
libtpu: 0.0.40
codegen_flags: <defaults>
</compile_context>

<pallas_src>
import functools

import jax
import jax.numpy as jnp
from jax.experimental import pallas as pl
from jax.experimental.pallas import tpu as pltpu

LANE = 128


def _round_up(x, m):
    return (x + m - 1) // m * m


# ------------------------------ Pallas kernel -------------------------------

def _double_conv_kernel(x_ref, m1_ref, m2_ref,
                        w1_ref, b1_ref, g1_ref, bt1_ref,
                        w2_ref, b2_ref, g2_ref, bt2_ref,
                        o_ref, h_ref, *,
                        k2, wp2, n1, n2, m2rows, eps):
    """Fused (Conv + LeakyReLU + InstanceNorm) x 2 for one batch sample.

    x_ref : (R, K1p)          bf16 im2col slab of conv1 over ALL padded output
                              positions (flat row-major, halo + tail included)
    m1_ref: (R, 1)            f32, 1.0 at real (interior) conv1 output rows
    m2_ref: (M2, 1)           f32, 1.0 at real conv2 output columns
    w1_ref: (K1p, C1p)        bf16 conv1 weights, taps packed into K
    w2_ref: (k2*k2, C1p, C2p) bf16 conv2 per-tap weight matrices
    b/g/bt: (1, C)            f32 bias / gamma / beta (pads are 0)
    o_ref : (M2, C2p)         f32 output slab, M2 = ho2*wp2 (junk cols kept)
    h_ref : (R, C1p)          bf16 scratch: normalized conv1 output in flat
                              padded layout (halo rows/cols are exact zeros)
    """
    # ---- block 1: single im2col matmul + bias + LeakyReLU + InstanceNorm ----
    y = jnp.dot(x_ref[...], w1_ref[...], preferred_element_type=jnp.float32)
    y = y + b1_ref[...]
    y = jnp.where(y >= 0, y, 0.01 * y)                    # LeakyReLU(0.01)
    m1 = m1_ref[...]
    ym = y * m1                                           # zero halo/tail rows
    mean = jnp.sum(ym, axis=0, keepdims=True) * (1.0 / n1)
    var = jnp.sum(ym * ym, axis=0, keepdims=True) * (1.0 / n1) - mean * mean
    var = jnp.maximum(var, 0.0)                           # guard 1-pass var
    scale = g1_ref[...] * jax.lax.rsqrt(var + eps)        # folded affine
    shift = bt1_ref[...] - mean * scale
    # One aligned full-ref store; the mask supplies conv2's zero padding.
    h_ref[...] = ((y * scale + shift) * m1).astype(h_ref.dtype)

    # ---- block 2: k2*k2 taps as contiguous sublane-offset slices ------------
    acc = jnp.zeros((m2rows, w2_ref.shape[-1]), jnp.float32)
    for dy in range(k2):                                  # back-to-back MXU chain
        for dx in range(k2):
            tap = h_ref[pl.ds(dy * wp2 + dx, m2rows), :]  # no dim-merge reshape
            acc += jnp.dot(tap, w2_ref[dy * k2 + dx],
                           preferred_element_type=jnp.float32)
    y2 = acc + b2_ref[...]
    y2 = jnp.where(y2 >= 0, y2, 0.01 * y2)
    m2 = m2_ref[...]
    ym2 = y2 * m2                                         # zero junk columns
    mean2 = jnp.sum(ym2, axis=0, keepdims=True) * (1.0 / n2)
    var2 = jnp.sum(ym2 * ym2, axis=0, keepdims=True) * (1.0 / n2) - mean2 * mean2
    var2 = jnp.maximum(var2, 0.0)
    scale2 = g2_ref[...] * jax.lax.rsqrt(var2 + eps)
    o_ref[...] = y2 * scale2 + (bt2_ref[...] - mean2 * scale2)


# ------------------ one-time parameter / mask preparation -------------------

def prepare_params(params, *, H, W, k1, s1, p1, k2, s2, p2):
    """Runs once, OUTSIDE jit: weight transpose/pad/cast + interior masks."""
    assert s1 == 1 and s2 == 1, "fused kernel supports stride 1 only"
    cin = params["w1"].shape[1]
    c1 = params["w1"].shape[0]
    c2 = params["w2"].shape[0]
    ho1, wo1 = H + 2 * p1 - k1 + 1, W + 2 * p1 - k1 + 1
    hp2, wp2 = ho1 + 2 * p2, wo1 + 2 * p2                 # conv2's padded input
    ho2, wo2 = hp2 - k2 + 1, wp2 - k2 + 1
    M2 = ho2 * wp2                                        # conv2 flat output rows
    R = _round_up(hp2 * wp2 + k2 - 1, 8)                  # scratch rows (+tap tail)
    K1 = k1 * k1 * cin
    K1p = _round_up(K1, LANE)
    c1_p, c2_p = _round_up(c1, LANE), _round_up(c2, LANE)

    # conv1 weights: (Cout,Cin,kh,kw) -> (kh*kw*Cin, Cout); taps packed into K.
    w1 = jnp.transpose(params["w1"], (2, 3, 1, 0)).reshape(K1, c1)
    w1 = jnp.pad(w1, ((0, K1p - K1), (0, c1_p - c1))).astype(jnp.bfloat16)
    # conv2 weights: per-tap (kh*kw, Cin_p, Cout_p).
    w2 = jnp.transpose(params["w2"], (2, 3, 1, 0)).reshape(k2 * k2, c1, c2)
    w2 = jnp.pad(w2, ((0, 0), (0, c1_p - c1), (0, c2_p - c2))).astype(jnp.bfloat16)

    def vec(v, cp):
        return jnp.pad(v, (0, cp - v.shape[0])).reshape(1, cp).astype(jnp.float32)

    # Interior mask over conv1's padded-layout rows (halo + tail rows -> 0).
    r = jnp.arange(R)
    row, col = r // wp2, r % wp2
    m1 = ((row >= p2) & (row < p2 + ho1) & (col >= p2) & (col < p2 + wo1))
    m1 = m1.astype(jnp.float32).reshape(R, 1)
    # Valid-column mask over conv2's flat output (wp2 - wo2 junk cols per row).
    o = jnp.arange(M2)
    m2 = (o % wp2 < wo2).astype(jnp.float32).reshape(M2, 1)

    geom = dict(k1=k1, p1=p1, k2=k2, p2=p2, ho1=ho1, wo1=wo1, hp2=hp2, wp2=wp2,
                ho2=ho2, wo2=wo2, R=R, M2=M2, K1=K1, K1p=K1p,
                cin=cin, c1=c1, c2=c2, c1_p=c1_p, c2_p=c2_p)
    prepped = dict(w1=w1, b1=vec(params["b1"], c1_p), g1=vec(params["g1"], c1_p),
                   bt1=vec(params["bt1"], c1_p),
                   w2=w2, b2=vec(params["b2"], c2_p), g2=vec(params["g2"], c2_p),
                   bt2=vec(params["bt2"], c2_p), m1=m1, m2=m2)
    return prepped, geom


# ------------------------------ forward wrapper ------------------------------

def double_conv_forward(x_nchw, prepped, geom):
    """DoubleConv forward: NCHW f32 in -> NCHW f32 out."""
    g = geom
    N = x_nchw.shape[0]
    pad = g["p1"] + g["p2"]
    # Channels-last, bf16, padded so conv1 is evaluated at ALL padded positions.
    x = jnp.transpose(x_nchw, (0, 2, 3, 1)).astype(jnp.bfloat16)
    xp = jnp.pad(x, ((0, 0), (pad, pad), (pad, pad), (0, 0)))
    # Wrapper-side im2col: tiny real cin packed into a single K dimension.
    taps = [xp[:, dy:dy + g["hp2"], dx:dx + g["wp2"], :]
            for dy in range(g["k1"]) for dx in range(g["k1"])]
    slab = jnp.concatenate(taps, axis=-1).reshape(N, g["hp2"] * g["wp2"], g["K1"])
    slab = jnp.pad(slab, ((0, 0), (0, g["R"] - g["hp2"] * g["wp2"]),
                          (0, g["K1p"] - g["K1"])))

    kernel = functools.partial(
        _double_conv_kernel, k2=g["k2"], wp2=g["wp2"],
        n1=g["ho1"] * g["wo1"], n2=g["ho2"] * g["wo2"], m2rows=g["M2"],
        eps=1e-5)

    flops = 2 * N * (g["R"] * g["K1p"] * g["c1_p"]
                     + g["k2"] * g["k2"] * g["M2"] * g["c1_p"] * g["c2_p"])
    bytes_accessed = (N * g["R"] * g["K1p"] * 2                 # im2col slab
                      + g["K1p"] * g["c1_p"] * 2                # w1
                      + g["k2"] * g["k2"] * g["c1_p"] * g["c2_p"] * 2   # w2
                      + N * g["M2"] * g["c2_p"] * 4)            # output slab

    out = pl.pallas_call(
        kernel,
        out_shape=jax.ShapeDtypeStruct((N, g["M2"], g["c2_p"]), jnp.float32),
        grid=(N,),
        in_specs=[
            pl.BlockSpec((None, g["R"], g["K1p"]), lambda n: (n, 0, 0)),
            pl.BlockSpec((g["R"], 1), lambda n: (0, 0)),
            pl.BlockSpec((g["M2"], 1), lambda n: (0, 0)),
            pl.BlockSpec((g["K1p"], g["c1_p"]), lambda n: (0, 0)),
            pl.BlockSpec((1, g["c1_p"]), lambda n: (0, 0)),
            pl.BlockSpec((1, g["c1_p"]), lambda n: (0, 0)),
            pl.BlockSpec((1, g["c1_p"]), lambda n: (0, 0)),
            pl.BlockSpec((g["k2"] * g["k2"], g["c1_p"], g["c2_p"]),
                         lambda n: (0, 0, 0)),
            pl.BlockSpec((1, g["c2_p"]), lambda n: (0, 0)),
            pl.BlockSpec((1, g["c2_p"]), lambda n: (0, 0)),
            pl.BlockSpec((1, g["c2_p"]), lambda n: (0, 0)),
        ],
        out_specs=pl.BlockSpec((None, g["M2"], g["c2_p"]), lambda n: (n, 0, 0)),
        scratch_shapes=[pltpu.VMEM((g["R"], g["c1_p"]), jnp.bfloat16)],
        compiler_params=pltpu.CompilerParams(
            dimension_semantics=("parallel",),
            vmem_limit_bytes=32 * 1024 * 1024),
        cost_estimate=pl.CostEstimate(flops=flops, transcendentals=0,
                                      bytes_accessed=bytes_accessed),
    )(slab, prepped["m1"], prepped["m2"],
      prepped["w1"], prepped["b1"], prepped["g1"], prepped["bt1"],
      prepped["w2"], prepped["b2"], prepped["g2"], prepped["bt2"])

    out = out.reshape(N, g["ho2"], g["wp2"], g["c2_p"])[:, :, :g["wo2"], :g["c2"]]
    return jnp.transpose(out, (0, 3, 1, 2))


# --------------------------- pure-JAX reference ------------------------------

def _reference_double_conv(x, params, *, k1, s1, p1, k2, s2, p2):
    def block(x, w, b, g, bt, stride, pad):
        y = jax.lax.conv_general_dilated(
            x, w, (stride, stride), [(pad, pad), (pad, pad)],
            dimension_numbers=("NCHW", "OIHW", "NCHW"))
        y = y + b[None, :, None, None]
        y = jnp.where(y >= 0, y, 0.01 * y)
        m = jnp.mean(y, axis=(2, 3), keepdims=True)
        v = jnp.mean((y - m) ** 2, axis=(2, 3), keepdims=True)
        y = (y - m) * jax.lax.rsqrt(v + 1e-5)
        return y * g[None, :, None, None] + bt[None, :, None, None]

    y = block(x, params["w1"], params["b1"], params["g1"], params["bt1"], s1, p1)
    return block(y, params["w2"], params["b2"], params["g2"], params["bt2"], s2, p2)


# ----------------------------------- main ------------------------------------

if __name__ == "__main__":
    key = jax.random.PRNGKey(0)
    kx, kw1, kb1, kw2, kb2, kg1, kg2 = jax.random.split(key, 7)

    # DoubleConv(4, 32, 3, 1, 1, 32, 32, 3, 1, 1)
    N, cin, H, W = 2, 4, 16, 16
    c1 = c2 = 32
    cfg = dict(k1=3, s1=1, p1=1, k2=3, s2=1, p2=1)

    x = jax.random.normal(kx, (N, cin, H, W), jnp.float32)
    params = {
        "w1": 0.1 * jax.random.normal(kw1, (c1, cin, 3, 3), jnp.float32),
        "b1": 0.05 * jax.random.normal(kb1, (c1,), jnp.float32),
        "g1": 1.0 + 0.1 * jax.random.normal(kg1, (c1,), jnp.float32),
        "bt1": jnp.zeros((c1,), jnp.float32),
        "w2": 0.1 * jax.random.normal(kw2, (c2, c1, 3, 3), jnp.float32),
        "b2": 0.05 * jax.random.normal(kb2, (c2,), jnp.float32),
        "g2": 1.0 + 0.1 * jax.random.normal(kg2, (c2,), jnp.float32),
        "bt2": jnp.zeros((c2,), jnp.float32),
    }

    # Parameter prep (transpose/pad/bf16 cast + masks) runs once, outside jit.
    prepped, geom = prepare_params(params, H=H, W=W, **cfg)

    fwd = jax.jit(functools.partial(double_conv_forward, geom=geom))
    out = fwd(x, prepped)
    jax.block_until_ready(out)

    assert out.shape == (N, c2, H, W)
    assert bool(jnp.all(jnp.isfinite(out)))

    # Loose check vs f32 reference (kernel matmuls run in bf16 on the MXU, and
    # the intermediate activation is staged in bf16).
    ref = _reference_double_conv(x, params, **cfg)
    max_err = float(jnp.max(jnp.abs(out - ref)))
    assert max_err < 0.3, f"max abs error vs f32 reference too large: {max_err}"

    print("KERNEL_OK")
</pallas_src>

<mosaic_0001>
module attributes {stable_mosaic.version = 11 : i64} {
  func.func @_double_conv_kernel(%arg0: i32, %arg1: memref<1x328x128xbf16, #tpu.memory_space<vmem>>, %arg2: memref<328x1xf32, #tpu.memory_space<vmem>>, %arg3: memref<288x1xf32, #tpu.memory_space<vmem>>, %arg4: memref<128x128xbf16, #tpu.memory_space<vmem>>, %arg5: memref<1x128xf32, #tpu.memory_space<vmem>>, %arg6: memref<1x128xf32, #tpu.memory_space<vmem>>, %arg7: memref<1x128xf32, #tpu.memory_space<vmem>>, %arg8: memref<9x128x128xbf16, #tpu.memory_space<vmem>>, %arg9: memref<1x128xf32, #tpu.memory_space<vmem>>, %arg10: memref<1x128xf32, #tpu.memory_space<vmem>>, %arg11: memref<1x128xf32, #tpu.memory_space<vmem>>, %arg12: memref<1x288x128xf32, #tpu.memory_space<vmem>>, %arg13: memref<328x128xbf16, #tpu.memory_space<vmem>>) attributes {dimension_semantics = [#tpu.dimension_semantics<parallel>], iteration_bounds = array<i64: 2>, scalar_prefetch = 0 : i64, scratch_operands = 1 : i64, tpu.core_type = #tpu.core_type<tc>, window_params = [{transform_indices = @transform_0, window_bounds = array<i64: 1, 328, 128>}, {pipeline_mode = #tpu.pipeline_mode<synchronous>, transform_indices = @transform_1, window_bounds = array<i64: 328, 1>}, {pipeline_mode = #tpu.pipeline_mode<synchronous>, transform_indices = @transform_2, window_bounds = array<i64: 288, 1>}, {pipeline_mode = #tpu.pipeline_mode<synchronous>, transform_indices = @transform_3, window_bounds = array<i64: 128, 128>}, {pipeline_mode = #tpu.pipeline_mode<synchronous>, transform_indices = @transform_4, window_bounds = array<i64: 1, 128>}, {pipeline_mode = #tpu.pipeline_mode<synchronous>, transform_indices = @transform_5, window_bounds = array<i64: 1, 128>}, {pipeline_mode = #tpu.pipeline_mode<synchronous>, transform_indices = @transform_6, window_bounds = array<i64: 1, 128>}, {pipeline_mode = #tpu.pipeline_mode<synchronous>, transform_indices = @transform_7, window_bounds = array<i64: 9, 128, 128>}, {pipeline_mode = #tpu.pipeline_mode<synchronous>, transform_indices = @transform_8, window_bounds = array<i64: 1, 128>}, {pipeline_mode = #tpu.pipeline_mode<synchronous>, transform_indices = @transform_9, window_bounds = array<i64: 1, 128>}, {pipeline_mode = #tpu.pipeline_mode<synchronous>, transform_indices = @transform_10, window_bounds = array<i64: 1, 128>}, {transform_indices = @transform_11, window_bounds = array<i64: 1, 288, 128>}]} {
    %c0 = arith.constant 0 : index
    %c0_0 = arith.constant 0 : index
    %c0_1 = arith.constant 0 : index
    %0 = vector.load %arg1[%c0, %c0_0, %c0_1] : memref<1x328x128xbf16, #tpu.memory_space<vmem>>, vector<1x328x128xbf16>
    %1 = vector.shape_cast %0 : vector<1x328x128xbf16> to vector<328x128xbf16>
    %c0_2 = arith.constant 0 : index
    %c0_3 = arith.constant 0 : index
    %2 = vector.load %arg4[%c0_2, %c0_3] : memref<128x128xbf16, #tpu.memory_space<vmem>>, vector<128x128xbf16>
    %cst = arith.constant dense<0.000000e+00> : vector<328x128xf32>
    %3 = tpu.matmul %1, %2, %cst {dimension_numbers = #tpu.dot_dimension_numbers<[1], [0], [0], [1], [0, 0, 1, 1], [], []>} : vector<328x128xbf16>, vector<128x128xbf16>, vector<328x128xf32> -> vector<328x128xf32>
    %c0_4 = arith.constant 0 : index
    %c0_5 = arith.constant 0 : index
    %4 = vector.load %arg5[%c0_4, %c0_5] : memref<1x128xf32, #tpu.memory_space<vmem>>, vector<1x128xf32>
    %5 = vector.broadcast %4 : vector<1x128xf32> to vector<328x128xf32>
    %6 = arith.addf %3, %5 : vector<328x128xf32>
    %cst_6 = arith.constant 0.000000e+00 : f32
    %7 = vector.broadcast %cst_6 : f32 to vector<328x128xf32>
    %8 = arith.cmpf oge, %6, %7 : vector<328x128xf32>
    %cst_7 = arith.constant 0.00999999977 : f32
    %9 = vector.broadcast %cst_7 : f32 to vector<328x128xf32>
    %10 = arith.mulf %9, %6 : vector<328x128xf32>
    %11 = arith.select %8, %6, %10 : vector<328x128xi1>, vector<328x128xf32>
    %c0_8 = arith.constant 0 : index
    %c0_9 = arith.constant 0 : index
    %12 = vector.load %arg2[%c0_8, %c0_9] : memref<328x1xf32, #tpu.memory_space<vmem>>, vector<328x1xf32>
    %13 = vector.broadcast %12 : vector<328x1xf32> to vector<328x128xf32>
    %14 = arith.mulf %11, %13 : vector<328x128xf32>
    %cst_10 = arith.constant dense<0.000000e+00> : vector<128xf32>
    %15 = vector.multi_reduction <add>, %14, %cst_10 [0] : vector<328x128xf32> to vector<128xf32>
    %16 = vector.shape_cast %15 : vector<128xf32> to vector<1x128xf32>
    %cst_11 = arith.constant 3.906250e-03 : f32
    %17 = vector.broadcast %cst_11 : f32 to vector<1x128xf32>
    %18 = arith.mulf %16, %17 : vector<1x128xf32>
    %19 = arith.mulf %14, %14 : vector<328x128xf32>
    %cst_12 = arith.constant dense<0.000000e+00> : vector<128xf32>
    %20 = vector.multi_reduction <add>, %19, %cst_12 [0] : vector<328x128xf32> to vector<128xf32>
    %21 = vector.shape_cast %20 : vector<128xf32> to vector<1x128xf32>
    %cst_13 = arith.constant 3.906250e-03 : f32
    %22 = vector.broadcast %cst_13 : f32 to vector<1x128xf32>
    %23 = arith.mulf %21, %22 : vector<1x128xf32>
    %24 = arith.mulf %18, %18 : vector<1x128xf32>
    %25 = arith.subf %23, %24 : vector<1x128xf32>
    %cst_14 = arith.constant 0.000000e+00 : f32
    %26 = vector.broadcast %cst_14 : f32 to vector<1x128xf32>
    %27 = arith.maximumf %25, %26 : vector<1x128xf32>
    %c0_15 = arith.constant 0 : index
    %c0_16 = arith.constant 0 : index
    %28 = vector.load %arg6[%c0_15, %c0_16] : memref<1x128xf32, #tpu.memory_space<vmem>>, vector<1x128xf32>
    %cst_17 = arith.constant 9.99999974E-6 : f32
    %29 = vector.broadcast %cst_17 : f32 to vector<1x128xf32>
    %30 = arith.addf %27, %29 : vector<1x128xf32>
    %31 = math.rsqrt %30 : vector<1x128xf32>
    %32 = arith.mulf %28, %31 : vector<1x128xf32>
    %c0_18 = arith.constant 0 : index
    %c0_19 = arith.constant 0 : index
    %33 = vector.load %arg7[%c0_18, %c0_19] : memref<1x128xf32, #tpu.memory_space<vmem>>, vector<1x128xf32>
    %34 = arith.mulf %18, %32 : vector<1x128xf32>
    %35 = arith.subf %33, %34 : vector<1x128xf32>
    %36 = vector.broadcast %32 : vector<1x128xf32> to vector<328x128xf32>
    %37 = arith.mulf %11, %36 : vector<328x128xf32>
    %38 = vector.broadcast %35 : vector<1x128xf32> to vector<328x128xf32>
    %39 = arith.addf %37, %38 : vector<328x128xf32>
    %40 = vector.broadcast %12 : vector<328x1xf32> to vector<328x128xf32>
    %41 = arith.mulf %39, %40 : vector<328x128xf32>
    %42 = arith.truncf %41 : vector<328x128xf32> to vector<328x128xbf16>
    %c0_20 = arith.constant 0 : index
    %c0_21 = arith.constant 0 : index
    %43 = vector.load %arg13[%c0_20, %c0_21] : memref<328x128xbf16, #tpu.memory_space<vmem>>, vector<328x128xbf16>
    tpu.vector_store %arg13[%c0_20, %c0_21], %42 {strides = array<i32>} : memref<328x128xbf16, #tpu.memory_space<vmem>>, vector<328x128xbf16>,
    %cst_22 = arith.constant 0.000000e+00 : f32
    %44 = vector.broadcast %cst_22 : f32 to vector<288x128xf32>
    %c0_23 = arith.constant 0 : index
    %c0_24 = arith.constant 0 : index
    %45 = vector.load %arg13[%c0_23, %c0_24] : memref<328x128xbf16, #tpu.memory_space<vmem>>, vector<288x128xbf16>
    %c0_25 = arith.constant 0 : index
    %c0_26 = arith.constant 0 : index
    %c0_27 = arith.constant 0 : index
    %46 = vector.load %arg8[%c0_25, %c0_26, %c0_27] : memref<9x128x128xbf16, #tpu.memory_space<vmem>>, vector<1x128x128xbf16>
    %47 = vector.shape_cast %46 : vector<1x128x128xbf16> to vector<128x128xbf16>
    %cst_28 = arith.constant dense<0.000000e+00> : vector<288x128xf32>
    %48 = tpu.matmul %45, %47, %cst_28 {dimension_numbers = #tpu.dot_dimension_numbers<[1], [0], [0], [1], [0, 0, 1, 1], [], []>} : vector<288x128xbf16>, vector<128x128xbf16>, vector<288x128xf32> -> vector<288x128xf32>
    %49 = arith.addf %44, %48 : vector<288x128xf32>
    %c1 = arith.constant 1 : index
    %c0_29 = arith.constant 0 : index
    %50 = vector.load %arg13[%c1, %c0_29] : memref<328x128xbf16, #tpu.memory_space<vmem>>, vector<288x128xbf16>
    %c1_30 = arith.constant 1 : index
    %c0_31 = arith.constant 0 : index
    %c0_32 = arith.constant 0 : index
    %51 = vector.load %arg8[%c1_30, %c0_31, %c0_32] : memref<9x128x128xbf16, #tpu.memory_space<vmem>>, vector<1x128x128xbf16>
    %52 = vector.shape_cast %51 : vector<1x128x128xbf16> to vector<128x128xbf16>
    %cst_33 = arith.constant dense<0.000000e+00> : vector<288x128xf32>
    %53 = tpu.matmul %50, %52, %cst_33 {dimension_numbers = #tpu.dot_dimension_numbers<[1], [0], [0], [1], [0, 0, 1, 1], [], []>} : vector<288x128xbf16>, vector<128x128xbf16>, vector<288x128xf32> -> vector<288x128xf32>
    %54 = arith.addf %49, %53 : vector<288x128xf32>
    %c2 = arith.constant 2 : index
    %c0_34 = arith.constant 0 : index
    %55 = vector.load %arg13[%c2, %c0_34] : memref<328x128xbf16, #tpu.memory_space<vmem>>, vector<288x128xbf16>
    %c2_35 = arith.constant 2 : index
    %c0_36 = arith.constant 0 : index
    %c0_37 = arith.constant 0 : index
    %56 = vector.load %arg8[%c2_35, %c0_36, %c0_37] : memref<9x128x128xbf16, #tpu.memory_space<vmem>>, vector<1x128x128xbf16>
    %57 = vector.shape_cast %56 : vector<1x128x128xbf16> to vector<128x128xbf16>
    %cst_38 = arith.constant dense<0.000000e+00> : vector<288x128xf32>
    %58 = tpu.matmul %55, %57, %cst_38 {dimension_numbers = #tpu.dot_dimension_numbers<[1], [0], [0], [1], [0, 0, 1, 1], [], []>} : vector<288x128xbf16>, vector<128x128xbf16>, vector<288x128xf32> -> vector<288x128xf32>
    %59 = arith.addf %54, %58 : vector<288x128xf32>
    %c18 = arith.constant 18 : index
    %c0_39 = arith.constant 0 : index
    %60 = vector.load %arg13[%c18, %c0_39] : memref<328x128xbf16, #tpu.memory_space<vmem>>, vector<288x128xbf16>
    %c3 = arith.constant 3 : index
    %c0_40 = arith.constant 0 : index
    %c0_41 = arith.constant 0 : index
    %61 = vector.load %arg8[%c3, %c0_40, %c0_41] : memref<9x128x128xbf16, #tpu.memory_space<vmem>>, vector<1x128x128xbf16>
    %62 = vector.shape_cast %61 : vector<1x128x128xbf16> to vector<128x128xbf16>
    %cst_42 = arith.constant dense<0.000000e+00> : vector<288x128xf32>
    %63 = tpu.matmul %60, %62, %cst_42 {dimension_numbers = #tpu.dot_dimension_numbers<[1], [0], [0], [1], [0, 0, 1, 1], [], []>} : vector<288x128xbf16>, vector<128x128xbf16>, vector<288x128xf32> -> vector<288x128xf32>
    %64 = arith.addf %59, %63 : vector<288x128xf32>
    %c19 = arith.constant 19 : index
    %c0_43 = arith.constant 0 : index
    %65 = vector.load %arg13[%c19, %c0_43] : memref<328x128xbf16, #tpu.memory_space<vmem>>, vector<288x128xbf16>
    %c4 = arith.constant 4 : index
    %c0_44 = arith.constant 0 : index
    %c0_45 = arith.constant 0 : index
    %66 = vector.load %arg8[%c4, %c0_44, %c0_45] : memref<9x128x128xbf16, #tpu.memory_space<vmem>>, vector<1x128x128xbf16>
    %67 = vector.shape_cast %66 : vector<1x128x128xbf16> to vector<128x128xbf16>
    %cst_46 = arith.constant dense<0.000000e+00> : vector<288x128xf32>
    %68 = tpu.matmul %65, %67, %cst_46 {dimension_numbers = #tpu.dot_dimension_numbers<[1], [0], [0], [1], [0, 0, 1, 1], [], []>} : vector<288x128xbf16>, vector<128x128xbf16>, vector<288x128xf32> -> vector<288x128xf32>
    %69 = arith.addf %64, %68 : vector<288x128xf32>
    %c20 = arith.constant 20 : index
    %c0_47 = arith.constant 0 : index
    %70 = vector.load %arg13[%c20, %c0_47] : memref<328x128xbf16, #tpu.memory_space<vmem>>, vector<288x128xbf16>
    %c5 = arith.constant 5 : index
    %c0_48 = arith.constant 0 : index
    %c0_49 = arith.constant 0 : index
    %71 = vector.load %arg8[%c5, %c0_48, %c0_49] : memref<9x128x128xbf16, #tpu.memory_space<vmem>>, vector<1x128x128xbf16>
    %72 = vector.shape_cast %71 : vector<1x128x128xbf16> to vector<128x128xbf16>
    %cst_50 = arith.constant dense<0.000000e+00> : vector<288x128xf32>
    %73 = tpu.matmul %70, %72, %cst_50 {dimension_numbers = #tpu.dot_dimension_numbers<[1], [0], [0], [1], [0, 0, 1, 1], [], []>} : vector<288x128xbf16>, vector<128x128xbf16>, vector<288x128xf32> -> vector<288x128xf32>
    %74 = arith.addf %69, %73 : vector<288x128xf32>
    %c36 = arith.constant 36 : index
    %c0_51 = arith.constant 0 : index
    %75 = vector.load %arg13[%c36, %c0_51] : memref<328x128xbf16, #tpu.memory_space<vmem>>, vector<288x128xbf16>
    %c6 = arith.constant 6 : index
    %c0_52 = arith.constant 0 : index
    %c0_53 = arith.constant 0 : index
    %76 = vector.load %arg8[%c6, %c0_52, %c0_53] : memref<9x128x128xbf16, #tpu.memory_space<vmem>>, vector<1x128x128xbf16>
    %77 = vector.shape_cast %76 : vector<1x128x128xbf16> to vector<128x128xbf16>
    %cst_54 = arith.constant dense<0.000000e+00> : vector<288x128xf32>
    %78 = tpu.matmul %75, %77, %cst_54 {dimension_numbers = #tpu.dot_dimension_numbers<[1], [0], [0], [1], [0, 0, 1, 1], [], []>} : vector<288x128xbf16>, vector<128x128xbf16>, vector<288x128xf32> -> vector<288x128xf32>
    %79 = arith.addf %74, %78 : vector<288x128xf32>
    %c37 = arith.constant 37 : index
    %c0_55 = arith.constant 0 : index
    %80 = vector.load %arg13[%c37, %c0_55] : memref<328x128xbf16, #tpu.memory_space<vmem>>, vector<288x128xbf16>
    %c7 = arith.constant 7 : index
    %c0_56 = arith.constant 0 : index
    %c0_57 = arith.constant 0 : index
    %81 = vector.load %arg8[%c7, %c0_56, %c0_57] : memref<9x128x128xbf16, #tpu.memory_space<vmem>>, vector<1x128x128xbf16>
    %82 = vector.shape_cast %81 : vector<1x128x128xbf16> to vector<128x128xbf16>
    %cst_58 = arith.constant dense<0.000000e+00> : vector<288x128xf32>
    %83 = tpu.matmul %80, %82, %cst_58 {dimension_numbers = #tpu.dot_dimension_numbers<[1], [0], [0], [1], [0, 0, 1, 1], [], []>} : vector<288x128xbf16>, vector<128x128xbf16>, vector<288x128xf32> -> vector<288x128xf32>
    %84 = arith.addf %79, %83 : vector<288x128xf32>
    %c38 = arith.constant 38 : index
    %c0_59 = arith.constant 0 : index
    %85 = vector.load %arg13[%c38, %c0_59] : memref<328x128xbf16, #tpu.memory_space<vmem>>, vector<288x128xbf16>
    %c8 = arith.constant 8 : index
    %c0_60 = arith.constant 0 : index
    %c0_61 = arith.constant 0 : index
    %86 = vector.load %arg8[%c8, %c0_60, %c0_61] : memref<9x128x128xbf16, #tpu.memory_space<vmem>>, vector<1x128x128xbf16>
    %87 = vector.shape_cast %86 : vector<1x128x128xbf16> to vector<128x128xbf16>
    %cst_62 = arith.constant dense<0.000000e+00> : vector<288x128xf32>
    %88 = tpu.matmul %85, %87, %cst_62 {dimension_numbers = #tpu.dot_dimension_numbers<[1], [0], [0], [1], [0, 0, 1, 1], [], []>} : vector<288x128xbf16>, vector<128x128xbf16>, vector<288x128xf32> -> vector<288x128xf32>
    %89 = arith.addf %84, %88 : vector<288x128xf32>
    %c0_63 = arith.constant 0 : index
    %c0_64 = arith.constant 0 : index
    %90 = vector.load %arg9[%c0_63, %c0_64] : memref<1x128xf32, #tpu.memory_space<vmem>>, vector<1x128xf32>
    %91 = vector.broadcast %90 : vector<1x128xf32> to vector<288x128xf32>
    %92 = arith.addf %89, %91 : vector<288x128xf32>
    %cst_65 = arith.constant 0.000000e+00 : f32
    %93 = vector.broadcast %cst_65 : f32 to vector<288x128xf32>
    %94 = arith.cmpf oge, %92, %93 : vector<288x128xf32>
    %cst_66 = arith.constant 0.00999999977 : f32
    %95 = vector.broadcast %cst_66 : f32 to vector<288x128xf32>
    %96 = arith.mulf %95, %92 : vector<288x128xf32>
    %97 = arith.select %94, %92, %96 : vector<288x128xi1>, vector<288x128xf32>
    %c0_67 = arith.constant 0 : index
    %c0_68 = arith.constant 0 : index
    %98 = vector.load %arg3[%c0_67, %c0_68] : memref<288x1xf32, #tpu.memory_space<vmem>>, vector<288x1xf32>
    %99 = vector.broadcast %98 : vector<288x1xf32> to vector<288x128xf32>
    %100 = arith.mulf %97, %99 : vector<288x128xf32>
    %cst_69 = arith.constant dense<0.000000e+00> : vector<128xf32>
    %101 = vector.multi_reduction <add>, %100, %cst_69 [0] : vector<288x128xf32> to vector<128xf32>
    %102 = vector.shape_cast %101 : vector<128xf32> to vector<1x128xf32>
    %cst_70 = arith.constant 3.906250e-03 : f32
    %103 = vector.broadcast %cst_70 : f32 to vector<1x128xf32>
    %104 = arith.mulf %102, %103 : vector<1x128xf32>
    %105 = arith.mulf %100, %100 : vector<288x128xf32>
    %cst_71 = arith.constant dense<0.000000e+00> : vector<128xf32>
    %106 = vector.multi_reduction <add>, %105, %cst_71 [0] : vector<288x128xf32> to vector<128xf32>
    %107 = vector.shape_cast %106 : vector<128xf32> to vector<1x128xf32>
    %cst_72 = arith.constant 3.906250e-03 : f32
    %108 = vector.broadcast %cst_72 : f32 to vector<1x128xf32>
    %109 = arith.mulf %107, %108 : vector<1x128xf32>
    %110 = arith.mulf %104, %104 : vector<1x128xf32>
    %111 = arith.subf %109, %110 : vector<1x128xf32>
    %cst_73 = arith.constant 0.000000e+00 : f32
    %112 = vector.broadcast %cst_73 : f32 to vector<1x128xf32>
    %113 = arith.maximumf %111, %112 : vector<1x128xf32>
    %c0_74 = arith.constant 0 : index
    %c0_75 = arith.constant 0 : index
    %114 = vector.load %arg10[%c0_74, %c0_75] : memref<1x128xf32, #tpu.memory_space<vmem>>, vector<1x128xf32>
    %cst_76 = arith.constant 9.99999974E-6 : f32
    %115 = vector.broadcast %cst_76 : f32 to vector<1x128xf32>
    %116 = arith.addf %113, %115 : vector<1x128xf32>
    %117 = math.rsqrt %116 : vector<1x128xf32>
    %118 = arith.mulf %114, %117 : vector<1x128xf32>
    %119 = vector.broadcast %118 : vector<1x128xf32> to vector<288x128xf32>
    %120 = arith.mulf %97, %119 : vector<288x128xf32>
    %c0_77 = arith.constant 0 : index
    %c0_78 = arith.constant 0 : index
    %121 = vector.load %arg11[%c0_77, %c0_78] : memref<1x128xf32, #tpu.memory_space<vmem>>, vector<1x128xf32>
    %122 = arith.mulf %104, %118 : vector<1x128xf32>
    %123 = arith.subf %121, %122 : vector<1x128xf32>
    %124 = vector.broadcast %123 : vector<1x128xf32> to vector<288x128xf32>
    %125 = arith.addf %120, %124 : vector<288x128xf32>
    %c0_79 = arith.constant 0 : index
    %c0_80 = arith.constant 0 : index
    %c0_81 = arith.constant 0 : index
    %126 = vector.load %arg12[%c0_79, %c0_80, %c0_81] : memref<1x288x128xf32, #tpu.memory_space<vmem>>, vector<1x288x128xf32>
    %127 = vector.shape_cast %126 : vector<1x288x128xf32> to vector<288x128xf32>
    %128 = vector.shape_cast %125 : vector<288x128xf32> to vector<1x288x128xf32>
    tpu.vector_store %arg12[%c0_79, %c0_80, %c0_81], %128 {strides = array<i32>} : memref<1x288x128xf32, #tpu.memory_space<vmem>>, vector<1x288x128xf32>,
    return
  }
  func.func @transform_0(%arg0: i32) -> (i32, i32, i32) {
    %c0_i32 = arith.constant 0 : i32
    %c0_i32_0 = arith.constant 0 : i32
    %c0_i32_1 = arith.constant 0 : i32
    return %arg0, %c0_i32, %c0_i32_0 : i32, i32, i32
  }
  func.func @transform_1(%arg0: i32) -> (i32, i32) {
    %c0_i32 = arith.constant 0 : i32
    %c0_i32_0 = arith.constant 0 : i32
    %c0_i32_1 = arith.constant 0 : i32
    return %c0_i32, %c0_i32_0 : i32, i32
  }
  func.func @transform_2(%arg0: i32) -> (i32, i32) {
    %c0_i32 = arith.constant 0 : i32
    %c0_i32_0 = arith.constant 0 : i32
    %c0_i32_1 = arith.constant 0 : i32
    return %c0_i32, %c0_i32_0 : i32, i32
  }
  func.func @transform_3(%arg0: i32) -> (i32, i32) {
    %c0_i32 = arith.constant 0 : i32
    %c0_i32_0 = arith.constant 0 : i32
    %c0_i32_1 = arith.constant 0 : i32
    return %c0_i32, %c0_i32_0 : i32, i32
  }
  func.func @transform_4(%arg0: i32) -> (i32, i32) {
    %c0_i32 = arith.constant 0 : i32
    %c0_i32_0 = arith.constant 0 : i32
    %c0_i32_1 = arith.constant 0 : i32
    return %c0_i32, %c0_i32_0 : i32, i32
  }
  func.func @transform_5(%arg0: i32) -> (i32, i32) {
    %c0_i32 = arith.constant 0 : i32
    %c0_i32_0 = arith.constant 0 : i32
    %c0_i32_1 = arith.constant 0 : i32
    return %c0_i32, %c0_i32_0 : i32, i32
  }
  func.func @transform_6(%arg0: i32) -> (i32, i32) {
    %c0_i32 = arith.constant 0 : i32
    %c0_i32_0 = arith.constant 0 : i32
    %c0_i32_1 = arith.constant 0 : i32
    return %c0_i32, %c0_i32_0 : i32, i32
  }
  func.func @transform_7(%arg0: i32) -> (i32, i32, i32) {
    %c0_i32 = arith.constant 0 : i32
    %c0_i32_0 = arith.constant 0 : i32
    %c0_i32_1 = arith.constant 0 : i32
    %c0_i32_2 = arith.constant 0 : i32
    return %c0_i32, %c0_i32_0, %c0_i32_1 : i32, i32, i32
  }
  func.func @transform_8(%arg0: i32) -> (i32, i32) {
    %c0_i32 = arith.constant 0 : i32
    %c0_i32_0 = arith.constant 0 : i32
    %c0_i32_1 = arith.constant 0 : i32
    return %c0_i32, %c0_i32_0 : i32, i32
  }
  func.func @transform_9(%arg0: i32) -> (i32, i32) {
    %c0_i32 = arith.constant 0 : i32
    %c0_i32_0 = arith.constant 0 : i32
    %c0_i32_1 = arith.constant 0 : i32
    return %c0_i32, %c0_i32_0 : i32, i32
  }
  func.func @transform_10(%arg0: i32) -> (i32, i32) {
    %c0_i32 = arith.constant 0 : i32
    %c0_i32_0 = arith.constant 0 : i32
    %c0_i32_1 = arith.constant 0 : i32
    return %c0_i32, %c0_i32_0 : i32, i32
  }
  func.func @transform_11(%arg0: i32) -> (i32, i32, i32) {
    %c0_i32 = arith.constant 0 : i32
    %c0_i32_0 = arith.constant 0 : i32
    %c0_i32_1 = arith.constant 0 : i32
    return %arg0, %c0_i32, %c0_i32_0 : i32, i32, i32
  }
}

</mosaic_0001>

<bundles_post_ra>
// kernel: double_conv_forward.1
= control target key start
LH: loop header
LB: loop body
LE: loop exit
PB: predicated region body
PF: predicated region fallthrough
CT: control target
= control target key end

     0   :  { %s6344_s17 = smov 0   ;;  %s8853_s0 = inlined_call_operand.vmem [shape: bf16[2,328,128], index: 0, kind: input, shape index: {}]   ;;  %s8854_s1 = inlined_call_operand.vmem [shape: f32[328,1], index: 1, kind: input, shape index: {}]   ;;  %s8855_s2 = inlined_call_operand.vmem [shape: f32[288,1], index: 2, kind: input, shape index: {}]   ;;  %s8856_s3 = inlined_call_operand.vmem [shape: bf16[128,128], index: 3, kind: input, shape index: {}]   ;;  %s8857_s4 = inlined_call_operand.vmem [shape: f32[1,128], index: 4, kind: input, shape index: {}]   ;;  %s8858_s5 = inlined_call_operand.vmem [shape: f32[1,128], index: 5, kind: input, shape index: {}]   ;;  %s8859_s6 = inlined_call_operand.vmem [shape: f32[1,128], index: 6, kind: input, shape index: {}]   ;;  %s8860_s7 = inlined_call_operand.vmem [shape: bf16[9,128,128], index: 7, kind: input, shape index: {}]   ;;  %s8861_s8 = inlined_call_operand.vmem [shape: f32[1,128], index: 8, kind: input, shape index: {}]   ;;  %s8862_s9 = inlined_call_operand.vmem [shape: f32[1,128], index: 9, kind: input, shape index: {}]   ;;  %s8863_s10 = inlined_call_operand.vmem [shape: f32[1,128], index: 10, kind: input, shape index: {}]   ;;  %s8864_s11 = inlined_call_operand.vmem [shape: f32[2,288,128], index: 11, kind: output, shape index: {}]  }
   0x1 LB: > { %s5194_s18 = sadd.s32 4294967295, %s6281_s17   ;;  %p5198_p0 = scmp.ge.s32.totalorder %s6281_s17, 1  ;;  %s6281_s17 = sphi %s6344_s17, %s21_s17  }
   0x2   : > { %p337_p1 = scmp.lt.s32.totalorder %s6281_s17, 3 }
   0x4   : > { %p338_p2 = pnand %p5198_p0, %p337_p1 }
   0x6   : > { %341 = sbr.rel (%p338_p2) target bundleno = 1549 (0x60d), region = 64 }
   0xb   : > { %v5962_v0 = vld [vmem:[%s8856_s3 + $0x38] sm:$0xff]  ;;  %v5961_v1 = vld [vmem:[%s8856_s3 + $0x30] sm:$0xff]  ;;  %v6283_v2 = vmov 0   ;;  %v856_v3 = vld [vmem:[%s8854_s1] sm:$0xff]  ;;  %p377_p3 = scmp.lt.s32.totalorder %s5194_s18, 1 }
   0xc   : > { %620 = vmatpush.bf16.msra.mxu0 %v5962_v0  ;;  %6247 = vset.pattern.permute.xlu0 %v6283_v2  ;;  %v5960_v4 = vld [vmem:[%s8856_s3 + $0x28] sm:$0xff]  ;;  %v5959_v5 = vld [vmem:[%s8856_s3 + $0x20] sm:$0xff]  ;;  %v5958_v6 = vld [vmem:[%s8856_s3 + $0x18] sm:$0xff] }
   0xd   : > { %899 = vperm.xlu0 %6247, %v856_v3   ;;  %6248 = vset.pattern.permute.xlu1 %v6283_v2  ;;  %v857_v7 = vld [vmem:[%s8854_s1 + $0x8] sm:$0xff]  ;;  %v858_v8 = vld [vmem:[%s8854_s1 + $0x10] sm:$0xff]  ;;  %s9227_s18 = smov (!%p377_p3, %s5194_s18), 1  ;;  %v5955_v11 = vld [vmem:[%s8856_s3] sm:$0xff] }
   0xe   : > { %6249 = vset.pattern.permute.xlu2 %v6283_v2  ;;  %v5957_v9 = vld [vmem:[%s8856_s3 + $0x10] sm:$0xff]  ;;  %909 = vperm.xlu1 %6248, %v858_v8   ;;  %v5956_v10 = vld [vmem:[%s8856_s3 + $0x8] sm:$0xff]  ;;  %s6236_s22 = smul.u32 164, %s9227_s18  ;;  %v859_v13 = vld [vmem:[%s8854_s1 + $0x18] sm:$0xff] }
   0xf   : > { %v862_v14 = vld [vmem:[%s8854_s1 + $0x30] sm:$0xff]  ;;  %v863_v15 = vld [vmem:[%s8854_s1 + $0x38] sm:$0xff]  ;;  %v865_v17 = vld [vmem:[%s8854_s1 + $0x48] sm:$0xff]  ;;  %s6237_s14 = smul.u32 288, %s9227_s18 }
  0x10   : > { %621 = vmatpush.bf16.msra.mxu0 %v5961_v1  ;;  %s6391_s27 = scalar_lea.vmem %s8853_s0, %s6236_s22  ;;  %v866_v18 = vld [vmem:[%s8854_s1 + $0x50] sm:$0xff]  ;;  %v868_v19 = vld [vmem:[%s8854_s1 + $0x60] sm:$0xff]  ;;  %v869_v20 = vld [vmem:[%s8854_s1 + $0x68] sm:$0xff] }
  0x11   : > { %v5935_v12 = vld [vmem:[%s6391_s27] sm:$0xff]  ;;  %v5936_v16 = vld [vmem:[%s6391_s27 + $0x8] sm:$0xff]  ;;  %v5937_v21 = vld [vmem:[%s6391_s27 + $0x10] sm:$0xff]  ;;  %s8808_s16 = scalar_lea.vmem %s8864_s11, %s6237_s14 }
  0x12   : > { %v860_v22 = vld [vmem:[%s8854_s1 + $0x20] sm:$0xff]  ;;  %v871_v23 = vld [vmem:[%s8854_s1 + $0x78] sm:$0xff]  ;;  %v861_v25 = vld [vmem:[%s8854_s1 + $0x28] sm:$0xff] }
  0x13   : > { %v872_v24 = vld [vmem:[%s8854_s1 + $0x80] sm:$0xff]  ;;  %919 = vperm.xlu2 %6249, %v860_v22   ;;  %v874_v26 = vld [vmem:[%s8854_s1 + $0x90] sm:$0xff]  ;;  %v875_v27 = vld [vmem:[%s8854_s1 + $0x98] sm:$0xff] }
  0x14   : > { %622 = vmatpush.bf16.msra.mxu0 %v5960_v4  ;;  %v5938_v28 = vld [vmem:[%s6391_s27 + $0x18] sm:$0xff]  ;;  %v864_v29 = vld [vmem:[%s8854_s1 + $0x40] sm:$0xff]  ;;  %v877_v30 = vld [vmem:[%s8854_s1 + $0xa8] sm:$0xff] }
  0x15   : > { %904 = vperm.xlu0 %6247, %v857_v7   ;;  %v878_v31 = vld [vmem:[%s8854_s1 + $0xb0] sm:$0xff]  ;;  %v867_v32 = vld [vmem:[%s8854_s1 + $0x58] sm:$0xff]  ;;  %v880_v33 = vld [vmem:[%s8854_s1 + $0xc0] sm:$0xff] }
  0x16   : > { %914 = vperm.xlu1 %6248, %v859_v13   ;;  %v881_v34 = vld [vmem:[%s8854_s1 + $0xc8] sm:$0xff]  ;;  %v5939_v35 = vld [vmem:[%s6391_s27 + $0x20] sm:$0xff]  ;;  %v870_v36 = vld [vmem:[%s8854_s1 + $0x70] sm:$0xff] }
  0x17   : > { %v883_v37 = vld [vmem:[%s8854_s1 + $0xd8] sm:$0xff]  ;;  %v884_v38 = vld [vmem:[%s8854_s1 + $0xe0] sm:$0xff]  ;;  %v873_v39 = vld [vmem:[%s8854_s1 + $0x88] sm:$0xff] }
  0x18   : > { %623 = vmatpush.bf16.msra.mxu0 %v5959_v5  ;;  %v886_v40 = vld [vmem:[%s8854_s1 + $0xf0] sm:$0xff]  ;;  %v887_v41 = vld [vmem:[%s8854_s1 + $0xf8] sm:$0xff]  ;;  %v5940_v42 = vld [vmem:[%s6391_s27 + $0x28] sm:$0xff] }
  0x19   : > { %v876_v43 = vld [vmem:[%s8854_s1 + $0xa0] sm:$0xff]  ;;  %v889_v44 = vld [vmem:[%s8854_s1 + $0x108] sm:$0xff]  ;;  %v890_v45 = vld [vmem:[%s8854_s1 + $0x110] sm:$0xff] }
  0x1a   : > { %v879_v46 = vld [vmem:[%s8854_s1 + $0xb8] sm:$0xff]  ;;  %v5941_v47 = vld [vmem:[%s6391_s27 + $0x30] sm:$0xff]  ;;  %v892_v48 = vld [vmem:[%s8854_s1 + $0x120] sm:$0xff] }
  0x1b   : > { %924 = vperm.xlu2 %6249, %v861_v25   ;;  %v893_v49 = vld [vmem:[%s8854_s1 + $0x128] sm:$0xff]  ;;  %v882_v50 = vld [vmem:[%s8854_s1 + $0xd0] sm:$0xff]  ;;  %v895_v51 = vld [vmem:[%s8854_s1 + $0x138] sm:$0xff] }
  0x1c   : > { %624 = vmatpush.bf16.msra.mxu0 %v5958_v6  ;;  %v896_v52 = vld [vmem:[%s8854_s1 + $0x140] sm:$0xff]  ;;  %v885_v53 = vld [vmem:[%s8854_s1 + $0xe8] sm:$0xff]  ;;  %v5942_v54 = vld [vmem:[%s6391_s27 + $0x38] sm:$0xff] }
  0x1d   : > { %929 = vperm.xlu0 %6247, %v862_v14   ;;  %v4635_v55 = vld [vmem:[%s8855_s2 + $0x8] sm:$0xff]  ;;  %v4636_v56 = vld [vmem:[%s8855_s2 + $0x10] sm:$0xff]  ;;  %v888_v57 = vld [vmem:[%s8854_s1 + $0x100] sm:$0xff] }
  0x1e   : > { %934 = vperm.xlu1 %6248, %v863_v15   ;;  %v4638_v58 = vld [vmem:[%s8855_s2 + $0x20] sm:$0xff]  ;;  %v4639_v59 = vld [vmem:[%s8855_s2 + $0x28] sm:$0xff]  ;;  %v891_v60 = vld [vmem:[%s8854_s1 + $0x118] sm:$0xff] }
  0x1f   : > { %v5943_v61 = vld [vmem:[%s6391_s27 + $0x40] sm:$0xff]  ;;  %v4641_v63 = vld [vmem:[%s8855_s2 + $0x38] sm:$0xff]  ;;  %v894_v1 = vld [vmem:[%s8854_s1 + $0x130] sm:$0xff] }
  0x20   : > { %625 = vmatpush.bf16.msra.mxu0 %v5957_v9  ;;  %v4642_v0 = vld [vmem:[%s8855_s2 + $0x40] sm:$0xff]  ;;  %v4644_v3 = vld [vmem:[%s8855_s2 + $0x50] sm:$0xff]  ;;  %v4645_v4 = vld [vmem:[%s8855_s2 + $0x58] sm:$0xff] }
  0x21   : > { %v4634_v5 = vld [vmem:[%s8855_s2] sm:$0xff]  ;;  %v5944_v6 = vld [vmem:[%s6391_s27 + $0x48] sm:$0xff]  ;;  %v4648_v9 = vld [vmem:[%s8855_s2 + $0x70] sm:$0xff] }
  0x22   : > { %v4647_v8 = vld [vmem:[%s8855_s2 + $0x68] sm:$0xff]  ;;  %v4640_v14 = vld [vmem:[%s8855_s2 + $0x30] sm:$0xff]  ;;  %v4657_v22 = vld [vmem:[%s8855_s2 + $0xb8] sm:$0xff] }
  0x23   : > { %939 = vperm.xlu2 %6249, %v864_v29   ;;  %v4651_v13 = vld [vmem:[%s8855_s2 + $0x88] sm:$0xff]  ;;  %v5945_v15 = vld [vmem:[%s6391_s27 + $0x50] sm:$0xff] }
  0x24   : > { %626 = vmatpush.bf16.msra.mxu0 %v5956_v10  ;;  %v4637_v10 = vld [vmem:[%s8855_s2 + $0x18] sm:$0xff] }
  0x25   : > { %944 = vperm.xlu0 %6247, %v865_v17   ;;  %v4653_v17 = vld [vmem:[%s8855_s2 + $0x98] sm:$0xff] }
  0x26   : > { %949 = vperm.xlu1 %6248, %v866_v18   ;;  %v4654_v18 = vld [vmem:[%s8855_s2 + $0xa0] sm:$0xff] }
  0x28   : > { %627 = vmatpush.bf16.msra.mxu0 %v5955_v11 }
  0x2b   : > { %628 = vmatmul.bf16.vlgmr.msra.gmra.mxu0 %v5935_v12  ;;  %954 = vperm.xlu2 %6249, %v867_v32   ;;  %v4650_v12 = vld [vmem:[%s8855_s2 + $0x80] sm:$0xff]  ;;  %v4652_v32 = vld [vmem:[%s8855_s2 + $0x90] sm:$0xff] }
  0x2d   : > { %959 = vperm.xlu0 %6247, %v868_v19   ;;  %v4643_v19 = vld [vmem:[%s8855_s2 + $0x48] sm:$0xff] }
  0x2e   : > { %964 = vperm.xlu1 %6248, %v869_v20  }
  0x33   : > { %969 = vperm.xlu2 %6249, %v870_v36   ;;  %v4666_v36 = vld [vmem:[%s8855_s2 + $0x100] sm:$0xff] }
  0x35   : > { %974 = vperm.xlu0 %6247, %v871_v23   ;;  %v4646_v23 = vld [vmem:[%s8855_s2 + $0x60] sm:$0xff] }
  0x36   : > { %979 = vperm.xlu1 %6248, %v872_v24   ;;  %v5946_v24 = vld [vmem:[%s6391_s27 + $0x58] sm:$0xff] }
  0x3b   : > { %633 = vmatmul.bf16.gmra.mxu0 %v5936_v16  ;;  %984 = vperm.xlu2 %6249, %v873_v39   ;;  %v4668_v39 = vld [vmem:[%s8855_s2 + $0x110] sm:$0xff] }
  0x3d   : > { %989 = vperm.xlu0 %6247, %v874_v26   ;;  %v4659_v26 = vld [vmem:[%s8855_s2 + $0xc8] sm:$0xff] }
  0x3e   : > { %994 = vperm.xlu1 %6248, %v875_v27   ;;  %v4660_v27 = vld [vmem:[%s8855_s2 + $0xd0] sm:$0xff] }
  0x43   : > { %999 = vperm.xlu2 %6249, %v876_v43  }
  0x45   : > { %1004 = vperm.xlu0 %6247, %v877_v30   ;;  %v4662_v30 = vld [vmem:[%s8855_s2 + $0xe0] sm:$0xff] }
  0x46   : > { %1009 = vperm.xlu1 %6248, %v878_v31   ;;  %v4663_v31 = vld [vmem:[%s8855_s2 + $0xe8] sm:$0xff] }
  0x4b   : > { %638 = vmatmul.bf16.gmra.mxu0 %v5937_v21  ;;  %1014 = vperm.xlu2 %6249, %v879_v46   ;;  %v4656_v21 = vld [vmem:[%s8855_s2 + $0xb0] sm:$0xff] }
  0x4c   : > { %v4664_v46 = vld [vmem:[%s8855_s2 + $0xf0] sm:$0xff] }
  0x4d   : > { %1019 = vperm.xlu0 %6247, %v880_v33   ;;  %v5947_v33 = vld [vmem:[%s6391_s27 + $0x60] sm:$0xff] }
  0x4e   : > { %1024 = vperm.xlu1 %6248, %v881_v34  }
  0x53   : > { %1029 = vperm.xlu2 %6249, %v882_v50  }
  0x55   : > { %1034 = vperm.xlu0 %6247, %v883_v37   ;;  %v4655_v37 = vld [vmem:[%s8855_s2 + $0xa8] sm:$0xff] }
  0x56   : > { %1039 = vperm.xlu1 %6248, %v884_v38  }
  0x5b   : > { %643 = vmatmul.bf16.gmra.mxu0 %v5938_v28  ;;  %1044 = vperm.xlu2 %6249, %v885_v53   ;;  %v4649_v28 = vld [vmem:[%s8855_s2 + $0x78] sm:$0xff] }
  0x5d   : > { %1049 = vperm.xlu0 %6247, %v886_v40   ;;  %v4669_v40 = vld [vmem:[%s8855_s2 + $0x118] sm:$0xff] }
  0x5e   : > { %1054 = vperm.xlu1 %6248, %v887_v41   ;;  %v4658_v41 = vld [vmem:[%s8855_s2 + $0xc0] sm:$0xff] }
  0x63   : > { %1059 = vperm.xlu2 %6249, %v888_v57   ;;  %v5952_v57 = vld [vmem:[%s6391_s27 + $0x88] sm:$0xff] }
  0x65   : > { %1064 = vperm.xlu0 %6247, %v889_v44   ;;  %v4661_v44 = vld [vmem:[%s8855_s2 + $0xd8] sm:$0xff] }
  0x66   : > { %1069 = vperm.xlu1 %6248, %v890_v45  }
  0x6b   : > { %648 = vmatmul.bf16.gmra.mxu0 %v5939_v35  ;;  %1074 = vperm.xlu2 %6249, %v891_v60   ;;  %v4665_v35 = vld [vmem:[%s8855_s2 + $0xf8] sm:$0xff]  ;;  %v5953_v60 = vld [vmem:[%s6391_s27 + $0x90] sm:$0xff] }
  0x6d   : > { %1079 = vperm.xlu0 %6247, %v892_v48  }
  0x6e   : > { %1084 = vperm.xlu1 %6248, %v893_v49   ;;  %v4667_v49 = vld [vmem:[%s8855_s2 + $0x108] sm:$0xff] }
  0x73   : > { %1089 = vperm.xlu2 %6249, %v894_v1  }
  0x75   : > { %1094 = vperm.xlu0 %6247, %v895_v51   ;;  %v5950_v51 = vld [vmem:[%s6391_s27 + $0x78] sm:$0xff] }
  0x76   : > { %1099 = vperm.xlu1 %6248, %v896_v52  }
  0x7b   : > { %653 = vmatmul.bf16.gmra.mxu0 %v5940_v42  ;;  %4672 = vperm.xlu2 %6249, %v4634_v5   ;;  %v5948_v42 = vld [vmem:[%s6391_s27 + $0x68] sm:$0xff] }
  0x7d   : > { %4677 = vperm.xlu0 %6247, %v4635_v55  }
  0x7e   : > { %4682 = vperm.xlu1 %6248, %v4636_v56  }
  0x83   : > { %4687 = vperm.xlu2 %6249, %v4637_v10   ;;  %v6688_v10 = vpop.permute.xlu1 %909 }
  0x84   : > { %8948 = vst [vmem:[#allocation4_spill] sm:$0xff] %v6688_v10 }
  0x85   : > { %4692 = vperm.xlu0 %6247, %v4638_v58  }
  0x86   : > { %4697 = vperm.xlu1 %6248, %v4639_v59  }
  0x8b   : > { %658 = vmatmul.bf16.gmra.mxu0 %v5941_v47  ;;  %4702 = vperm.xlu2 %6249, %v4640_v14   ;;  %v5949_v47 = vld [vmem:[%s6391_s27 + $0x70] sm:$0xff] }
  0x8d   : > { %4707 = vperm.xlu0 %6247, %v4641_v63  }
  0x8e   : > { %4712 = vperm.xlu1 %6248, %v4642_v0   ;;  %v5954_v0 = vld [vmem:[%s6391_s27 + $0x98] sm:$0xff] }
  0x93   : > { %4717 = vperm.xlu2 %6249, %v4643_v19  }
  0x95   : > { %4722 = vperm.xlu0 %6247, %v4644_v3  }
  0x96   : > { %4727 = vperm.xlu1 %6248, %v4645_v4   ;;  %v427_v4 = vld [vmem:[%s6391_s27 + $0xa0] sm:$0xf] }
  0x97   : > { %v529_v5 = vunpack.c.l.b16 %v427_v4 }
  0x9b   : > { %663 = vmatmul.bf16.gmra.mxu0 %v5942_v54  ;;  %4732 = vperm.xlu2 %6249, %v4646_v23   ;;  %v5951_v54 = vld [vmem:[%s6391_s27 + $0x80] sm:$0xff] }
  0x9d   : > { %4737 = vperm.xlu0 %6247, %v4647_v8   ;;  %v550_v8 = vpack.c.b16 %v529_v5, %v529_v5 }
  0x9e   : > { %4742 = vperm.xlu1 %6248, %v4648_v9  }
  0xa3   : > { %4747 = vperm.xlu2 %6249, %v4649_v28  }
  0xa5   : > { %4752 = vperm.xlu0 %6247, %v4650_v12   ;;  %v6690_v12 = vpop.permute.xlu2 %919 }
  0xa6   : > { %4757 = vperm.xlu1 %6248, %v4651_v13   ;;  %8949 = vst [vmem:[#allocation5_spill] sm:$0xff] %v6690_v12 }
  0xa8   : > { %v6525_v62 = vpop.f32.mrf.mxu0 }
  0xab   : > { %668 = vmatmul.bf16.gmra.mxu0 %v5943_v61  ;;  %4762 = vperm.xlu2 %6249, %v4652_v32  }
  0xad   : > { %4767 = vperm.xlu0 %6247, %v4653_v17   ;;  %v6698_v17 = vpop.permute.xlu2 %924 }
  0xae   : > { %4772 = vperm.xlu1 %6248, %v4654_v18   ;;  %8952 = vst [vmem:[#allocation8_spill] sm:$0xff] %v6698_v17 }
  0xb0   : > { %v6536_v2 = vpop.f32.mrf.mxu0 }
  0xb3   : > { %4777 = vperm.xlu2 %6249, %v4655_v37  }
  0xb5   : > { %4782 = vperm.xlu0 %6247, %v4656_v21   ;;  %v6708_v23 = vpop.permute.xlu2 %939 }
  0xb6   : > { %4787 = vperm.xlu1 %6248, %v4657_v22   ;;  %8955 = vst [vmem:[#allocation11_spill] sm:$0xff] %v6708_v23 }
  0xb8   : > { %v6548_v7 = vpop.f32.mrf.mxu0 }
  0xbb   : > { %673 = vmatmul.bf16.gmra.mxu0 %v5944_v6  ;;  %4792 = vperm.xlu2 %6249, %v4658_v41   ;;  %v6684_v6 = vpop.permute.xlu0 %899 }
  0xbc   : > { %8947 = vst [vmem:[#allocation3_spill] sm:$0xff] %v6684_v6 }
  0xbd   : > { %4797 = vperm.xlu0 %6247, %v4659_v26   ;;  %v6715_v26 = vld [vmem:[%s8857_s4] ss:$0 sm:$0xff] }
  0xbe   : > { %4802 = vperm.xlu1 %6248, %v4660_v27   ;;  %v632_v28 = vadd.f32 %v6715_v26, %v6536_v2  ;;  %v635_v32 = vadd.f32 %v6715_v26, %v6548_v7 }
  0xc0   : > { %v6559_v11 = vpop.f32.mrf.mxu0  ;;  %vm734_vm0 = vcmp.ge.f32.partialorder %v632_v28, 0.0  ;;  %vm735_vm2 = vcmp.ge.f32.partialorder %v635_v32, 0.0 }
  0xc1   : > { %v637_v37 = vadd.f32 %v6715_v26, %v6559_v11 }
  0xc3   : > { %4807 = vperm.xlu2 %6249, %v4661_v44   ;;  %v6694_v14 = vpop.permute.xlu0 %904  ;;  %v777_v7 = vmul.f32 0.01, %v637_v37  ;;  %vm736_vm3 = vcmp.ge.f32.partialorder %v637_v37, 0.0 }
  0xc4   : > { %8950 = vst [vmem:[#allocation6_spill] sm:$0xff] %v6694_v14 }
  0xc5   : > { %4812 = vperm.xlu0 %6247, %v4662_v30  }
  0xc6   : > { %4817 = vperm.xlu1 %6248, %v4663_v31   ;;  %v630_v31 = vadd.f32 %v6715_v26, %v6525_v62 }
  0xc8   : > { %v6571_v16 = vpop.f32.mrf.mxu0  ;;  %vm733_vm1 = vcmp.ge.f32.partialorder %v630_v31, 0.0 }
  0xc9   : > { %v640_v2 = vadd.f32 %v6715_v26, %v6571_v16 }
  0xcb   : > { %678 = vmatmul.bf16.gmra.mxu0 %v5945_v15  ;;  %4822 = vperm.xlu2 %6249, %v4664_v46   ;;  %v6696_v15 = vpop.permute.xlu1 %914  ;;  %v6702_v19 = vpop.permute.xlu0 %929  ;;  %vm737_vm4 = vcmp.ge.f32.partialorder %v640_v2, 0.0 }
  0xcc   : > { %8951 = vst [vmem:[#allocation7_spill] sm:$0xff] %v6696_v15 }
  0xcd   : > { %4827 = vperm.xlu0 %6247, %v4665_v35   ;;  %8953 = vst [vmem:[#allocation9_spill] sm:$0xff] %v6702_v19  ;;  %v775_v35 = vmul.f32 0.01, %v632_v28 }
  0xce   : > { %4832 = vperm.xlu1 %6248, %v4666_v36  }
  0xcf   : > { %v6737_v41 = vsel %vm734_vm0, %v632_v28, %v775_v35 }
  0xd0   : > { %v6582_v20 = vpop.f32.mrf.mxu0 }
  0xd1   : > { %v642_v11 = vadd.f32 %v6715_v26, %v6582_v20 }
  0xd3   : > { %4837 = vperm.xlu2 %6249, %v4667_v49   ;;  %v6704_v21 = vpop.permute.xlu1 %934  ;;  %v778_v49 = vmul.f32 0.01, %v640_v2  ;;  %v779_v20 = vmul.f32 0.01, %v642_v11  ;;  %vm738_vm5 = vcmp.ge.f32.partialorder %v642_v11, 0.0 }
  0xd4   : > { %8954 = vst [vmem:[#allocation10_spill] sm:$0xff] %v6704_v21 }
  0xd5   : > { %4842 = vperm.xlu0 %6247, %v4668_v39   ;;  %v774_v39 = vmul.f32 0.01, %v630_v31 }
  0xd6   : > { %4847 = vperm.xlu1 %6248, %v4669_v40   ;;  %v776_v40 = vmul.f32 0.01, %v635_v32 }
  0xd8   : > { %v6594_v25 = vpop.f32.mrf.mxu0  ;;  %v6741_v44 = vsel %vm735_vm2, %v635_v32, %v776_v40 }
  0xd9   : > { %v645_v16 = vadd.f32 %v6715_v26, %v6594_v25 }
  0xdb   : > { %683 = vmatmul.bf16.gmra.mxu0 %v5946_v24  ;;  %v6710_v24 = vpop.permute.xlu0 %944  ;;  %v6721_v30 = vpop.permute.xlu1 %949  ;;  %vm739_vm6 = vcmp.ge.f32.partialorder %v645_v16, 0.0 }
  0xdc   : > { %8956 = vst [vmem:[#allocation12_spill] sm:$0xff] %v6710_v24 }
  0xdd   : > { %8957 = vst [vmem:[#allocation13_spill] sm:$0xff] %v6721_v30 }
  0xe0   : > { %v6605_v29 = vpop.f32.mrf.mxu0 }
  0xe3   : > { %v6729_v36 = vpop.permute.xlu0 %959  ;;  %v6745_v46 = vpop.permute.xlu1 %964 }
  0xe4   : > { %8959 = vst [vmem:[#allocation15_spill] sm:$0xff] %v6729_v36 }
  0xe5   : > { %8960 = vst [vmem:[#allocation16_spill] sm:$0xff] %v6745_v46 }
  0xe8   : > { %v6617_v34 = vpop.f32.mrf.mxu0 }
  0xe9   : > { %v650_v32 = vadd.f32 %v6715_v26, %v6617_v34 }
  0xeb   : > { %688 = vmatmul.bf16.gmra.mxu0 %v5947_v33  ;;  %v6727_v33 = vpop.permute.xlu2 %954  ;;  %v6761_v4 = vpop.permute.xlu0 %974  ;;  %v782_v34 = vmul.f32 0.01, %v650_v32  ;;  %vm741_vm8 = vcmp.ge.f32.partialorder %v650_v32, 0.0 }
  0xec   : > { %8958 = vst [vmem:[#allocation14_spill] sm:$0xff] %v6727_v33 }
  0xed   : > { %8963 = vst [vmem:[#allocation19_spill] sm:$0xff] %v6761_v4 }
  0xf0   : > { %v6628_v38 = vpop.f32.mrf.mxu0 }
  0xf8   : > { %v6640_v43 = vpop.f32.mrf.mxu0 }
  0xfb   : > { %693 = vmatmul.bf16.gmra.mxu0 %v5948_v42  ;;  %v6739_v42 = vsel %vm733_vm1, %v630_v31, %v774_v39  ;;  %v780_v31 = vmul.f32 0.01, %v645_v16  ;;  %v6773_v39 = vsel %vm738_vm5, %v642_v11, %v779_v20 }
  0xfc   : > { %v1107_v11 = vmul.f32 %v6698_v17, %v6773_v39 }
 0x100   : > { %v6645_v45 = vpop.f32.mrf.mxu0 }
 0x108   : > { %v6651_v48 = vpop.f32.mrf.mxu0 }
 0x10b   : > { %698 = vmatmul.bf16.gmra.mxu0 %v5949_v47  ;;  %v1103_v47 = vmul.f32 %v6694_v14, %v6737_v41  ;;  %v6779_v14 = vpop.permute.xlu1 %979 }
 0x10c   : > { %8965 = vst [vmem:[#allocation21_spill] sm:$0xff] %v6779_v14 }
 0x10d   : > { %v1191_v5 = vmul.f32 %v1103_v47, %v1103_v47 }
 0x110   : > { %v6656_v50 = vpop.f32.mrf.mxu0 }
 0x118   : > { %v6659_v52 = vpop.f32.mrf.mxu0 }
 0x11b   : > { %703 = vmatmul.bf16.gmra.mxu0 %v5950_v51  ;;  %v6751_v51 = vpop.permute.xlu2 %969 }
 0x11c   : > { %8961 = vst [vmem:[#allocation17_spill] sm:$0xff] %v6751_v51 }
 0x120   : > { %v6661_v53 = vpop.f32.mrf.mxu0 }
 0x128   : > { %v6664_v55 = vpop.f32.mrf.mxu0 }
 0x12b   : > { %708 = vmatmul.bf16.gmra.mxu0 %v5951_v54  ;;  %v1102_v54 = vmul.f32 %v6684_v6, %v6739_v42  ;;  %v655_v6 = vadd.f32 %v6715_v26, %v6640_v43 }
 0x12d   : > { %v1190_v35 = vmul.f32 %v1102_v54, %v1102_v54  ;;  %vm743_vm10 = vcmp.ge.f32.partialorder %v655_v6, 0.0 }
 0x130   : > { %v6666_v56 = vpop.f32.mrf.mxu0 }
 0x138   : > { %v6669_v58 = vpop.f32.mrf.mxu0 }
 0x13b   : > { %713 = vmatmul.bf16.gmra.mxu0 %v5952_v57  ;;  %v1104_v57 = vmul.f32 %v6688_v10, %v6741_v44  ;;  %v6777_v10 = vsel %vm739_vm6, %v645_v16, %v780_v31  ;;  %v657_v16 = vadd.f32 %v6715_v26, %v6645_v45  ;;  %v660_v45 = vadd.f32 %v6715_v26, %v6651_v48 }
 0x13c   : > { %8964 = vst [vmem:[#allocation20_spill] sm:$0xff] %v6777_v10 }
 0x13d   : > { %vm744_vm11 = vcmp.ge.f32.partialorder %v657_v16, 0.0  ;;  %vm745_vm12 = vcmp.ge.f32.partialorder %v660_v45, 0.0 }
 0x140   : > { %v6671_v59 = vpop.f32.mrf.mxu0 }
 0x148   : > { %v6674_v61 = vpop.f32.mrf.mxu0 }
 0x14b   : > { %718 = vmatmul.bf16.gmra.mxu0 %v5953_v60  ;;  %v6757_v60 = vsel %vm736_vm3, %v637_v37, %v777_v7  ;;  %v1192_v37 = vmul.f32 %v1104_v57, %v1104_v57  ;;  %v1143_v7 = vadd.f32 %v1103_v47, %v1102_v54  ;;  %v6787_v54 = vpop.permute.xlu2 %984 }
 0x14c   : > { %8962 = vst [vmem:[#allocation18_spill] sm:$0xff] %v6757_v60  ;;  %v1105_v28 = vmul.f32 %v6696_v15, %v6757_v60 }
 0x14d   : > { %v1144_v60 = vadd.f32 %v1143_v7, %v1104_v57  ;;  %8966 = vst [vmem:[#allocation22_spill] sm:$0xff] %v6787_v54 }
 0x14e   : > { %v1193_v15 = vmul.f32 %v1105_v28, %v1105_v28 }
 0x14f   : > { %v1145_v57 = vadd.f32 %v1144_v60, %v1105_v28 }
 0x150   : > { %v6676_v63 = vpop.f32.mrf.mxu0 }
 0x158   : > { %v6679_v1 = vpop.f32.mrf.mxu0 }
 0x15b   : > { %723 = vmatmul.bf16.gmra.mxu0 %v5954_v0  ;;  %v647_v0 = vadd.f32 %v6715_v26, %v6605_v29 }
 0x15d   : > { %v781_v40 = vmul.f32 0.01, %v647_v0  ;;  %vm740_vm7 = vcmp.ge.f32.partialorder %v647_v0, 0.0 }
 0x160   : > { %v6681_v3 = vpop.f32.mrf.mxu0 }
 0x168   : > { %v6686_v9 = vpop.f32.mrf.mxu0 }
 0x16b   : > { %728 = vmatmul.bf16.gmra.mxu0 %v550_v8  ;;  %v6763_v8 = vsel %vm737_vm4, %v640_v2, %v778_v49  ;;  %v652_v2 = vadd.f32 %v6715_v26, %v6628_v38  ;;  %v1231_v49 = vadd.f32 %v1191_v5, %v1190_v35  ;;  %v6785_v38 = vsel %vm740_vm7, %v647_v0, %v781_v40 }
 0x16c   : > { %v1106_v29 = vmul.f32 %v6690_v12, %v6763_v8  ;;  %v1108_v5 = vmul.f32 %v6702_v19, %v6777_v10  ;;  %v6795_v35 = vsel %vm741_vm8, %v650_v32, %v782_v34  ;;  %v784_v0 = vmul.f32 0.01, %v655_v6 }
 0x16d   : > { %v1232_v12 = vadd.f32 %v1231_v49, %v1192_v37  ;;  %v783_v47 = vmul.f32 0.01, %v652_v2  ;;  %vm742_vm9 = vcmp.ge.f32.partialorder %v652_v2, 0.0  ;;  %v6797_v37 = vpop.permute.xlu0 %989  ;;  %v1195_v40 = vmul.f32 %v1107_v11, %v1107_v11 }
 0x16e   : > { %v1194_v20 = vmul.f32 %v1106_v29, %v1106_v29  ;;  %8967 = vst [vmem:[#allocation23_spill] sm:$0xff] %v6797_v37  ;;  %v1109_v7 = vmul.f32 %v6704_v21, %v6785_v38  ;;  %v1146_v49 = vadd.f32 %v1145_v57, %v1106_v29  ;;  %v785_v10 = vmul.f32 0.01, %v657_v16 }
 0x16f   : > { %v1233_v31 = vadd.f32 %v1232_v12, %v1193_v15  ;;  %v6803_v17 = vsel %vm742_vm9, %v652_v2, %v783_v47  ;;  %v1196_v60 = vmul.f32 %v1108_v5, %v1108_v5  ;;  %v1110_v12 = vmul.f32 %v6708_v23, %v6795_v35 }
 0x170   : > { %v6692_v13 = vpop.f32.mrf.mxu0  ;;  %v662_v15 = vadd.f32 %v6715_v26, %v6656_v50  ;;  %v1147_v28 = vadd.f32 %v1146_v49, %v1107_v11  ;;  %v6809_v32 = vsel %vm743_vm10, %v655_v6, %v784_v0  ;;  %v1197_v21 = vmul.f32 %v1109_v7, %v1109_v7 }
 0x171   : > { %v1234_v19 = vadd.f32 %v1233_v31, %v1194_v20  ;;  %v1111_v48 = vmul.f32 %v6710_v24, %v6803_v17  ;;  %v786_v29 = vmul.f32 0.01, %v660_v45  ;;  %v6813_v20 = vpop.permute.xlu1 %994  ;;  %v6815_v47 = vsel %vm744_vm11, %v657_v16, %v785_v10 }
 0x172   : > { %v1148_v2 = vadd.f32 %v1147_v28, %v1108_v5  ;;  %8968 = vst [vmem:[#allocation24_spill] sm:$0xff] %v6813_v20  ;;  %v665_v57 = vadd.f32 %v6715_v26, %v6659_v52  ;;  %v1198_v50 = vmul.f32 %v1110_v12, %v1110_v12  ;;  %v1112_v6 = vmul.f32 %v6721_v30, %v6809_v32 }
 0x173   : > { %v1235_v34 = vadd.f32 %v1234_v19, %v1195_v40  ;;  %v787_v19 = vmul.f32 0.01, %v662_v15  ;;  %v6823_v40 = vpop.permute.xlu2 %999  ;;  %vm746_vm13 = vcmp.ge.f32.partialorder %v662_v15, 0.0  ;;  %v667_v10 = vadd.f32 %v6715_v26, %v6661_v53 }
 0x174   : > { %v1149_v0 = vadd.f32 %v1148_v2, %v1109_v7  ;;  %8969 = vst [vmem:[#allocation25_spill] sm:$0xff] %v6823_v40  ;;  %v1199_v5 = vmul.f32 %v1111_v48, %v1111_v48  ;;  %v1113_v52 = vmul.f32 %v6727_v33, %v6815_v47  ;;  %v6829_v49 = vsel %vm745_vm12, %v660_v45, %v786_v29 }
 0x175   : > { %v1236_v31 = vadd.f32 %v1235_v34, %v1196_v60  ;;  %v6831_v28 = vpop.permute.xlu0 %1004  ;;  %v788_v34 = vmul.f32 0.01, %v665_v57  ;;  %v670_v7 = vadd.f32 %v6715_v26, %v6664_v55  ;;  %v1200_v30 = vmul.f32 %v1112_v6, %v1112_v6 }
 0x176   : > { %v1150_v60 = vadd.f32 %v1149_v0, %v1110_v12  ;;  %8970 = vst [vmem:[#allocation26_spill] sm:$0xff] %v6831_v28  ;;  %v6835_v24 = vsel %vm746_vm13, %v662_v15, %v787_v19  ;;  %vm747_vm14 = vcmp.ge.f32.partialorder %v665_v57, 0.0  ;;  %v1114_v53 = vmul.f32 %v6729_v36, %v6829_v49 }
 0x177   : > { %v1237_v16 = vadd.f32 %v1236_v31, %v1197_v21  ;;  %v789_v21 = vmul.f32 0.01, %v667_v10  ;;  %v672_v45 = vadd.f32 %v6715_v26, %v6666_v56  ;;  %v1201_v31 = vmul.f32 %v1113_v52, %v1113_v52 }
 0x178   : > { %v6700_v18 = vpop.f32.mrf.mxu0  ;;  %v1151_v29 = vadd.f32 %v1150_v60, %v1111_v48  ;;  %vm748_vm15 = vcmp.ge.f32.partialorder %v667_v10, 0.0  ;;  %v1115_v0 = vmul.f32 %v6745_v46, %v6835_v24  ;;  %v6843_v55 = vsel %vm747_vm14, %v665_v57, %v788_v34 }
 0x179   : > { %v1238_v2 = vadd.f32 %v1237_v16, %v1198_v50  ;;  %v790_v50 = vmul.f32 0.01, %v670_v7  ;;  %v675_v15 = vadd.f32 %v6715_v26, %v6669_v58  ;;  %vm749_vm0 = vcmp.ge.f32.partialorder %v670_v7, 0.0  ;;  %v6849_v33 = vpop.permute.xlu1 %1009 }
 0x17a   : > { %v1152_v19 = vadd.f32 %v1151_v29, %v1112_v6  ;;  %8971 = vst [vmem:[#allocation27_spill] sm:$0xff] %v6849_v33  ;;  %v1202_v56 = vmul.f32 %v1114_v53, %v1114_v53  ;;  %v6851_v48 = vsel %vm748_vm15, %v667_v10, %v789_v21  ;;  %v677_v60 = vadd.f32 %v6715_v26, %v6671_v59 }
 0x17b   : > { %v1239_v12 = vadd.f32 %v1238_v2, %v1199_v5  ;;  %v791_v5 = vmul.f32 0.01, %v672_v45  ;;  %v1116_v2 = vmul.f32 %v6751_v51, %v6843_v55  ;;  %vm750_vm1 = vcmp.ge.f32.partialorder %v672_v45, 0.0  ;;  %v6857_v58 = vpop.permute.xlu2 %1014 }
 0x17c   : > { %v1153_v57 = vadd.f32 %v1152_v19, %v1113_v52  ;;  %8972 = vst [vmem:[#allocation28_spill] sm:$0xff] %v6857_v58  ;;  %v6859_v6 = vsel %vm749_vm0, %v670_v7, %v790_v50  ;;  %v792_v29 = vmul.f32 0.01, %v675_v15  ;;  %v680_v10 = vadd.f32 %v6715_v26, %v6674_v61 }
 0x17d   : > { %v1240_v16 = vadd.f32 %v1239_v12, %v1200_v30  ;;  %v1203_v30 = vmul.f32 %v1115_v0, %v1115_v0  ;;  %v1117_v21 = vmul.f32 %v6761_v4, %v6851_v48  ;;  %vm751_vm2 = vcmp.ge.f32.partialorder %v675_v15, 0.0  ;;  %v6865_v59 = vpop.permute.xlu0 %1019 }
 0x17e   : > { %8973 = vst [vmem:[#allocation29_spill] sm:$0xff] %v6865_v59  ;;  %v1154_v52 = vadd.f32 %v1153_v57, %v1114_v53  ;;  %v793_v19 = vmul.f32 0.01, %v677_v60  ;;  %v1118_v7 = vmul.f32 %v6779_v14, %v6859_v6  ;;  %vm752_vm3 = vcmp.ge.f32.partialorder %v677_v60, 0.0 }
 0x17f   : > { %v1241_v34 = vadd.f32 %v1240_v16, %v1201_v31  ;;  %v6867_v31 = vsel %vm750_vm1, %v672_v45, %v791_v5  ;;  %v1204_v16 = vmul.f32 %v1116_v2, %v1116_v2  ;;  %v682_v50 = vadd.f32 %v6715_v26, %v6676_v63 }
 0x180   : > { %v6706_v22 = vpop.f32.mrf.mxu0  ;;  %v1155_v61 = vadd.f32 %v1154_v52, %v1115_v0  ;;  %v6873_v46 = vsel %vm751_vm2, %v675_v15, %v792_v29  ;;  %v794_v4 = vmul.f32 0.01, %v680_v10  ;;  %v1205_v23 = vmul.f32 %v1117_v21, %v1117_v21 }
 0x181   : > { %v1242_v12 = vadd.f32 %v1241_v34, %v1202_v56  ;;  %v1119_v53 = vmul.f32 %v6787_v54, %v6867_v31  ;;  %vm753_vm4 = vcmp.ge.f32.partialorder %v680_v10, 0.0  ;;  %v685_v45 = vadd.f32 %v6715_v26, %v6679_v1 }
 0x182   : > { %v1156_v5 = vadd.f32 %v1155_v61, %v1116_v2  ;;  %v6881_v57 = vsel %vm752_vm3, %v677_v60, %v793_v19  ;;  %v1206_v63 = vmul.f32 %v1118_v7, %v1118_v7  ;;  %v1120_v0 = vmul.f32 %v6797_v37, %v6873_v46 }
 0x183   : > { %v1243_v51 = vadd.f32 %v1242_v12, %v1203_v30  ;;  %v795_v15 = vmul.f32 0.01, %v682_v50  ;;  %v6885_v30 = vpop.permute.xlu1 %1024  ;;  %v6887_v52 = vsel %vm753_vm4, %v680_v10, %v794_v4  ;;  %vm754_vm5 = vcmp.ge.f32.partialorder %v682_v50, 0.0  ;;  %v6893_v2 = vpop.permute.xlu2 %1029 }
 0x184   : > { %8974 = vst [vmem:[#allocation30_spill] sm:$0xff] %v6885_v30  ;;  %v1157_v29 = vadd.f32 %v1156_v5, %v1117_v21  ;;  %v687_v1 = vadd.f32 %v6715_v26, %v6681_v3  ;;  %v1207_v54 = vmul.f32 %v1119_v53, %v1119_v53  ;;  %v1121_v60 = vmul.f32 %v6813_v20, %v6881_v57 }
 0x185   : > { %v1244_v34 = vadd.f32 %v1243_v51, %v1204_v16  ;;  %v796_v51 = vmul.f32 0.01, %v685_v45  ;;  %8975 = vst [vmem:[#allocation31_spill] sm:$0xff] %v6893_v2  ;;  %vm755_vm6 = vcmp.ge.f32.partialorder %v685_v45, 0.0  ;;  %v690_v16 = vadd.f32 %v6715_v26, %v6686_v9  ;;  %v6901_v3 = vpop.permute.xlu0 %1034 }
 0x186   : > { %v1158_v19 = vadd.f32 %v1157_v29, %v1118_v7  ;;  %v1208_v4 = vmul.f32 %v1120_v0, %v1120_v0  ;;  %v1122_v10 = vmul.f32 %v6823_v40, %v6887_v52  ;;  %v6899_v61 = vsel %vm754_vm5, %v682_v50, %v795_v15  ;;  %8976 = vst [vmem:[#allocation32_spill] sm:$0xff] %v6901_v3 }
 0x187   : > { %v1245_v12 = vadd.f32 %v1244_v34, %v1205_v23  ;;  %v797_v5 = vmul.f32 0.01, %v687_v1  ;;  %v692_v34 = vadd.f32 %v6715_v26, %v6692_v13  ;;  %v1209_v7 = vmul.f32 %v1121_v60, %v1121_v60 }
 0x188   : > { %v6717_v27 = vpop.f32.mrf.mxu0  ;;  %v1159_v23 = vadd.f32 %v1158_v19, %v1119_v53  ;;  %v6905_v29 = vsel %vm755_vm6, %v685_v45, %v796_v51  ;;  %vm756_vm7 = vcmp.ge.f32.partialorder %v687_v1, 0.0  ;;  %v695_v50 = vadd.f32 %v6715_v26, %v6700_v18 }
 0x189   : > { %v1246_v21 = vadd.f32 %v1245_v12, %v1206_v63  ;;  %v1123_v63 = vmul.f32 %v6831_v28, %v6899_v61  ;;  %v798_v12 = vmul.f32 0.01, %v690_v16  ;;  %v1210_v19 = vmul.f32 %v1122_v10, %v1122_v10 }
 0x18a   : > { %v1160_v15 = vadd.f32 %v1159_v23, %v1120_v0  ;;  %vm757_vm8 = vcmp.ge.f32.partialorder %v690_v16, 0.0  ;;  %v1124_v13 = vmul.f32 %v6849_v33, %v6905_v29  ;;  %v799_v45 = vmul.f32 0.01, %v692_v34 }
 0x18b   : > { %v1247_v20 = vadd.f32 %v1246_v21, %v1207_v54  ;;  %v6915_v54 = vsel %vm756_vm7, %v687_v1, %v797_v5  ;;  %v697_v51 = vadd.f32 %v6715_v26, %v6706_v22  ;;  %vm758_vm9 = vcmp.ge.f32.partialorder %v692_v34, 0.0  ;;  %v6919_v28 = vpop.permute.xlu1 %1039  ;;  %v6927_v5 = vpop.permute.xlu2 %1044 }
 0x18c   : > { %v1161_v21 = vadd.f32 %v1160_v15, %v1121_v60  ;;  %8977 = vst [vmem:[#allocation33_spill] sm:$0xff] %v6919_v28  ;;  %v1211_v37 = vmul.f32 %v1123_v63, %v1123_v63  ;;  %v6921_v18 = vsel %vm757_vm8, %v690_v16, %v798_v12  ;;  %v700_v0 = vadd.f32 %v6715_v26, %v6717_v27 }
 0x18d   : > { %v1248_v53 = vadd.f32 %v1247_v20, %v1208_v4  ;;  %v800_v20 = vmul.f32 0.01, %v695_v50  ;;  %v1125_v1 = vmul.f32 %v6857_v58, %v6915_v54  ;;  %vm759_vm10 = vcmp.ge.f32.partialorder %v695_v50, 0.0  ;;  %8978 = vst [vmem:[#allocation34_spill] sm:$0xff] %v6927_v5 }
 0x18e   : > { %v1162_v4 = vadd.f32 %v1161_v21, %v1122_v10  ;;  %v1212_v22 = vmul.f32 %v1124_v13, %v1124_v13  ;;  %v6929_v60 = vsel %vm758_vm9, %v692_v34, %v799_v45  ;;  %v1126_v12 = vmul.f32 %v6865_v59, %v6921_v18  ;;  %v6935_v10 = vpop.permute.xlu0 %1049 }
 0x18f   : > { %v1249_v40 = vadd.f32 %v1248_v53, %v1209_v7  ;;  %v801_v7 = vmul.f32 0.01, %v697_v51  ;;  %vm760_vm11 = vcmp.ge.f32.partialorder %v697_v51, 0.0  ;;  %8979 = vst [vmem:[#allocation35_spill] sm:$0xff] %v6935_v10  ;;  %v6937_v53 = vsel %vm759_vm10, %v695_v50, %v800_v20 }
 0x190   : > { %v6735_v62 = vpop.f32.mrf.mxu0  ;;  %v1213_v21 = vmul.f32 %v1125_v1, %v1125_v1  ;;  %v1127_v34 = vmul.f32 %v6885_v30, %v6929_v60  ;;  %vm761_vm12 = vcmp.ge.f32.partialorder %v700_v0, 0.0  ;;  %v1214_v14 = vmul.f32 %v1126_v12, %v1126_v12 }
 0x191   : > { %v1250_v23 = vadd.f32 %v1249_v40, %v1210_v19  ;;  %v702_v16 = vadd.f32 %v6715_v26, %v6735_v62  ;;  %v1163_v40 = vadd.f32 %v1162_v4, %v1123_v63  ;;  %v802_v19 = vmul.f32 0.01, %v700_v0 }
 0x192   : > { %v6943_v59 = vsel %vm760_vm11, %v697_v51, %v801_v7 }
 0x193   : > { %v1251_v15 = vadd.f32 %v1250_v23, %v1211_v37  ;;  %v1164_v45 = vadd.f32 %v1163_v40, %v1124_v13  ;;  %v803_v33 = vmul.f32 0.01, %v702_v16  ;;  %v1128_v37 = vmul.f32 %v6893_v2, %v6937_v53  ;;  %v6953_v51 = vpop.permute.xlu1 %1054 }
 0x194   : > { %vm762_vm13 = vcmp.ge.f32.partialorder %v702_v16, 0.0  ;;  %v6949_v20 = vsel %vm761_vm12, %v700_v0, %v802_v19  ;;  %v1215_v23 = vmul.f32 %v1127_v34, %v1127_v34  ;;  %8980 = vst [vmem:[#allocation36_spill] sm:$0xff] %v6953_v51  ;;  %v6961_v19 = vpop.permute.xlu2 %1059  ;;  %vm1671_vm12 = vsmask.f32 7424 }
 0x195   : > { %v1252_v58 = vadd.f32 %v1251_v15, %v1212_v22  ;;  %v1165_v50 = vadd.f32 %v1164_v45, %v1125_v1  ;;  %v6955_v7 = vsel %vm762_vm13, %v702_v16, %v803_v33  ;;  %v1130_v0 = vmul.f32 %v6919_v28, %v6949_v20  ;;  %8981 = vst [vmem:[#allocation37_spill] sm:$0xff] %v6961_v19 }
 0x196   : > { %v1131_v45 = vmul.f32 %v6927_v5, %v6955_v7  ;;  %vm2171_vm13 = vcmask 1046528  }
 0x197   : > { %v1253_v4 = vadd.f32 %v1252_v58, %v1213_v21  ;;  %v1166_v22 = vadd.f32 %v1165_v50, %v1126_v12 }
 0x198   : > { %v6765_v25 = vpop.f32.mrf.mxu0  ;;  %v1219_v5 = vmul.f32 %v1131_v45, %v1131_v45 }
 0x199   : > { %v705_v62 = vadd.f32 %v6715_v26, %v6765_v25  ;;  %v1129_v25 = vmul.f32 %v6901_v3, %v6943_v59  ;;  %v1254_v15 = vadd.f32 %v1253_v4, %v1214_v14  ;;  %v1167_v21 = vadd.f32 %v1166_v22, %v1127_v34  ;;  %v6969_v14 = vpop.permute.xlu0 %1064 }
 0x19a   : > { %8982 = vst [vmem:[#allocation38_spill] sm:$0xff] %v6969_v14  ;;  %v1218_v34 = vmul.f32 %v1130_v0, %v1130_v0 }
 0x19b   : > { %v804_v13 = vmul.f32 0.01, %v705_v62  ;;  %vm763_vm14 = vcmp.ge.f32.partialorder %v705_v62, 0.0  ;;  %v1255_v33 = vadd.f32 %v1254_v15, %v1215_v23  ;;  %v1217_v16 = vmul.f32 %v1129_v25, %v1129_v25 }
 0x19c   : > { %v1168_v50 = vadd.f32 %v1167_v21, %v1128_v37 }
 0x1a0   : > { %v6793_v43 = vpop.f32.mrf.mxu0 }
 0x1a1   : > { %v707_v63 = vadd.f32 %v6715_v26, %v6793_v43  ;;  %v1216_v43 = vmul.f32 %v1128_v37, %v1128_v37 }
 0x1a3   : > { %v805_v58 = vmul.f32 0.01, %v707_v63  ;;  %vm764_vm15 = vcmp.ge.f32.partialorder %v707_v63, 0.0  ;;  %v1256_v3 = vadd.f32 %v1255_v33, %v1216_v43 }
 0x1a5   : > { %v6973_v22 = vsel %vm764_vm15, %v707_v63, %v805_v58  ;;  %v1257_v15 = vadd.f32 %v1256_v3, %v1217_v16  ;;  %vm4247_vm15 = vcmask 1044480  }
 0x1a6   : > { %v1133_v37 = vmul.f32 %v6953_v51, %v6973_v22 }
 0x1a7   : > { %v1258_v21 = vadd.f32 %v1257_v15, %v1218_v34 }
 0x1a8   : > { %v6821_v11 = vpop.f32.mrf.mxu0 }
 0x1a9   : > { %v710_v40 = vadd.f32 %v6715_v26, %v6821_v11  ;;  %v6967_v11 = vsel %vm763_vm14, %v705_v62, %v804_v13  ;;  %v1169_v13 = vadd.f32 %v1168_v50, %v1129_v25  ;;  %v1259_v50 = vadd.f32 %v1258_v21, %v1219_v5 }
 0x1aa   : > { %vm3209_vm14 = vcmask 1045504  }
 0x1ab   : > { %v806_v4 = vmul.f32 0.01, %v710_v40  ;;  %vm765_vm0 = vcmp.ge.f32.partialorder %v710_v40, 0.0  ;;  %v1170_v58 = vadd.f32 %v1169_v13, %v1130_v0 }
 0x1ad   : > { %v1171_v16 = vadd.f32 %v1170_v58, %v1131_v45 }
 0x1b0   : > { %v6847_v36 = vpop.f32.mrf.mxu0 }
 0x1b1   : > { %v712_v12 = vadd.f32 %v6715_v26, %v6847_v36  ;;  %v1132_v36 = vmul.f32 %v6935_v10, %v6967_v11  ;;  %v6984_v10 = vpop.permute.xlu1 %1069 }
 0x1b2   : > { %8983 = vst [vmem:[#allocation39_spill] sm:$0xff] %v6984_v10 }
 0x1b3   : > { %v807_v23 = vmul.f32 0.01, %v712_v12  ;;  %vm766_vm1 = vcmp.ge.f32.partialorder %v712_v12, 0.0  ;;  %v1220_v2 = vmul.f32 %v1132_v36, %v1132_v36  ;;  %v1172_v15 = vadd.f32 %v1171_v16, %v1132_v36 }
 0x1b5   : > { %v1260_v5 = vadd.f32 %v1259_v50, %v1220_v2  ;;  %v1173_v58 = vadd.f32 %v1172_v15, %v1133_v37 }
 0x1b8   : > { %v6879_v56 = vpop.f32.mrf.mxu0 }
 0x1b9   : > { %v715_v28 = vadd.f32 %v6715_v26, %v6879_v56  ;;  %v6981_v56 = vsel %vm765_vm0, %v710_v40, %v806_v4  ;;  %v6991_v4 = vpop.permute.xlu2 %1074  ;;  %vm3854_vm0 = vsmask.f32 5376 }
 0x1ba   : > { %v1134_v40 = vmul.f32 %v6961_v19, %v6981_v56  ;;  %8984 = vst [vmem:[#allocation40_spill] sm:$0xff] %v6991_v4 }
 0x1bb   : > { %v808_v43 = vmul.f32 0.01, %v715_v28  ;;  %vm767_vm2 = vcmp.ge.f32.partialorder %v715_v28, 0.0 }
 0x1bc   : > { %v1222_v21 = vmul.f32 %v1134_v40, %v1134_v40 }
 0x1bd   : > { %v6993_v0 = vsel %vm767_vm2, %v715_v28, %v808_v43 }
 0x1be   : > { %v1136_v28 = vmul.f32 %v6984_v10, %v6993_v0 }
 0x1c0   : > { %v6907_v9 = vpop.f32.mrf.mxu0  ;;  %v1224_v15 = vmul.f32 %v1136_v28, %v1136_v28 }
 0x1c1   : > { %v717_v62 = vadd.f32 %v6715_v26, %v6907_v9  ;;  %v6986_v9 = vsel %vm766_vm1, %v712_v12, %v807_v23  ;;  %vm2816_vm1 = vsmask.f32 6400 }
 0x1c2   : > { %v1135_v12 = vmul.f32 %v6969_v14, %v6986_v9 }
 0x1c3   : > { %v809_v3 = vmul.f32 0.01, %v717_v62  ;;  %vm768_vm3 = vcmp.ge.f32.partialorder %v717_v62, 0.0 }
 0x1c4   : > { %v1223_v16 = vmul.f32 %v1135_v12, %v1135_v12 }
 0x1c5   : > { %v7000_v45 = vsel %vm768_vm3, %v717_v62, %v809_v3 }
 0x1c6   : > { %v1137_v14 = vmul.f32 %v6991_v4, %v7000_v45 }
 0x1c8   : > { %v719_v27 = vpop.f32.mrf.mxu0  ;;  %v1225_v4 = vmul.f32 %v1137_v14, %v1137_v14 }
 0x1c9   : > { %v720_v63 = vadd.f32 %v6715_v26, %v719_v27  ;;  %v1221_v27 = vmul.f32 %v1133_v37, %v1133_v37 }
 0x1cb   : > { %v810_v34 = vmul.f32 0.01, %v720_v63  ;;  %vm769_vm4 = vcmp.ge.f32.partialorder %v720_v63, 0.0  ;;  %v1261_v43 = vadd.f32 %v1260_v5, %v1221_v27 }
 0x1cd   : > { %v7004_v19 = vsel %vm769_vm4, %v720_v63, %v810_v34  ;;  %v1262_v3 = vadd.f32 %v1261_v43, %v1222_v21  ;;  %v7013_v63 = vpop.permute.xlu1 %1084 }
 0x1ce   : > { %8986 = vst [vmem:[#allocation42_spill] sm:$0xff] %v7013_v63 }
 0x1cf   : > { %v1263_v5 = vadd.f32 %v1262_v3, %v1223_v16 }
 0x1d0   : > { %v721_v1 = vpop.f32.mrf.mxu0 }
 0x1d1   : > { %v722_v25 = vadd.f32 %v6715_v26, %v721_v1  ;;  %v6998_v1 = vpop.permute.xlu0 %1079 }
 0x1d2   : > { %8985 = vst [vmem:[#allocation41_spill] sm:$0xff] %v6998_v1  ;;  %v1138_v27 = vmul.f32 %v6998_v1, %v7004_v19 }
 0x1d3   : > { %v811_v23 = vmul.f32 0.01, %v722_v25  ;;  %vm770_vm5 = vcmp.ge.f32.partialorder %v722_v25, 0.0 }
 0x1d5   : > { %v7008_v62 = vsel %vm770_vm5, %v722_v25, %v811_v23  ;;  %v7019_v23 = vpop.permute.xlu2 %1089 }
 0x1d6   : > { %v1139_v25 = vmul.f32 %v7013_v63, %v7008_v62  ;;  %8987 = vst [vmem:[#allocation43_spill] sm:$0xff] %v7019_v23 }
 0x1d8   : > { %v724_v33 = vpop.f32.mrf.mxu0  ;;  %v1227_v16 = vmul.f32 %v1139_v25, %v1139_v25 }
 0x1d9   : > { %v725_v13 = vadd.f32 %v6715_v26, %v724_v33  ;;  %v1174_v33 = vadd.f32 %v1173_v58, %v1134_v40 }
 0x1db   : > { %v812_v36 = vmul.f32 0.01, %v725_v13  ;;  %vm771_vm6 = vcmp.ge.f32.partialorder %v725_v13, 0.0  ;;  %v1175_v50 = vadd.f32 %v1174_v33, %v1135_v12  ;;  %v1264_v12 = vadd.f32 %v1263_v5, %v1224_v15 }
 0x1dc   : > { %v1226_v33 = vmul.f32 %v1138_v27, %v1138_v27 }
 0x1dd   : > { %v7015_v34 = vsel %vm771_vm6, %v725_v13, %v812_v36  ;;  %v1176_v58 = vadd.f32 %v1175_v50, %v1136_v28  ;;  %v7025_v13 = vpop.permute.xlu0 %1094  ;;  %v1265_v36 = vadd.f32 %v1264_v12, %v1225_v4 }
 0x1de   : > { %8988 = vst [vmem:[#allocation44_spill] sm:$0xff] %v7025_v13 }
 0x1df   : > { %v1177_v43 = vadd.f32 %v1176_v58, %v1137_v14  ;;  %v1266_v63 = vadd.f32 %v1265_v36, %v1226_v33 }
 0x1e0   : > { %v726_v2 = vpop.f32.mrf.mxu0 }
 0x1e1   : > { %v727_v37 = vadd.f32 %v6715_v26, %v726_v2  ;;  %v1140_v2 = vmul.f32 %v7019_v23, %v7015_v34  ;;  %v1178_v1 = vadd.f32 %v1177_v43, %v1138_v27  ;;  %v1267_v15 = vadd.f32 %v1266_v63, %v1227_v16  ;;  %v7030_v23 = vpop.permute.xlu1 %1099  ;;  %v5987_v16 = vld [vmem:[%s8860_s7 + $0x38] sm:$0xff] }
 0x1e2   : > { %2051 = vmatpush.bf16.msrb.mxu0 %v5987_v16  ;;  %6220 = vmatpush.bf16.msra.mxu2 %v5987_v16 }
 0x1e3   : > { %vm772_vm7 = vcmp.ge.f32.partialorder %v727_v37, 0.0  ;;  %v813_v40 = vmul.f32 0.01, %v727_v37 }
 0x1e5   : > { %v7021_v21 = vsel %vm772_vm7, %v727_v37, %v813_v40  ;;  %v1179_v37 = vadd.f32 %v1178_v1, %v1139_v25  ;;  %v1228_v40 = vmul.f32 %v1140_v2, %v1140_v2 }
 0x1e6   : > { %v1141_v28 = vmul.f32 %v7025_v13, %v7021_v21 }
 0x1e7   : > { %v1180_v5 = vadd.f32 %v1179_v37, %v1140_v2  ;;  %v1268_v4 = vadd.f32 %v1267_v15, %v1228_v40 }
 0x1e8   : > { %v729_v3 = vpop.f32.mrf.mxu0  ;;  %v1229_v58 = vmul.f32 %v1141_v28, %v1141_v28 }
 0x1e9   : > { %v730_v50 = vadd.f32 %v6715_v26, %v729_v3  ;;  %v1181_v27 = vadd.f32 %v1180_v5, %v1141_v28 }
 0x1ea   : > { %v1269_v43 = vadd.f32 %v1268_v4, %v1229_v58  ;;  %v5986_v4 = vld [vmem:[%s8860_s7 + $0x30] sm:$0xff] }
 0x1eb   : > { %vm773_vm8 = vcmp.ge.f32.partialorder %v730_v50, 0.0  ;;  %v814_v14 = vmul.f32 0.01, %v730_v50  ;;  %2052 = vmatpush.bf16.msrb.mxu0 %v5986_v4  ;;  %6221 = vmatpush.bf16.msra.mxu2 %v5986_v4 }
 0x1ed   : > { %v855_v10 = vsel %vm773_vm8, %v730_v50, %v814_v14 }
 0x1ee   : > { %v1142_v12 = vmul.f32 %v7030_v23, %v855_v10 }
 0x1f0   : > { %v1182_v13 = vadd.f32 %v1181_v27, %v1142_v12  ;;  %v1230_v51 = vmul.f32 %v1142_v12, %v1142_v12  ;;  %v731_v30 = vpop.f32.mrf.mxu0 }
 0x1f2   : > { %v1183_v26 = vrot.slane %v1182_v13, 4  ;;  %v1270_v33 = vadd.f32 %v1269_v43, %v1230_v51 }
 0x1f4   : > { %v1184_v1 = vadd.f32 %v1183_v26, %v1182_v13  ;;  %v1271_v25 = vrot.slane %v1270_v33, 4 }
 0x1f6   : > { %v1185_v36 = vrot.slane %v1184_v1, 2  ;;  %v1272_v3 = vadd.f32 %v1271_v25, %v1270_v33 }
 0x1f8   : > { %v1186_v63 = vadd.f32 %v1185_v36, %v1184_v1  ;;  %v1273_v2 = vrot.slane %v1272_v3, 2  ;;  %v1281_v1 = vld [vmem:[%s8858_s5] sm:$0x1] }
 0x1fa   : > { %v1187_v50 = vrot.slane %v1186_v63, 1  ;;  %v1274_v28 = vadd.f32 %v1273_v2, %v1272_v3  ;;  %v5985_v3 = vld [vmem:[%s8860_s7 + $0x28] sm:$0xff]  ;;  %v1294_v2 = vld [vmem:[%s8859_s6] sm:$0x1] }
 0x1fb   : > { %2053 = vmatpush.bf16.msrb.mxu0 %v5985_v3  ;;  %6222 = vmatpush.bf16.msra.mxu2 %v5985_v3 }
 0x1fc   : > { %v1188_v37 = vadd.f32 %v1187_v50, %v1186_v63  ;;  %v1275_v40 = vrot.slane %v1274_v28, 1 }
 0x1fe   : > { %v1189_v14 = vmul.f32 0.00390625, %v1188_v37  ;;  %v1276_v30 = vadd.f32 %v1275_v40, %v1274_v28  ;;  %v5984_v28 = vld [vmem:[%s8860_s7 + $0x20] sm:$0xff]  ;;  %v5995_v40 = vld [vmem:[%s8860_s7 + $0x78] sm:$0xff] }
 0x1ff   : > { %2054 = vmatpush.bf16.msrb.mxu0 %v5984_v28  ;;  %6223 = vmatpush.bf16.msra.mxu2 %v5984_v28 }
 0x200   : > { %v1277_v15 = vmul.f32 0.00390625, %v1276_v30  ;;  %v1278_v51 = vmul.f32 %v1189_v14, %v1189_v14  ;;  %1886 = vmatpush.bf16.msra.mxu1 %v5995_v40  ;;  %6212 = vmatpush.bf16.msra.mxu3 %v5995_v40 }
 0x202   : > { %v1279_v13 = vsub.f32 %v1277_v15, %v1278_v51 }
 0x204   : > { %v1280_v5 = vmax.f32 %v1279_v13, 0.0  ;;  %v5994_v13 = vld [vmem:[%s8860_s7 + $0x70] sm:$0xff] }
 0x205   : > { %1887 = vmatpush.bf16.msra.mxu1 %v5994_v13  ;;  %6213 = vmatpush.bf16.msra.mxu3 %v5994_v13 }
 0x206   : > { %v1282_v58 = vadd.f32 1e-05, %v1280_v5 }
 0x208   : > { %6252 = vrsqrt.f32 %v1282_v58  ;;  %vm1289_vm10 = vweird.f32 %v1282_v58 }
 0x20e   : > { %v6253_v27 = vpop.eup %6252 }
 0x20f   : > { %v1284_v12 = vmul.f32 %v6253_v27, %v1282_v58  ;;  %vm1290_vm9 = vweird.f32 %v6253_v27 }
 0x210   : > { %vm1291_vm11 = vmor %vm1289_vm10, %vm1290_vm9 }
 0x211   : > { %v1285_v43 = vmul.f32 %v6253_v27, %v1284_v12 }
 0x213   : > { %v1286_v26 = vmul.f32 0.5, %v1285_v43  ;;  %v8989_v43 = vld [vmem:[#allocation18_spill] sm:$0xff] }
 0x215   : > { %v1287_v33 = vsub.f32 1.5, %v1286_v26 }
 0x217   : > { %v1288_v25 = vmul.f32 %v6253_v27, %v1287_v33 }
 0x219   : > { %v1292_v36 = vsel %vm1291_vm11, %v6253_v27, %v1288_v25 }
 0x21a   : > { %v1293_v63 = vmul.f32 %v1292_v36, %v1281_v1  ;;  %v8990_v1 = vld [vmem:[#allocation20_spill] sm:$0xff] }
 0x21c   : > { %v1295_v16 = vmul.f32 %v1293_v63, %v1189_v14  ;;  %v7048_v50 = vperm.slane %v1293_v63, 0  ;;  %v5983_v14 = vld [vmem:[%s8860_s7 + $0x18] sm:$0xff] }
 0x21d   : > { %2055 = vmatpush.bf16.msrb.mxu0 %v5983_v14  ;;  %6224 = vmatpush.bf16.msra.mxu2 %v5983_v14 }
 0x21e   : > { %v1296_v37 = vsub.f32 %v1294_v2, %v1295_v16  ;;  %v1340_v30 = vmul.f32 %v7048_v50, %v855_v10  ;;  %v5982_v10 = vld [vmem:[%s8860_s7 + $0x10] sm:$0xff]  ;;  %v1300_v4 = vmul.f32 %v7048_v50, %v6739_v42  ;;  %v1301_v27 = vmul.f32 %v7048_v50, %v6737_v41 }
 0x21f   : > { %v1302_v12 = vmul.f32 %v7048_v50, %v6741_v44  ;;  %v1303_v26 = vmul.f32 %v7048_v50, %v8989_v43  ;;  %v1304_v33 = vmul.f32 %v7048_v50, %v6763_v8  ;;  %v1305_v42 = vmul.f32 %v7048_v50, %v6773_v39  ;;  %v5981_v8 = vld [vmem:[%s8860_s7 + $0x8] sm:$0xff] }
 0x220   : > { %v7057_v15 = vperm.slane %v1296_v37, 0  ;;  %v1306_v41 = vmul.f32 %v7048_v50, %v8990_v1  ;;  %v1307_v44 = vmul.f32 %v7048_v50, %v6785_v38  ;;  %v1308_v25 = vmul.f32 %v7048_v50, %v6795_v35 }
 0x221   : > { %2056 = vmatpush.bf16.msrb.mxu0 %v5982_v10  ;;  %v1309_v36 = vmul.f32 %v7048_v50, %v6803_v17  ;;  %v1310_v3 = vmul.f32 %v7048_v50, %v6809_v32  ;;  %v1311_v39 = vmul.f32 %v7048_v50, %v6815_v47  ;;  %v1312_v38 = vmul.f32 %v7048_v50, %v6829_v49 }
 0x222   : > { %v1384_v51 = vadd.f32 %v7057_v15, %v1340_v30  ;;  %v1313_v35 = vmul.f32 %v7048_v50, %v6835_v24  ;;  %v1314_v17 = vmul.f32 %v7048_v50, %v6843_v55  ;;  %v1315_v32 = vmul.f32 %v7048_v50, %v6851_v48  ;;  %v5992_v24 = vld [vmem:[%s8860_s7 + $0x60] sm:$0xff]  ;;  %6225 = vmatpush.bf16.msra.mxu2 %v5982_v10 }
 0x223   : > { %v1316_v63 = vmul.f32 %v7048_v50, %v6859_v6  ;;  %v1317_v2 = vmul.f32 %v7048_v50, %v6867_v31  ;;  %v1318_v47 = vmul.f32 %v7048_v50, %v6873_v46  ;;  %v1319_v49 = vmul.f32 %v7048_v50, %v6881_v57 }
 0x224   : > { %v1425_v5 = vmul.f32 %v1384_v51, %v7030_v23  ;;  %v5993_v23 = vld [vmem:[%s8860_s7 + $0x68] sm:$0xff]  ;;  %v1320_v55 = vmul.f32 %v7048_v50, %v6887_v52  ;;  %v1321_v48 = vmul.f32 %v7048_v50, %v6899_v61  ;;  %v1322_v6 = vmul.f32 %v7048_v50, %v6905_v29  ;;  %v5980_v52 = vld [vmem:[%s8860_s7] sm:$0xff] }
 0x225   : > { %1888 = vmatpush.bf16.msra.mxu1 %v5993_v23  ;;  %6214 = vmatpush.bf16.msra.mxu3 %v5993_v23  ;;  %v1323_v46 = vmul.f32 %v7048_v50, %v6915_v54  ;;  %v1324_v31 = vmul.f32 %v7048_v50, %v6921_v18  ;;  %v1325_v16 = vmul.f32 %v7048_v50, %v6929_v60 }
 0x226   : > { %v1466_v58 = vpack.c.bf16 %v1425_v5, %v1425_v5  ;;  %2057 = vmatpush.bf16.msrb.mxu0 %v5981_v8  ;;  %v1326_v57 = vmul.f32 %v7048_v50, %v6937_v53  ;;  %v1327_v61 = vmul.f32 %v7048_v50, %v6943_v59  ;;  %v1328_v29 = vmul.f32 %v7048_v50, %v6949_v20 }
 0x227   : > { %v1329_v54 = vmul.f32 %v7048_v50, %v6955_v7  ;;  %v1330_v18 = vmul.f32 %v7048_v50, %v6967_v11  ;;  %v7146_v60 = vmul.f32 %v7048_v50, %v6973_v22  ;;  %v7150_v53 = vmul.f32 %v7048_v50, %v6981_v56  ;;  %v5991_v7 = vld [vmem:[%s8860_s7 + $0x58] sm:$0xff]  ;;  %6226 = vmatpush.bf16.msra.mxu2 %v5981_v8 }
 0x228   : > { %1507 = vst [vmem:[#allocation2 + $0xa0] sm:$0xf] %v1466_v58  ;;  %v7154_v59 = vmul.f32 %v7048_v50, %v6986_v9  ;;  %v7158_v20 = vmul.f32 %v7048_v50, %v6993_v0  ;;  %v7165_v11 = vmul.f32 %v7048_v50, %v7000_v45  ;;  %v7169_v22 = vmul.f32 %v7048_v50, %v7004_v19 }
 0x229   : > { %1889 = vmatpush.bf16.msra.mxu1 %v5992_v24  ;;  %6215 = vmatpush.bf16.msra.mxu3 %v5992_v24  ;;  %v7173_v56 = vmul.f32 %v7048_v50, %v7008_v62  ;;  %v7177_v9 = vmul.f32 %v7048_v50, %v7015_v34  ;;  %v7181_v0 = vmul.f32 %v7048_v50, %v7021_v21  ;;  %v5990_v21 = vld [vmem:[%s8860_s7 + $0x50] sm:$0xff]  ;;  %v6036_v50 = vld [vmem:[%s8860_s7 + $0x138] sm:$0xff] }
 0x22a   : > { %2058 = vmatpush.bf16.msrb.mxu0 %v5980_v52  ;;  %v1344_v45 = vadd.f32 %v7057_v15, %v1300_v4  ;;  %v1345_v28 = vadd.f32 %v7057_v15, %v1301_v27  ;;  %v1346_v19 = vadd.f32 %v7057_v15, %v1302_v12  ;;  %v1347_v37 = vadd.f32 %v7057_v15, %v1303_v26  ;;  %v5989_v26 = vld [vmem:[%s8860_s7 + $0x48] sm:$0xff] }
 0x22b   : > { %v1348_v62 = vadd.f32 %v7057_v15, %v1304_v33  ;;  %v1349_v40 = vadd.f32 %v7057_v15, %v1305_v42  ;;  %v1350_v34 = vadd.f32 %v7057_v15, %v1306_v41  ;;  %v1351_v30 = vadd.f32 %v7057_v15, %v1307_v44  ;;  %6227 = vmatpush.bf16.msra.mxu2 %v5980_v52 }
 0x22c   : > { %v1352_v14 = vadd.f32 %v7057_v15, %v1308_v25  ;;  %v1353_v51 = vadd.f32 %v7057_v15, %v1309_v36  ;;  %v1354_v13 = vadd.f32 %v7057_v15, %v1310_v3  ;;  %v1355_v5 = vadd.f32 %v7057_v15, %v1311_v39 }
 0x22d   : > { %1890 = vmatpush.bf16.msra.mxu1 %v5991_v7  ;;  %6216 = vmatpush.bf16.msra.mxu3 %v5991_v7  ;;  %v1356_v10 = vadd.f32 %v7057_v15, %v1312_v38  ;;  %v1357_v58 = vadd.f32 %v7057_v15, %v1313_v35  ;;  %v1358_v4 = vadd.f32 %v7057_v15, %v1314_v17  ;;  %v8991_v17 = vld [vmem:[#allocation3_spill] sm:$0xff] }
 0x22e   : > { %v1359_v27 = vadd.f32 %v7057_v15, %v1315_v32  ;;  %v1360_v12 = vadd.f32 %v7057_v15, %v1316_v63  ;;  %v1361_v23 = vadd.f32 %v7057_v15, %v1317_v2  ;;  %v1362_v43 = vadd.f32 %v7057_v15, %v1318_v47  ;;  %v8992_v63 = vld [vmem:[#allocation6_spill] sm:$0xff]  ;;  %v8993_v47 = vld [vmem:[#allocation4_spill] sm:$0xff]  ;;  %v8999_v7 = vld [vmem:[#allocation11_spill] sm:$0xff] }
 0x22f   : > { %3053 = vmatpush.bf16.msrb.mxu2 %v6036_v50  ;;  %v1363_v33 = vadd.f32 %v7057_v15, %v1319_v49  ;;  %v1364_v42 = vadd.f32 %v7057_v15, %v1320_v55  ;;  %v1365_v1 = vadd.f32 %v7057_v15, %v1321_v48  ;;  %v1366_v41 = vadd.f32 %v7057_v15, %v1322_v6  ;;  %v8994_v49 = vld [vmem:[#allocation7_spill] sm:$0xff]  ;;  %v8995_v6 = vld [vmem:[#allocation5_spill] sm:$0xff] }
 0x230   : > { %v1367_v44 = vadd.f32 %v7057_v15, %v1323_v46  ;;  %v1368_v25 = vadd.f32 %v7057_v15, %v1324_v31  ;;  %v1369_v36 = vadd.f32 %v7057_v15, %v1325_v16  ;;  %v7219_v3 = vadd.f32 %v7057_v15, %v1326_v57  ;;  %v5988_v48 = vld [vmem:[%s8860_s7 + $0x40] sm:$0xff]  ;;  %v8996_v31 = vld [vmem:[#allocation8_spill] sm:$0xff]  ;;  %v8997_v57 = vld [vmem:[#allocation9_spill] sm:$0xff] }
 0x231   : > { %1891 = vmatpush.bf16.msra.mxu1 %v5990_v21  ;;  %6217 = vmatpush.bf16.msra.mxu3 %v5990_v21  ;;  %v7222_v8 = vadd.f32 %v7057_v15, %v1327_v61  ;;  %v7225_v39 = vadd.f32 %v7057_v15, %v1328_v29  ;;  %v7228_v38 = vadd.f32 %v7057_v15, %v1329_v54  ;;  %v8998_v61 = vld [vmem:[#allocation10_spill] sm:$0xff] }
 0x232   : > { %v7231_v35 = vadd.f32 %v7057_v15, %v1330_v18  ;;  %v1385_v32 = vmul.f32 %v1344_v45, %v8991_v17  ;;  %v1386_v2 = vmul.f32 %v1345_v28, %v8992_v63  ;;  %v1387_v24 = vmul.f32 %v1346_v19, %v8993_v47  ;;  %v9000_v28 = vld [vmem:[#allocation12_spill] sm:$0xff]  ;;  %v9002_v21 = vld [vmem:[#allocation14_spill] sm:$0xff]  ;;  %v9006_v47 = vld [vmem:[#allocation19_spill] sm:$0xff] }
 0x233   : > { %v1388_v55 = vmul.f32 %v1347_v37, %v8994_v49  ;;  %v1389_v46 = vmul.f32 %v1348_v62, %v8995_v6  ;;  %v1390_v16 = vmul.f32 %v1349_v40, %v8996_v31  ;;  %v1391_v52 = vmul.f32 %v1350_v34, %v8997_v57  ;;  %v9001_v40 = vld [vmem:[#allocation13_spill] sm:$0xff] }
 0x234   : > { %v1392_v29 = vmul.f32 %v1351_v30, %v8998_v61  ;;  %v1375_v54 = vadd.f32 %v7057_v15, %v7146_v60  ;;  %v1376_v18 = vadd.f32 %v7057_v15, %v7150_v53  ;;  %v1393_v45 = vmul.f32 %v1352_v14, %v8999_v7  ;;  %v9003_v30 = vld [vmem:[#allocation15_spill] sm:$0xff]  ;;  %v9014_v7 = vld [vmem:[#allocation28_spill] sm:$0xff] }
 0x235   : > { %1892 = vmatpush.bf16.msra.mxu1 %v5989_v26  ;;  %6218 = vmatpush.bf16.msra.mxu3 %v5989_v26  ;;  %v1394_v19 = vmul.f32 %v1353_v51, %v9000_v28  ;;  %v1377_v37 = vadd.f32 %v7057_v15, %v7154_v59  ;;  %v7254_v62 = vadd.f32 %v7057_v15, %v7158_v20  ;;  %v9004_v26 = vld [vmem:[#allocation16_spill] sm:$0xff]  ;;  %v9005_v51 = vld [vmem:[#allocation17_spill] sm:$0xff] }
 0x236   : > { %v1395_v34 = vmul.f32 %v1354_v13, %v9001_v40  ;;  %v1396_v50 = vmul.f32 %v1355_v5, %v9002_v21  ;;  %v1397_v60 = vmul.f32 %v1356_v10, %v9003_v30  ;;  %v1398_v17 = vmul.f32 %v1357_v58, %v9004_v26  ;;  %v6028_v20 = vld [vmem:[%s8860_s7 + $0xf8] sm:$0xff] }
 0x237   : > { %v7260_v53 = vpack.c.bf16 %v1386_v2, %v1385_v32  ;;  %v6094_v14 = vpack.c.bf16 %v1388_v55, %v1387_v24  ;;  %v1399_v63 = vmul.f32 %v1358_v4, %v9005_v51  ;;  %v1400_v59 = vmul.f32 %v1359_v27, %v9006_v47  ;;  %v9007_v5 = vld [vmem:[#allocation21_spill] sm:$0xff]  ;;  %v9008_v58 = vld [vmem:[#allocation22_spill] sm:$0xff]  ;;  %v9009_v24 = vld [vmem:[#allocation23_spill] sm:$0xff] }
 0x238   : > { %v6099_v49 = vpack.c.bf16 %v1390_v16, %v1389_v46  ;;  %v6104_v6 = vpack.c.bf16 %v1392_v29, %v1391_v52  ;;  %v1379_v13 = vadd.f32 %v7057_v15, %v7165_v11  ;;  %v1401_v10 = vmul.f32 %v1360_v12, %v9007_v5  ;;  %v6003_v4 = vld [vmem:[%s8860_s7 + $0xb8] sm:$0xff]  ;;  %v6035_v11 = vld [vmem:[%s8860_s7 + $0x130] sm:$0xff]  ;;  %v9013_v52 = vld [vmem:[#allocation27_spill] sm:$0xff] }
 0x239   : > { %1893 = vmatpush.bf16.msra.mxu1 %v5988_v48  ;;  %6219 = vmatpush.bf16.msra.mxu3 %v5988_v48  ;;  %v1402_v32 = vmul.f32 %v1361_v23, %v9008_v58  ;;  %v6109_v2 = vpack.c.bf16 %v1394_v19, %v1393_v45  ;;  %6090 = vst [vmem:[#allocation2] sm:$0xff] %v7260_v53   ;;  %v9010_v48 = vld [vmem:[#allocation24_spill] sm:$0xff]  ;;  %v9011_v12 = vld [vmem:[#allocation25_spill] sm:$0xff]  ;;  %v9012_v16 = vld [vmem:[#allocation26_spill] sm:$0xff] }
 0x23a   : > { %v1380_v27 = vadd.f32 %v7057_v15, %v7169_v22  ;;  %v1403_v55 = vmul.f32 %v1362_v43, %v9009_v24  ;;  %v1404_v46 = vmul.f32 %v1363_v33, %v9010_v48  ;;  %v6114_v31 = vpack.c.bf16 %v1396_v50, %v1395_v34  ;;  %6190 = vst [vmem:[#allocation2 + $0x8] sm:$0xff] %v6094_v14   ;;  %v9015_v45 = vld [vmem:[#allocation29_spill] sm:$0xff]  ;;  %v9016_v33 = vld [vmem:[#allocation30_spill] sm:$0xff]  ;;  %v9030_v24 = vld [vmem:[#allocation44_spill] sm:$0xff] }
 0x23b   : > { %v1405_v23 = vmul.f32 %v1364_v42, %v9011_v12  ;;  %v1406_v57 = vmul.f32 %v1365_v1, %v9012_v16  ;;  %v1407_v61 = vmul.f32 %v1366_v41, %v9013_v52  ;;  %v6119_v29 = vpack.c.bf16 %v1398_v17, %v1397_v60  ;;  %6191 = vst [vmem:[#allocation2 + $0x10] sm:$0xff] %v6099_v49   ;;  %v9017_v41 = vld [vmem:[#allocation31_spill] sm:$0xff]  ;;  %v9019_v50 = vld [vmem:[#allocation33_spill] sm:$0xff]  ;;  %v9020_v60 = vld [vmem:[#allocation34_spill] sm:$0xff] }
 0x23c   : > { %v1408_v22 = vmul.f32 %v1367_v44, %v9014_v7  ;;  %v1409_v43 = vmul.f32 %v1368_v25, %v9015_v45  ;;  %v6124_v28 = vpack.c.bf16 %v1400_v59, %v1399_v63  ;;  %6192 = vst [vmem:[#allocation2 + $0x18] sm:$0xff] %v6104_v6   ;;  %2059 = vmatmul.bf16.vlgmr.msrb.gmra.mxu0 %v7260_v53  ;;  %v1675_v42 = vshll.u32 %v7260_v53, 16  ;;  %v9018_v25 = vld [vmem:[#allocation32_spill] sm:$0xff]  ;;  %v9023_v47 = vld [vmem:[#allocation37_spill] sm:$0xff]  ;;  %v9024_v59 = vld [vmem:[#allocation38_spill] sm:$0xff] }
 0x23d   : > { %2660 = vmatpush.bf16.msrb.mxu1 %v6028_v20  ;;  %v1410_v19 = vmul.f32 %v1369_v36, %v9016_v33  ;;  %v6129_v40 = vpack.c.bf16 %v1402_v32, %v1401_v10  ;;  %6193 = vst [vmem:[#allocation2 + $0x20] sm:$0xff] %v6109_v2   ;;  %2275 = vmatpush.bf16.msrb.mxu3 %v6003_v4  ;;  %v9025_v20 = vld [vmem:[#allocation39_spill] sm:$0xff]  ;;  %v9027_v10 = vld [vmem:[#allocation41_spill] sm:$0xff] }
 0x23e   : > { %3054 = vmatpush.bf16.msrb.mxu2 %v6035_v11  ;;  %v1381_v1 = vadd.f32 %v7057_v15, %v7173_v56  ;;  %v1411_v44 = vmul.f32 %v7219_v3, %v9017_v41  ;;  %v1412_v34 = vmul.f32 %v7222_v8, %v9018_v25  ;;  %v6134_v21 = vpack.c.bf16 %v1404_v46, %v1403_v55  ;;  %v9021_v3 = vld [vmem:[#allocation35_spill] sm:$0xff]  ;;  %v9022_v8 = vld [vmem:[#allocation36_spill] sm:$0xff] }
 0x23f   : > { %6194 = vst [vmem:[#allocation2 + $0x28] sm:$0xff] %v6114_v31   ;;  %v1382_v36 = vadd.f32 %v7057_v15, %v7177_v9  ;;  %v1413_v30 = vmul.f32 %v7225_v39, %v9019_v50  ;;  %v1414_v26 = vmul.f32 %v7228_v38, %v9020_v60  ;;  %v6139_v17 = vpack.c.bf16 %v1406_v57, %v1405_v23  ;;  %v6027_v4 = vld [vmem:[%s8860_s7 + $0xf0] sm:$0xff]  ;;  %v6026_v50 = vld [vmem:[%s8860_s7 + $0xe8] sm:$0xff] }
 0x240   : > { %6195 = vst [vmem:[#allocation2 + $0x30] sm:$0xff] %v6119_v29   ;;  %v1383_v56 = vadd.f32 %v7057_v15, %v7181_v0  ;;  %v1415_v14 = vmul.f32 %v7231_v35, %v9021_v3  ;;  %v1416_v51 = vmul.f32 %v1375_v54, %v9022_v8  ;;  %v6144_v63 = vpack.c.bf16 %v1408_v22, %v1407_v61  ;;  %v9026_v15 = vld [vmem:[#allocation40_spill] sm:$0xff]  ;;  %v9028_v54 = vld [vmem:[#allocation42_spill] sm:$0xff] }
 0x241   : > { %6196 = vst [vmem:[#allocation2 + $0x38] sm:$0xff] %v6124_v28   ;;  %v1417_v9 = vmul.f32 %v1376_v18, %v9023_v47  ;;  %v1418_v49 = vmul.f32 %v1377_v37, %v9024_v59  ;;  %v6149_v39 = vpack.c.bf16 %v1410_v19, %v1409_v43  ;;  %v1677_v6 = vrot.slane %v1675_v42, 1  ;;  %v7309_v38 = vld [vmem:[#allocation2 + $0x8] sm:$0xff]  ;;  %2661 = vmatpush.bf16.msrb.mxu1 %v6027_v4 }
 0x242   : > { %6197 = vst [vmem:[#allocation2 + $0x40] sm:$0xff] %v6129_v40   ;;  %v1419_v5 = vmul.f32 %v7254_v62, %v9025_v20  ;;  %v1420_v0 = vmul.f32 %v1379_v13, %v9026_v15  ;;  %v1421_v35 = vmul.f32 %v1380_v27, %v9027_v10  ;;  %v6154_v58 = vpack.c.bf16 %v1412_v34, %v1411_v44  ;;  %v6002_v62 = vld [vmem:[%s8860_s7 + $0xb0] sm:$0xff]  ;;  %v9029_v13 = vld [vmem:[#allocation43_spill] sm:$0xff] }
 0x243   : > { %6198 = vst [vmem:[#allocation2 + $0x48] sm:$0xff] %v6134_v21   ;;  %v1422_v32 = vmul.f32 %v1381_v1, %v9028_v54  ;;  %v6159_v2 = vpack.c.bf16 %v1414_v26, %v1413_v30  ;;  %v1673_v18 = vshrl.u32 %v7260_v53, 16  ;;  %v1680_v37 = vshll.u32 %v7309_v38, 16  ;;  %2276 = vmatpush.bf16.msrb.mxu3 %v6002_v62  ;;  %v5964_v45 = vld [vmem:[#allocation2 + $0x10] sm:$0xff]  ;;  %v6034_v21 = vld [vmem:[%s8860_s7 + $0x128] sm:$0xff]  ;;  %v5965_v20 = vld [vmem:[#allocation2 + $0x18] sm:$0xff] }
 0x244   : > { %6199 = vst [vmem:[#allocation2 + $0x50] sm:$0xff] %v6139_v17   ;;  %v1423_v27 = vmul.f32 %v1382_v36, %v9029_v13  ;;  %v1424_v55 = vmul.f32 %v1383_v56, %v9030_v24  ;;  %v6164_v48 = vpack.c.bf16 %v1416_v51, %v1415_v14  ;;  %v6169_v46 = vpack.c.bf16 %v1418_v49, %v1417_v9  ;;  %v6001_v36 = vld [vmem:[%s8860_s7 + $0xa8] sm:$0xff]  ;;  %v7383_v54 = vld [vmem:[#allocation2 + $0x20] sm:$0xff] }
 0x245   : > { %6200 = vst [vmem:[#allocation2 + $0x58] sm:$0xff] %v6144_v63   ;;  %v1678_v53 = vor.u32 %v1677_v6, %v1673_v18  ;;  %v1682_v31 = vrot.slane %v1680_v37, 1  ;;  %v6174_v11 = vpack.c.bf16 %v1420_v0, %v1419_v5  ;;  %v6179_v12 = vpack.c.bf16 %v1422_v32, %v1421_v35  ;;  %3055 = vmatpush.bf16.msrb.mxu2 %v6034_v21  ;;  %v6000_v24 = vld [vmem:[%s8860_s7 + $0xa0] sm:$0xff] }
 0x246   : > { %6201 = vst [vmem:[#allocation2 + $0x60] sm:$0xff] %v6149_v39   ;;  %v6184_v16 = vpack.c.bf16 %v1424_v55, %v1423_v27  ;;  %v1684_v42 = vshrl.u32 %v7309_v38, 16  ;;  %v1688_v1 = vshll.u32 %v5964_v45, 16  ;;  %2662 = vmatpush.bf16.msrb.mxu1 %v6026_v50  ;;  %v8913_v47 = vrot.slane %v7309_v38, 1  ;;  %v7389_v13 = vld [vmem:[#allocation2 + $0x28] sm:$0xff]  ;;  %v6033_v55 = vld [vmem:[%s8860_s7 + $0x120] sm:$0xff] }
 0x247   : > { %6202 = vst [vmem:[#allocation2 + $0x68] sm:$0xff] %v6154_v58   ;;  %v1683_v23 = vsel %vm1671_vm12, %v1678_v53, %v1682_v31  ;;  %2277 = vmatpush.bf16.msrb.mxu3 %v6001_v36  ;;  %v2175_v39 = vrot.slane %v5964_v45, 1  ;;  %v2177_v32 = vrot.slane %v5965_v20, 1  ;;  %v1692_v18 = vshrl.u32 %v5964_v45, 16 }
 0x248   : > { %6203 = vst [vmem:[#allocation2 + $0x70] sm:$0xff] %v6159_v2   ;;  %1894 = vmatmul.bf16.vlgmr.msra.gmra.mxu1 %v1683_v23  ;;  %v7329_v52 = vld [vmem:[#allocation2 + $0x38] sm:$0xff]  ;;  %v1686_v34 = vor.u32 %v1684_v42, %v1682_v31  ;;  %v1690_v26 = vrot.slane %v1688_v1, 1  ;;  %v1696_v37 = vshll.u32 %v5965_v20, 16  ;;  %v8912_v31 = vrot.slane %v7389_v13, 1 }
 0x249   : > { %6204 = vst [vmem:[#allocation2 + $0x78] sm:$0xff] %v6164_v48   ;;  %v7327_v57 = vld [vmem:[#allocation2 + $0x40] sm:$0xff]  ;;  %v1728_v43 = vshll.u32 %v7329_v52, 16  ;;  %v1732_v30 = vshrl.u32 %v7329_v52, 16  ;;  %v7378_v10 = vsel %vm2171_vm13, %v8913_v47, %v2175_v39  ;;  %v7386_v4 = vsel %vm2171_vm13, %v2175_v39, %v2177_v32  ;;  %3056 = vmatpush.bf16.msrb.mxu2 %v6033_v55  ;;  %v7480_v55 = vld [vmem:[#allocation2 + $0x30] sm:$0xff] }
 0x24a   : > { %6205 = vst [vmem:[#allocation2 + $0x80] sm:$0xff] %v6169_v46   ;;  %2099 = vmatmul.bf16.vlgmr.msra.gmra.mxu2 %v7327_v57  ;;  %v1736_v44 = vshll.u32 %v7327_v57, 16  ;;  %v7356_v60 = vld [vmem:[#allocation2 + $0x48] sm:$0xff]  ;;  %v1691_v3 = vsel %vm1671_vm12, %v1686_v34, %v1690_v26  ;;  %v1740_v51 = vshrl.u32 %v7327_v57, 16  ;;  %v1694_v27 = vor.u32 %v1692_v18, %v1690_v26  ;;  %v5999_v34 = vld [vmem:[%s8860_s7 + $0x98] sm:$0xff] }
 0x24b   : > { %6206 = vst [vmem:[#allocation2 + $0x88] sm:$0xff] %v6174_v11   ;;  %v7332_v61 = vld [vmem:[#allocation2 + $0x50] sm:$0xff]  ;;  %v7342_v41 = vrot.slane %v1728_v43, 1  ;;  %v1744_v63 = vshll.u32 %v7356_v60, 16  ;;  %v1748_v49 = vshrl.u32 %v7356_v60, 16  ;;  %v2179_v48 = vrot.slane %v7383_v54, 1  ;;  %2278 = vmatpush.bf16.msrb.mxu3 %v6000_v24 }
 0x24c   : > { %6207 = vst [vmem:[#allocation2 + $0x90] sm:$0xff] %v6179_v12   ;;  %v7334_v29 = vld [vmem:[#allocation2 + $0x58] sm:$0xff]  ;;  %v1752_v7 = vshll.u32 %v7332_v61, 16  ;;  %2064 = vmatmul.bf16.gmra.mxu0 %v7309_v38  ;;  %v1756_v33 = vshrl.u32 %v7332_v61, 16  ;;  %v1738_v56 = vrot.slane %v1736_v44, 1  ;;  %v1698_v46 = vrot.slane %v1696_v37, 1 }
 0x24d   : > { %6208 = vst [vmem:[#allocation2 + $0x98] sm:$0xff] %v6184_v16   ;;  %v1760_v22 = vshll.u32 %v7334_v29, 16  ;;  %v1734_v17 = vor.u32 %v1732_v30, %v7342_v41  ;;  %v7363_v8 = vld [vmem:[#allocation2 + $0x60] sm:$0xff]  ;;  %v1746_v59 = vrot.slane %v1744_v63, 1  ;;  %v1764_v6 = vshrl.u32 %v7334_v29, 16 }
 0x24e   : > { %v1754_v28 = vrot.slane %v1752_v7, 1  ;;  %v1742_v9 = vor.u32 %v1740_v51, %v1738_v56  ;;  %v1768_v5 = vshll.u32 %v7363_v8, 16  ;;  %v7399_v53 = vsel %vm2171_vm13, %v2177_v32, %v2179_v48  ;;  %v7403_v12 = vld [vmem:[#allocation2 + $0x68] sm:$0xff]  ;;  %v6025_v16 = vld [vmem:[%s8860_s7 + $0xe0] sm:$0xff]  ;;  %v5998_v32 = vld [vmem:[%s8860_s7 + $0x90] sm:$0xff] }
 0x24f   : > { %v1762_v40 = vrot.slane %v1760_v22, 1  ;;  %v7361_v14 = vsel %vm1671_vm12, %v1734_v17, %v1738_v56  ;;  %v1750_v0 = vor.u32 %v1748_v49, %v1746_v59  ;;  %v1699_v11 = vsel %vm1671_vm12, %v1694_v27, %v1698_v46  ;;  %9031 = vst [vmem:[#allocation18_spill] sm:$0xff] %v7403_v12  ;;  %2663 = vmatpush.bf16.msrb.mxu1 %v6025_v16  ;;  %v7438_v26 = vld [vmem:[#allocation2 + $0x70] sm:$0xff]  ;;  %v6024_v56 = vld [vmem:[%s8860_s7 + $0xd8] sm:$0xff] }
 0x250   : > { %v1758_v19 = vor.u32 %v1756_v33, %v1754_v28  ;;  %v7373_v15 = vsel %vm1671_vm12, %v1742_v9, %v1746_v59  ;;  %v1770_v2 = vrot.slane %v1768_v5, 1  ;;  %v7408_v23 = vsel %vm2171_vm13, %v2179_v48, %v8912_v31  ;;  %2279 = vmatpush.bf16.msrb.mxu3 %v5999_v34  ;;  %v7477_v24 = vld [vmem:[#allocation2 + $0x78] sm:$0xff]  ;;  %v6068_v48 = vld [vmem:[%s8860_s7 + $0x1b0] sm:$0xff] }
 0x251   : > { %v1766_v35 = vor.u32 %v1764_v6, %v1762_v40  ;;  %v7381_v58 = vsel %vm1671_vm12, %v1750_v0, %v1754_v28  ;;  %v1772_v7 = vshrl.u32 %v7363_v8, 16  ;;  %v1776_v22 = vshll.u32 %v7403_v12, 16 }
 0x252   : > { %v1763_v25 = vsel %vm1671_vm12, %v1758_v19, %v1762_v40  ;;  %v2187_v28 = vrot.slane %v7327_v57, 1  ;;  %v1700_v19 = vshrl.u32 %v5965_v20, 16  ;;  %v1704_v40 = vshll.u32 %v7383_v54, 16 }
 0x253   : > { %1944 = vmatmul.bf16.vlgmr.msra.gmra.mxu3 %v1763_v25  ;;  %v1771_v62 = vsel %vm1671_vm12, %v1766_v35, %v1770_v2  ;;  %v1774_v43 = vor.u32 %v1772_v7, %v1770_v2  ;;  %v1778_v33 = vrot.slane %v1776_v22, 1  ;;  %v2189_v44 = vrot.slane %v7356_v60, 1  ;;  %2664 = vmatpush.bf16.msrb.mxu1 %v6024_v56  ;;  %v1560_v39 = vld [vmem:[#allocation2 + $0x90] sm:$0x1]  ;;  %v6069_v2 = vld [vmem:[%s8860_s7 + $0x1b8] sm:$0xff] }
 0x254   : > { %v1702_v25 = vor.u32 %v1700_v19, %v1698_v46  ;;  %v2191_v21 = vrot.slane %v7332_v61, 1  ;;  %v1706_v36 = vrot.slane %v1704_v40, 1  ;;  %v1780_v51 = vshrl.u32 %v7403_v12, 16  ;;  %2280 = vmatpush.bf16.msrb.mxu3 %v5998_v32  ;;  %3698 = vmatpush.bf16.msra.mxu0 %v6069_v2  ;;  %v6031_v46 = vld [vmem:[%s8860_s7 + $0x110] sm:$0xff] }
 0x255   : > { %v1779_v1 = vsel %vm1671_vm12, %v1774_v43, %v1778_v33  ;;  %v7430_v57 = vsel %vm2171_vm13, %v2187_v28, %v2189_v44  ;;  %v1784_v63 = vshll.u32 %v7438_v26, 16  ;;  %v8910_v59 = vrot.slane %v7403_v12, 1  ;;  %v7495_v43 = vld [vmem:[#allocation2 + $0x18] sm:$0xff] }
 0x256   : > { %v7434_v50 = vsel %vm2171_vm13, %v2189_v44, %v2191_v21  ;;  %v1707_v30 = vsel %vm1671_vm12, %v1702_v25, %v1706_v36  ;;  %v1782_v9 = vor.u32 %v1780_v51, %v1778_v33  ;;  %v1712_v5 = vshll.u32 %v7389_v13, 16  ;;  %v7505_v44 = vld [vmem:[#allocation2 + $0x14] sm:$0xf] }
 0x257   : > { %9032 = vst [vmem:[#allocation20_spill] sm:$0xff] %v7434_v50  ;;  %v1786_v49 = vrot.slane %v1784_v63, 1  ;;  %v1651_v18 = vunpack.c.l.b16 %v1560_v39  ;;  %v1788_v22 = vshrl.u32 %v7438_v26, 16  ;;  %v1720_v40 = vshll.u32 %v7480_v55, 16  ;;  %v7524_v39 = vld [vmem:[#allocation2 + $0x20] sm:$0xff] }
 0x258   : > { %1899 = vmatmul.bf16.gmra.mxu1 %v1691_v3  ;;  %v2195_v3 = vrot.slane %v7363_v8, 1  ;;  %v1714_v37 = vrot.slane %v1712_v5, 1  ;;  %3699 = vmatpush.bf16.msra.mxu0 %v6068_v48  ;;  %9037 = vst [vmem:[#allocation5_spill] sm:$0xff] %v7505_v44  ;;  %v5997_v5 = vld [vmem:[%s8860_s7 + $0x88] sm:$0xff] }
 0x259   : > { %v1787_v0 = vsel %vm1671_vm12, %v1782_v9, %v1786_v49  ;;  %v7475_v27 = vpack.c.b16 %v1651_v18, %v1651_v18  ;;  %v1790_v19 = vor.u32 %v1788_v22, %v1786_v49  ;;  %v1722_v51 = vrot.slane %v1720_v40, 1  ;;  %v6067_v9 = vld [vmem:[%s8860_s7 + $0x1a8] sm:$0xff]  ;;  %v6023_v49 = vld [vmem:[%s8860_s7 + $0xd0] sm:$0xff]  ;;  %2281 = vmatpush.bf16.msrb.mxu3 %v5997_v5 }
 0x25a   : > { %2104 = vmatmul.bf16.gmra.mxu2 %v7356_v60  ;;  %v2193_v60 = vrot.slane %v7334_v29, 1  ;;  %v7461_v6 = vsel %vm2171_vm13, %v2195_v3, %v8910_v59  ;;  %2665 = vmatpush.bf16.msrb.mxu1 %v6023_v49  ;;  %v3215_v22 = vrot.slane %v7524_v39, 2  ;;  %v7564_v49 = vld [vmem:[#allocation2 + $0x38] sm:$0xff]  ;;  %v7603_v59 = vld [vmem:[#allocation2 + $0x48] sm:$0xff] }
 0x25b   : > { %9035 = vst [vmem:[#allocation4_spill] sm:$0xff] %v7461_v6  ;;  %v2207_v7 = vrot.slane %v7475_v27, 1  ;;  %v1816_v5 = vshll.u32 %v7475_v27, 16  ;;  %v7665_v6 = vld [vmem:[#allocation2 + $0x60] sm:$0xff] }
 0x25c   : > { %2069 = vmatmul.bf16.gmra.mxu0 %v5964_v45  ;;  %v8911_v45 = vrot.slane %v7329_v52, 1  ;;  %v7441_v17 = vsel %vm2171_vm13, %v2191_v21, %v2193_v60  ;;  %v1716_v21 = vshrl.u32 %v7389_v13, 16  ;;  %9052 = vst [vmem:[#allocation24_spill] sm:$0xff] %v7665_v6 }
 0x25d   : > { %9033 = vst [vmem:[#allocation3_spill] sm:$0xff] %v7441_v17  ;;  %3700 = vmatpush.bf16.msra.mxu0 %v6067_v9 }
 0x25e   : > { %v7422_v42 = vsel %vm2171_vm13, %v8911_v45, %v2187_v28  ;;  %v7497_v28 = vld [vmem:[#allocation2 + $0x80] sm:$0xff] }
 0x25f   : > { %v1804_v48 = vshrl.u32 %v7497_v28, 16 }
 0x263   : > { %1949 = vmatmul.bf16.gmra.mxu3 %v1771_v62  ;;  %v7473_v62 = vld [vmem:[#allocation2 + $0x88] sm:$0xff] }
 0x264   : > { %v8909_v16 = vrot.slane %v7473_v62, 1 }
 0x266   : > { %v7502_v33 = vsel %vm2171_vm13, %v8909_v16, %v2207_v7  ;;  %v7543_v7 = vld [vmem:[#allocation2 + $0x18] sm:$0xff]  ;;  %v7601_v16 = vrot.slane %v1816_v5, 1  ;;  %v3903_v5 = vshll.u32 %v7564_v49, 16 }
 0x267   : > { %9036 = vst [vmem:[#allocation7_spill] sm:$0xff] %v7502_v33  ;;  %v8914_v9 = vrot.slane %v7543_v7, 2 }
 0x268   : > { %1904 = vmatmul.bf16.gmra.mxu1 %v1699_v11  ;;  %v7488_v11 = vld [vmem:[#allocation2 + $0x10] sm:$0xff] }
 0x269   : > { %v8908_v25 = vrot.slane %v7488_v11, 2 }
 0x26a   : > { %2109 = vmatmul.bf16.gmra.mxu2 %v7332_v61  ;;  %v6032_v61 = vld [vmem:[%s8860_s7 + $0x118] sm:$0xff] }
 0x26b   : > { %3057 = vmatpush.bf16.msrb.mxu2 %v6032_v61  ;;  %v8907_v61 = vunpack.c.l.b16 %v7505_v44 }
 0x26c   : > { %2074 = vmatmul.bf16.gmra.mxu0 %v5965_v20  ;;  %v1708_v20 = vshrl.u32 %v7383_v54, 16 }
 0x26e   : > { %v1710_v35 = vor.u32 %v1708_v20, %v1706_v36  ;;  %v3213_v36 = vrot.slane %v7495_v43, 2  ;;  %v1724_v20 = vshrl.u32 %v7480_v55, 16 }
 0x26f   : > { %3058 = vmatpush.bf16.msrb.mxu2 %v6031_v46  ;;  %v1808_v46 = vshll.u32 %v7473_v62, 16 }
 0x270   : > { %v7516_v63 = vsel %vm3209_vm14, %v8908_v25, %v3213_v36  ;;  %v1726_v2 = vor.u32 %v1724_v20, %v1722_v51  ;;  %v7566_v20 = vld [vmem:[#allocation2 + $0x38] sm:$0xff]  ;;  %v4257_v25 = vrot.slane %v7564_v49, 3 }
 0x271   : > { %9038 = vst [vmem:[#allocation8_spill] sm:$0xff] %v7516_v63  ;;  %v7654_v63 = vld [vmem:[#allocation2 + $0x58] sm:$0xff] }
 0x272   : > { %9049 = vst [vmem:[#allocation21_spill] sm:$0xff] %v7654_v63 }
 0x273   : > { %1954 = vmatmul.bf16.gmra.mxu3 %v1779_v1  ;;  %v3448_v1 = vld [vmem:[#allocation2 + $0x10] sm:$0xc] }
 0x278   : > { %1909 = vmatmul.bf16.gmra.mxu1 %v1707_v30  ;;  %v1800_v30 = vshll.u32 %v7497_v28, 16 }
 0x27a   : > { %2114 = vmatmul.bf16.gmra.mxu2 %v7334_v29  ;;  %v7455_v29 = vsel %vm2171_vm13, %v2193_v60, %v2195_v3  ;;  %v3539_v60 = vunpack.c.l.b16 %v3448_v1  ;;  %v1718_v3 = vor.u32 %v1716_v21, %v1714_v37  ;;  %v6065_v1 = vld [vmem:[%s8860_s7 + $0x198] sm:$0xff]  ;;  %v7551_v21 = vld [vmem:[#allocation2 + $0x30] sm:$0xff] }
 0x27b   : > { %9034 = vst [vmem:[#allocation6_spill] sm:$0xff] %v7455_v29  ;;  %v8915_v27 = vrot.slane %v7551_v21, 3 }
 0x27c   : > { %2079 = vmatmul.bf16.gmra.mxu0 %v7383_v54  ;;  %v1715_v54 = vsel %vm1671_vm12, %v1710_v35, %v1714_v37  ;;  %v6066_v35 = vld [vmem:[%s8860_s7 + $0x1a0] sm:$0xff]  ;;  %v1723_v32 = vsel %vm1671_vm12, %v1718_v3, %v1722_v51  ;;  %v7536_v18 = vpack.c.b16 %v8907_v61, %v3539_v60  ;;  %v7538_v37 = vld [vmem:[#allocation2 + $0x28] sm:$0xff]  ;;  %9040 = vst [vmem:[#allocation10_spill] sm:$0xff] %v7551_v21  ;;  %v2795_v60 = vld [vmem:[#allocation2 + $0x98] sm:$0x3] }
 0x27d   : > { %3701 = vmatpush.bf16.msra.mxu0 %v6066_v35  ;;  %v7560_v3 = vsel %vm1671_vm12, %v1726_v2, %v7342_v41  ;;  %v7585_v61 = vld [vmem:[#allocation2 + $0x40] sm:$0xff] }
 0x27e   : > { %9039 = vst [vmem:[#allocation9_spill] sm:$0xff] %v7536_v18  ;;  %v3595_v51 = vrot.slane %v7536_v18, 2 }
 0x281   : > { %3702 = vmatpush.bf16.msra.mxu0 %v6065_v1  ;;  %v7597_v1 = vsel %vm3209_vm14, %v3595_v51, %v8914_v9  ;;  %v7614_v51 = vsel %vm4247_vm15, %v8915_v27, %v4257_v25  ;;  %v7618_v9 = vld [vmem:[#allocation2 + $0x50] sm:$0xff]  ;;  %v6030_v27 = vld [vmem:[%s8860_s7 + $0x108] sm:$0xff] }
 0x282   : > { %9045 = vst [vmem:[#allocation15_spill] sm:$0xff] %v7614_v51  ;;  %v7631_v51 = vld [vmem:[#allocation2 + $0x50] sm:$0xff]  ;;  %3059 = vmatpush.bf16.msrb.mxu2 %v6030_v27 }
 0x283   : > { %1959 = vmatmul.bf16.gmra.mxu3 %v1787_v0  ;;  %v1802_v0 = vrot.slane %v1800_v30, 1  ;;  %v7554_v30 = vsel %vm3209_vm14, %v3213_v36, %v3215_v22  ;;  %v1812_v36 = vshrl.u32 %v7473_v62, 16 }
 0x284   : > { %9041 = vst [vmem:[#allocation11_spill] sm:$0xff] %v7554_v30  ;;  %v7652_v30 = vld [vmem:[#allocation2 + $0x58] sm:$0xff] }
 0x285   : > { %v1806_v40 = vor.u32 %v1804_v48, %v1802_v0  ;;  %v7582_v48 = vld [vmem:[#allocation2 + $0x40] sm:$0xff] }
 0x286   : > { %v3223_v47 = vrot.slane %v7582_v48, 2 }
 0x288   : > { %1914 = vmatmul.bf16.gmra.mxu1 %v1715_v54  ;;  %v1796_v54 = vshrl.u32 %v7477_v24, 16 }
 0x28a   : > { %2119 = vmatmul.bf16.gmra.mxu2 %v7363_v8  ;;  %v1792_v8 = vshll.u32 %v7477_v24, 16 }
 0x28c   : > { %2084 = vmatmul.bf16.gmra.mxu0 %v7389_v13  ;;  %v1794_v34 = vrot.slane %v1792_v8, 1  ;;  %v7546_v8 = vld [vmem:[#allocation2 + $0x30] sm:$0xff] }
 0x28d   : > { %v3219_v41 = vrot.slane %v7546_v8, 2 }
 0x28e   : > { %v1795_v56 = vsel %vm1671_vm12, %v1790_v19, %v1794_v34  ;;  %v1798_v19 = vor.u32 %v1796_v54, %v1794_v34  ;;  %v1810_v34 = vrot.slane %v1808_v46, 1  ;;  %v6064_v54 = vld [vmem:[%s8860_s7 + $0x190] sm:$0xff]  ;;  %v2814_v46 = vunpack.c.l.b16 %v2795_v60 }
 0x28f   : > { %v3221_v60 = vrot.slane %v7566_v20, 2  ;;  %3703 = vmatpush.bf16.msra.mxu0 %v6064_v54  ;;  %v4259_v54 = vrot.slane %v7585_v61, 3 }
 0x290   : > { %v7577_v2 = vsel %vm1671_vm12, %v1806_v40, %v1810_v34  ;;  %v7592_v40 = vor.u32 %v1812_v36, %v1810_v34  ;;  %v3900_v34 = vshrl.u32 %v7564_v49, 16 }
 0x291   : > { %v7609_v36 = vsel %vm3209_vm14, %v3219_v41, %v3221_v60 }
 0x292   : > { %9044 = vst [vmem:[#allocation14_spill] sm:$0xff] %v7609_v36  ;;  %v3905_v36 = vrot.slane %v3903_v5, 3 }
 0x293   : > { %1964 = vmatmul.bf16.gmra.mxu3 %v1795_v56  ;;  %v3217_v56 = vrot.slane %v7538_v37, 2 }
 0x295   : > { %v7572_v35 = vsel %vm3209_vm14, %v3215_v22, %v3217_v56  ;;  %v7588_v22 = vsel %vm3209_vm14, %v3217_v56, %v3219_v41  ;;  %v7605_v56 = vld [vmem:[#allocation2 + $0x48] sm:$0xff] }
 0x296   : > { %9042 = vst [vmem:[#allocation12_spill] sm:$0xff] %v7572_v35  ;;  %v6063_v41 = vld [vmem:[%s8860_s7 + $0x188] sm:$0xff]  ;;  %v7645_v35 = vsel %vm4247_vm15, %v4257_v25, %v4259_v54  ;;  %v3225_v5 = vrot.slane %v7605_v56, 2  ;;  %v3918_v25 = vshrl.u32 %v7603_v59, 16 }
 0x297   : > { %9043 = vst [vmem:[#allocation13_spill] sm:$0xff] %v7588_v22  ;;  %v7620_v22 = vpack.c.b16 %v2814_v46, %v2814_v46  ;;  %v7634_v46 = vsel %vm3209_vm14, %v3221_v60, %v3223_v47  ;;  %v4261_v60 = vrot.slane %v7603_v59, 3  ;;  %3704 = vmatpush.bf16.msra.mxu0 %v6063_v41  ;;  %v3921_v41 = vshll.u32 %v7603_v59, 16 }
 0x298   : > { %1919 = vmatmul.bf16.gmra.mxu1 %v1723_v32  ;;  %v1803_v32 = vsel %vm1671_vm12, %v1798_v19, %v1802_v0  ;;  %v3891_v0 = vshrl.u32 %v7551_v21, 16  ;;  %v3894_v19 = vshll.u32 %v7551_v21, 16  ;;  %9047 = vst [vmem:[#allocation17_spill] sm:$0xff] %v7634_v46  ;;  %v6062_v46 = vld [vmem:[%s8860_s7 + $0x180] sm:$0xff] }
 0x299   : > { %9048 = vst [vmem:[#allocation19_spill] sm:$0xff] %v7645_v35  ;;  %v7658_v35 = vsel %vm3209_vm14, %v3223_v47, %v3225_v5  ;;  %v7661_v27 = vsel %vm4247_vm15, %v4259_v54, %v4261_v60  ;;  %v7673_v47 = vld [vmem:[#allocation2 + $0x60] sm:$0xff]  ;;  %v3923_v54 = vrot.slane %v3921_v41, 3 }
 0x29a   : > { %2124 = vmatmul.bf16.gmra.mxu2 %v7403_v12  ;;  %v3893_v45 = vrot.slane %v3891_v0, 2  ;;  %v3896_v31 = vrot.slane %v3894_v19, 3  ;;  %v3902_v19 = vrot.slane %v3900_v34, 2  ;;  %v6022_v34 = vld [vmem:[%s8860_s7 + $0xc8] sm:$0xff]  ;;  %9050 = vst [vmem:[#allocation22_spill] sm:$0xff] %v7658_v35  ;;  %v3227_v12 = vrot.slane %v7618_v9, 2 }
 0x29b   : > { %2666 = vmatpush.bf16.msrb.mxu1 %v6022_v34  ;;  %9051 = vst [vmem:[#allocation23_spill] sm:$0xff] %v7661_v27  ;;  %v3927_v34 = vshrl.u32 %v7631_v51, 16  ;;  %v3930_v27 = vshll.u32 %v7631_v51, 16  ;;  %3705 = vmatpush.bf16.msra.mxu0 %v6062_v46  ;;  %v3936_v46 = vshrl.u32 %v7652_v30, 16 }
 0x29c   : > { %2089 = vmatmul.bf16.gmra.mxu0 %v7480_v55  ;;  %v7622_v0 = vor.u32 %v3896_v31, %v3893_v45  ;;  %v3909_v31 = vshrl.u32 %v7585_v61, 16  ;;  %v3912_v45 = vshll.u32 %v7585_v61, 16  ;;  %v3906_v44 = vor.u32 %v3905_v36, %v3902_v19 }
 0x29e   : > { %9046 = vst [vmem:[#allocation16_spill] sm:$0xff] %v7622_v0  ;;  %v3911_v18 = vrot.slane %v3909_v31, 2  ;;  %v3914_v33 = vrot.slane %v3912_v45, 3  ;;  %v7669_v36 = vsel %vm3854_vm0, %v7622_v0, %v3906_v44  ;;  %v3920_v31 = vrot.slane %v3918_v25, 2  ;;  %v7689_v25 = vld [vmem:[#allocation2 + $0x68] sm:$0xff] }
 0x29f   : > { %9053 = vst [vmem:[#allocation25_spill] sm:$0xff] %v7669_v36  ;;  %v4263_v45 = vrot.slane %v7631_v51, 3  ;;  %v3932_v36 = vrot.slane %v3930_v27, 3  ;;  %v3938_v27 = vrot.slane %v3936_v46, 2  ;;  %v7722_v46 = vld [vmem:[#allocation2 + $0x78] sm:$0xff] }
 0x2a0   : > { %v3915_v19 = vor.u32 %v3914_v33, %v3911_v18  ;;  %v3229_v18 = vrot.slane %v7654_v63, 2  ;;  %v3924_v41 = vor.u32 %v3923_v54, %v3920_v31  ;;  %v4267_v54 = vrot.slane %v7673_v47, 3  ;;  %9064 = vst [vmem:[#allocation36_spill] sm:$0xff] %v7722_v46 }
 0x2a1   : > { %v7684_v33 = vsel %vm4247_vm15, %v4261_v60, %v4263_v45 }
 0x2a2   : > { %v7681_v35 = vsel %vm3854_vm0, %v3906_v44, %v3915_v19  ;;  %9056 = vst [vmem:[#allocation28_spill] sm:$0xff] %v7684_v33  ;;  %v7695_v44 = vsel %vm3209_vm14, %v3227_v12, %v3229_v18  ;;  %v3939_v33 = vshll.u32 %v7652_v30, 16  ;;  %v7704_v0 = vsel %vm3854_vm0, %v3915_v19, %v3924_v41 }
 0x2a3   : > { %1969 = vmatmul.bf16.gmra.mxu3 %v1803_v32  ;;  %v5996_v32 = vld [vmem:[%s8860_s7 + $0x80] sm:$0xff]  ;;  %9055 = vst [vmem:[#allocation27_spill] sm:$0xff] %v7681_v35  ;;  %v3231_v35 = vrot.slane %v7665_v6, 2  ;;  %v3954_v6 = vshrl.u32 %v7689_v25, 16 }
 0x2a4   : > { %2282 = vmatpush.bf16.msrb.mxu3 %v5996_v32  ;;  %v7676_v32 = vsel %vm3209_vm14, %v3225_v5, %v3227_v12  ;;  %v7691_v5 = vld [vmem:[#allocation2 + $0x68] sm:$0xff]  ;;  %9058 = vst [vmem:[#allocation30_spill] sm:$0xff] %v7695_v44  ;;  %v3941_v12 = vrot.slane %v3939_v33, 3  ;;  %v3948_v44 = vshll.u32 %v7673_v47, 16  ;;  %v6017_v33 = vld [vmem:[#allocation2 + $0x78] sm:$0xff] }
 0x2a5   : > { %9054 = vst [vmem:[#allocation26_spill] sm:$0xff] %v7676_v32  ;;  %v3929_v32 = vrot.slane %v3927_v34, 2  ;;  %v7707_v34 = vld [vmem:[#allocation2 + $0x70] sm:$0xff]  ;;  %v3956_v50 = vrot.slane %v3954_v6, 2  ;;  %v3237_v6 = vrot.slane %v6017_v33, 2  ;;  %v6029_v33 = vld [vmem:[%s8860_s7 + $0x100] sm:$0xff] }
 0x2a6   : > { %9057 = vst [vmem:[#allocation29_spill] sm:$0xff] %v7691_v5  ;;  %3060 = vmatpush.bf16.msrb.mxu2 %v6029_v33 }
 0x2a7   : > { %9060 = vst [vmem:[#allocation32_spill] sm:$0xff] %v7704_v0  ;;  %v3933_v31 = vor.u32 %v3932_v36, %v3929_v32  ;;  %v3233_v36 = vrot.slane %v7691_v5, 2  ;;  %v4269_v32 = vrot.slane %v7689_v25, 3  ;;  %v3942_v0 = vor.u32 %v3941_v12, %v3938_v27 }
 0x2a8   : > { %1924 = vmatmul.bf16.gmra.mxu1 %v7560_v3  ;;  %v4265_v3 = vrot.slane %v7652_v30, 3  ;;  %v3966_v12 = vshll.u32 %v7707_v34, 16 }
 0x2a9   : > { %v7715_v29 = vsel %vm3854_vm0, %v3924_v41, %v3933_v31  ;;  %v7726_v17 = vsel %vm3209_vm14, %v3231_v35, %v3233_v36  ;;  %v7729_v41 = vsel %vm4247_vm15, %v4267_v54, %v4269_v32  ;;  %v7733_v5 = vsel %vm3854_vm0, %v3933_v31, %v3942_v0 }
 0x2aa   : > { %2129 = vmatmul.bf16.gmra.mxu2 %v7438_v26  ;;  %v7698_v60 = vsel %vm4247_vm15, %v4263_v45, %v4265_v3  ;;  %v6016_v26 = vld [vmem:[#allocation2 + $0x70] sm:$0xff]  ;;  %v7710_v45 = vsel %vm3209_vm14, %v3229_v18, %v3231_v35  ;;  %9062 = vst [vmem:[#allocation34_spill] sm:$0xff] %v7715_v29  ;;  %v7718_v19 = vsel %vm4247_vm15, %v4265_v3, %v4267_v54  ;;  %v3957_v3 = vshll.u32 %v7689_v25, 16  ;;  %v6018_v29 = vld [vmem:[#allocation2 + $0x80] sm:$0xff] }
 0x2ab   : > { %9059 = vst [vmem:[#allocation31_spill] sm:$0xff] %v7698_v60  ;;  %v3945_v60 = vshrl.u32 %v7673_v47, 16  ;;  %v3963_v54 = vshrl.u32 %v7707_v34, 16 }
 0x2ac   : > { %2094 = vmatmul.bf16.gmra.mxu0 %v7329_v52  ;;  %9061 = vst [vmem:[#allocation33_spill] sm:$0xff] %v7710_v45  ;;  %v3950_v45 = vrot.slane %v3948_v44, 3  ;;  %v7736_v44 = vld [vmem:[#allocation2 + $0x80] sm:$0xff]  ;;  %v3959_v27 = vrot.slane %v3957_v3, 3  ;;  %v6019_v3 = vld [vmem:[#allocation2 + $0x88] sm:$0xff] }
 0x2ad   : > { %9063 = vst [vmem:[#allocation35_spill] sm:$0xff] %v7718_v19  ;;  %v3947_v18 = vrot.slane %v3945_v60, 2  ;;  %v3235_v19 = vrot.slane %v6016_v26, 2  ;;  %v4271_v60 = vrot.slane %v7707_v34, 3 }
 0x2ae   : > { %9065 = vst [vmem:[#allocation37_spill] sm:$0xff] %v7726_v17  ;;  %v3972_v17 = vshrl.u32 %v7722_v46, 16 }
 0x2af   : > { %9066 = vst [vmem:[#allocation38_spill] sm:$0xff] %v7729_v41  ;;  %v3951_v63 = vor.u32 %v3950_v45, %v3947_v18  ;;  %v7739_v35 = vsel %vm3209_vm14, %v3233_v36, %v3235_v19  ;;  %v7748_v31 = vsel %vm4247_vm15, %v4269_v32, %v4271_v60  ;;  %v4273_v45 = vrot.slane %v7722_v46, 3  ;;  %v7751_v18 = vld [vmem:[#allocation2 + $0x88] sm:$0xff] }
 0x2b0   : > { %9067 = vst [vmem:[#allocation39_spill] sm:$0xff] %v7733_v5  ;;  %v3960_v36 = vor.u32 %v3959_v27, %v3956_v50  ;;  %v3968_v41 = vrot.slane %v3966_v12, 3  ;;  %v7755_v5 = vsel %vm3209_vm14, %v3235_v19, %v3237_v6  ;;  %v3239_v32 = vrot.slane %v6018_v29, 2  ;;  %v6044_v50 = vld [vmem:[%s8860_s7 + $0x178] sm:$0xff]  ;;  %v6020_v27 = vld [vmem:[#allocation2 + $0x90] sm:$0xff] }
 0x2b1   : > { %9068 = vst [vmem:[#allocation40_spill] sm:$0xff] %v7736_v44  ;;  %v7745_v26 = vsel %vm3854_vm0, %v3942_v0, %v3951_v63  ;;  %v3975_v0 = vshll.u32 %v7722_v46, 16  ;;  %v3974_v12 = vrot.slane %v3972_v17, 2  ;;  %3313 = vmatpush.bf16.msra.mxu3 %v6044_v50  ;;  %v3243_v33 = vrot.slane %v6020_v27, 2 }
 0x2b2   : > { %9069 = vst [vmem:[#allocation41_spill] sm:$0xff] %v7739_v35  ;;  %v3965_v35 = vrot.slane %v3963_v54, 2  ;;  %v7768_v54 = vsel %vm3854_vm0, %v3951_v63, %v3960_v36  ;;  %v7774_v29 = vsel %vm3209_vm14, %v3237_v6, %v3239_v32  ;;  %v7786_v6 = vld [vmem:[#allocation2 + $0x98] sm:$0xff] }
 0x2b3   : > { %1974 = vmatmul.bf16.gmra.mxu3 %v7577_v2  ;;  %9070 = vst [vmem:[#allocation42_spill] sm:$0xff] %v7745_v26  ;;  %v7758_v2 = vsel %vm4247_vm15, %v4271_v60, %v4273_v45  ;;  %v4275_v60 = vrot.slane %v7736_v44, 3  ;;  %v3984_v26 = vshll.u32 %v7736_v44, 16 }
 0x2b4   : > { %9071 = vst [vmem:[#allocation43_spill] sm:$0xff] %v7748_v31  ;;  %v3969_v19 = vor.u32 %v3968_v41, %v3965_v35  ;;  %v3981_v31 = vshrl.u32 %v7736_v44, 16  ;;  %v3241_v41 = vrot.slane %v6019_v3, 2  ;;  %v4277_v35 = vrot.slane %v7751_v18, 3 }
 0x2b5   : > { %9072 = vst [vmem:[#allocation44_spill] sm:$0xff] %v7755_v5  ;;  %v3977_v5 = vrot.slane %v3975_v0, 3  ;;  %v7783_v17 = vsel %vm4247_vm15, %v4273_v45, %v4275_v60  ;;  %v3986_v46 = vrot.slane %v3984_v26, 3  ;;  %v3990_v44 = vshrl.u32 %v7751_v18, 16 }
 0x2b6   : > { %9073 = vst [vmem:[#allocation45_spill] sm:$0xff] %v7758_v2  ;;  %v7771_v2 = vld [vmem:[#allocation2 + $0x90] sm:$0xff]  ;;  %v7780_v63 = vsel %vm3854_vm0, %v3960_v36, %v3969_v19  ;;  %v7794_v45 = vsel %vm3209_vm14, %v3239_v32, %v3241_v41  ;;  %v7797_v3 = vsel %vm4247_vm15, %v4275_v60, %v4277_v35  ;;  %v3993_v36 = vshll.u32 %v7751_v18, 16 }
 0x2b7   : > { %9074 = vst [vmem:[#allocation46_spill] sm:$0xff] %v7768_v54  ;;  %v3983_v54 = vrot.slane %v3981_v31, 2  ;;  %v3992_v31 = vrot.slane %v3990_v44, 2  ;;  %v7806_v32 = vsel %vm3209_vm14, %v3241_v41, %v3243_v33  ;;  %v4002_v60 = vshll.u32 %v7771_v2, 16 }
 0x2b8   : > { %9075 = vst [vmem:[#allocation47_spill] sm:$0xff] %v7774_v29  ;;  %1929 = vmatmul.bf16.gmra.mxu1 %v7361_v14  ;;  %v3978_v29 = vor.u32 %v3977_v5, %v3974_v12  ;;  %v6021_v14 = vld [vmem:[%s8860_s7 + $0xc0] sm:$0xff]  ;;  %v3995_v50 = vrot.slane %v3993_v36, 3  ;;  %v3999_v12 = vshrl.u32 %v7771_v2, 16  ;;  %v4281_v44 = vrot.slane %v7786_v6, 3 }
 0x2b9   : > { %9076 = vst [vmem:[#allocation48_spill] sm:$0xff] %v7780_v63  ;;  %v2060_v0 = vpop.f32.mrf.mxu0  ;;  %v3987_v26 = vor.u32 %v3986_v46, %v3983_v54  ;;  %2667 = vmatpush.bf16.msrb.mxu1 %v6021_v14  ;;  %v3245_v46 = vrot.slane %v7620_v22, 2  ;;  %v4004_v36 = vrot.slane %v4002_v60, 3  ;;  %v4008_v41 = vshrl.u32 %v7786_v6, 16 }
 0x2ba   : > { %9077 = vst [vmem:[#allocation49_spill] sm:$0xff] %v7783_v17  ;;  %2134 = vmatmul.bf16.gmra.mxu2 %v7477_v24  ;;  %v7801_v5 = vsel %vm3854_vm0, %v3969_v19, %v3978_v29  ;;  %v4279_v24 = vrot.slane %v7771_v2, 3  ;;  %v3996_v54 = vor.u32 %v3995_v50, %v3992_v31  ;;  %v4001_v14 = vrot.slane %v3999_v12, 2 }
 0x2bb   : > { %9078 = vst [vmem:[#allocation50_spill] sm:$0xff] %v7794_v45  ;;  %v7811_v27 = vsel %vm3854_vm0, %v3978_v29, %v3987_v26  ;;  %v4011_v29 = vshll.u32 %v7786_v6, 16  ;;  %v4010_v45 = vrot.slane %v4008_v41, 2  ;;  %v1819_v50 = vsel %vm1671_vm12, %v7592_v40, %v7601_v16  ;;  %v6210_v41 = vld [vmem:[#allocation2] sm:$0xe] }
 0x2bc   : > { %9079 = vst [vmem:[#allocation51_spill] sm:$0xff] %v7797_v3  ;;  %3706 = vmatmul.bf16.vlgmr.msra.gmra.mxu0 %v7597_v1  ;;  %v7814_v19 = vsel %vm4247_vm15, %v4277_v35, %v4279_v24  ;;  %v3833_v1 = vld [vmem:[#allocation2 + $0xa0] sm:$0x7]  ;;  %v7823_v3 = vsel %vm4247_vm15, %v4279_v24, %v4281_v44  ;;  %v7827_v35 = vsel %vm3854_vm0, %v3987_v26, %v3996_v54 }
 0x2bd   : > { %9080 = vst [vmem:[#allocation52_spill] sm:$0xff] %v7801_v5  ;;  %v3852_v17 = vunpack.c.l.b16 %v3833_v1  ;;  %v4013_v31 = vrot.slane %v4011_v29, 3  ;;  %v6046_v24 = vld [vmem:[#allocation2 + $0x20] sm:$0xff] }
 0x2be   : > { %9081 = vst [vmem:[#allocation53_spill] sm:$0xff] %v7806_v32  ;;  %v7820_v32 = vsel %vm3209_vm14, %v3243_v33, %v3245_v46 }
 0x2bf   : > { %9082 = vst [vmem:[#allocation54_spill] sm:$0xff] %v7811_v27  ;;  %v3853_v12 = vpack.c.b16 %v3852_v17, %v3852_v17  ;;  %v4014_v60 = vor.u32 %v4013_v31, %v4010_v45  ;;  %v3598_v17 = vrot.slane %v6046_v24, 2 }
 0x2c0   : > { %9083 = vst [vmem:[#allocation55_spill] sm:$0xff] %v7814_v19  ;;  %v4005_v19 = vor.u32 %v4004_v36, %v4001_v14 }
 0x2c1   : > { %9084 = vst [vmem:[#allocation56_spill] sm:$0xff] %v7820_v32  ;;  %v2062_v27 = vpop.f32.mrf.mxu0  ;;  %v4283_v46 = vrot.slane %v3853_v12, 3  ;;  %v4020_v26 = vshll.u32 %v3853_v12, 16 }
 0x2c2   : > { %9085 = vst [vmem:[#allocation57_spill] sm:$0xff] %v7823_v3  ;;  %v7833_v33 = vsel %vm3854_vm0, %v3996_v54, %v4005_v19  ;;  %v4017_v3 = vshrl.u32 %v3853_v12, 16  ;;  %v7836_v14 = vsel %vm3854_vm0, %v4005_v19, %v4014_v60  ;;  %v6209_v54 = vld [vmem:[#allocation2] sm:$0xf0] }
 0x2c3   : > { %9086 = vst [vmem:[#allocation58_spill] sm:$0xff] %v7827_v35  ;;  %1979 = vmatmul.bf16.gmra.mxu3 %v1819_v50  ;;  %v7841_v36 = vsel %vm4247_vm15, %v4281_v44, %v4283_v46  ;;  %v4022_v40 = vrot.slane %v4020_v26, 3  ;;  %v6211_v31 = vor.u32 %v6210_v41, %v6209_v54  ;;  %v2410_v46 = vld [vmem:[#allocation2 + $0x8] sm:$0xe]  ;;  %v7864_v26 = vld [vmem:[#allocation2 + $0xc] sm:$0xf] }
 0x2c4   : > { %9087 = vst [vmem:[#allocation59_spill] sm:$0xff] %v7833_v33  ;;  %v4019_v16 = vrot.slane %v4017_v3, 2  ;;  %v9091_v3 = vrot.slane %v7543_v7, 2  ;;  %v8929_v41 = vunpack.c.l.b16 %v7864_v26  ;;  %v2558_v33 = vrot.slane %v7488_v11, 1 }
 0x2c5   : > { %v1895_v32 = vpop.f32.mrf.mxu1  ;;  %9088 = vst [vmem:[#allocation60_spill] sm:$0xff] %v7836_v14  ;;  %v2172_v50 = vrot.slane %v6211_v31, 1 }
 0x2c6   : > { %v7838_v1 = vadd.f32 %v2060_v0, %v1895_v32  ;;  %9089 = vst [vmem:[#allocation61_spill] sm:$0xff] %v7841_v36  ;;  %v4023_v45 = vor.u32 %v4022_v40, %v4019_v16  ;;  %v6085_v0 = vld [vmem:[%s8860_s7 + $0x238] sm:$0xff]  ;;  %v3599_v19 = vsel %vm3209_vm14, %v9091_v3, %v3598_v17  ;;  %v6047_v16 = vld [vmem:[#allocation2 + $0x28] sm:$0xff] }
 0x2c7   : > { %4351 = vmatpush.bf16.msra.mxu2 %v6085_v0  ;;  %v3600_v0 = vrot.slane %v6047_v16, 2  ;;  %v2829_v16 = vshll.u32 %v7488_v11, 16 }
 0x2c8   : > { %1934 = vmatmul.bf16.gmra.mxu1 %v7373_v15  ;;  %v7849_v32 = vsel %vm3854_vm0, %v4014_v60, %v4023_v45  ;;  %v9092_v60 = vrot.slane %v7309_v38, 1 }
 0x2c9   : > { %v2065_v29 = vpop.f32.mrf.mxu0  ;;  %9090 = vst [vmem:[#allocation62_spill] sm:$0xff] %v7849_v32 }
 0x2ca   : > { %2139 = vmatmul.bf16.gmra.mxu2 %v7497_v28  ;;  %v6077_v28 = vld [vmem:[%s8860_s7 + $0x1f8] sm:$0xff]  ;;  %v2174_v7 = vsel %vm2171_vm13, %v2172_v50, %v9092_v60 }
 0x2cb   : > { %4091 = vmatpush.bf16.msra.mxu1 %v6077_v28 }
 0x2cc   : > { %3711 = vmatmul.bf16.gmra.mxu0 %v3599_v19  ;;  %v6043_v19 = vld [vmem:[%s8860_s7 + $0x170] sm:$0xff] }
 0x2cd   : > { %v7854_v44 = vpop.f32.mrf.mxu2  ;;  %v1897_v15 = vpop.f32.mrf.mxu1  ;;  %3314 = vmatpush.bf16.msra.mxu3 %v6043_v19 }
 0x2ce   : > { %v7856_v12 = vadd.f32 %v2062_v27, %v1897_v15  ;;  %v2501_v27 = vunpack.c.l.b16 %v2410_v46  ;;  %v3601_v15 = vsel %vm3209_vm14, %v3598_v17, %v3600_v0  ;;  %v2826_v46 = vshrl.u32 %v7488_v11, 16 }
 0x2d0   : > { %v2538_v3 = vpack.c.b16 %v8929_v41, %v2501_v27  ;;  %v2828_v17 = vrot.slane %v2826_v46, 1 }
 0x2d1   : > { %v2067_v24 = vpop.f32.mrf.mxu0 }
 0x2d2   : > { %v2818_v28 = vshrl.u32 %v2538_v3, 16  ;;  %v2821_v60 = vshll.u32 %v2538_v3, 16  ;;  %v2557_v19 = vrot.slane %v2538_v3, 1 }
 0x2d3   : > { %2283 = vmatmul.bf16.vlgmr.msrb.gmra.mxu3 %v2174_v7 }
 0x2d4   : > { %v2823_v27 = vrot.slane %v2821_v60, 2  ;;  %v2559_v5 = vsel %vm2171_vm13, %v2557_v19, %v2558_v33  ;;  %v2560_v19 = vrot.slane %v7495_v43, 1 }
 0x2d5   : > { %v7866_v40 = vpop.f32.mrf.mxu2  ;;  %v1900_v54 = vpop.f32.mrf.mxu1 }
 0x2d6   : > { %v1945_v45 = vpop.f32.mrf.mxu3  ;;  %v7869_v31 = vadd.f32 %v2065_v29, %v1900_v54  ;;  %v2820_v54 = vrot.slane %v2818_v28, 1  ;;  %v3602_v28 = vrot.slane %v7551_v21, 2 }
 0x2d8   : > { %1939 = vmatmul.bf16.gmra.mxu1 %v7381_v58  ;;  %v2824_v32 = vor.u32 %v2823_v27, %v2820_v54  ;;  %v3603_v3 = vsel %vm3209_vm14, %v3600_v0, %v3602_v28  ;;  %v2835_v54 = vshrl.u32 %v7495_v43, 16 }
 0x2d9   : > { %v2070_v38 = vpop.f32.mrf.mxu0 }
 0x2da   : > { %2144 = vmatmul.bf16.gmra.mxu2 %v7473_v62 }
 0x2dc   : > { %3716 = vmatmul.bf16.gmra.mxu0 %v3601_v15  ;;  %v2831_v15 = vrot.slane %v2829_v16, 2 }
 0x2dd   : > { %v7879_v50 = vpop.f32.mrf.mxu2  ;;  %v1902_v29 = vpop.f32.mrf.mxu1 }
 0x2de   : > { %v1947_v58 = vpop.f32.mrf.mxu3  ;;  %v7881_v7 = vadd.f32 %v2067_v24, %v1902_v29  ;;  %v2832_v35 = vor.u32 %v2831_v15, %v2828_v17 }
 0x2e1   : > { %v2072_v41 = vpop.f32.mrf.mxu0 }
 0x2e3   : > { %2288 = vmatmul.bf16.gmra.mxu3 %v7378_v10  ;;  %v2833_v10 = vsel %vm2816_vm1, %v2824_v32, %v2832_v35  ;;  %v2837_v32 = vrot.slane %v2835_v54, 1  ;;  %v2561_v54 = vsel %vm2171_vm13, %v2558_v33, %v2560_v19 }
 0x2e5   : > { %v7886_v36 = vpop.f32.mrf.mxu2  ;;  %v1905_v14 = vpop.f32.mrf.mxu1 }
 0x2e6   : > { %v1950_v24 = vpop.f32.mrf.mxu3  ;;  %v7889_v29 = vadd.f32 %v2070_v38, %v1905_v14  ;;  %v2838_v14 = vshll.u32 %v7495_v43, 16 }
 0x2e8   : > { %2668 = vmatmul.bf16.vlgmr.msrb.gmra.mxu1 %v2559_v5  ;;  %v6084_v5 = vld [vmem:[%s8860_s7 + $0x230] sm:$0xff]  ;;  %v2840_v15 = vrot.slane %v2838_v14, 2  ;;  %v3604_v14 = vrot.slane %v7564_v49, 2  ;;  %v6042_v49 = vld [vmem:[%s8860_s7 + $0x168] sm:$0xff] }
 0x2e9   : > { %v2075_v60 = vpop.f32.mrf.mxu0  ;;  %4352 = vmatpush.bf16.msra.mxu2 %v6084_v5  ;;  %3315 = vmatpush.bf16.msra.mxu3 %v6042_v49 }
 0x2ea   : > { %3061 = vmatmul.bf16.vlgmr.msrb.gmra.mxu2 %v2833_v10  ;;  %v6076_v10 = vld [vmem:[%s8860_s7 + $0x1f0] sm:$0xff]  ;;  %v3605_v5 = vsel %vm3209_vm14, %v3602_v28, %v3604_v14 }
 0x2eb   : > { %4092 = vmatpush.bf16.msra.mxu1 %v6076_v10  ;;  %v2844_v10 = vshrl.u32 %v7524_v39, 16 }
 0x2ec   : > { %3721 = vmatmul.bf16.gmra.mxu0 %v3603_v3  ;;  %v2841_v3 = vor.u32 %v2840_v15, %v2837_v32 }
 0x2ed   : > { %v2110_v46 = vpop.f32.mrf.mxu2  ;;  %v1907_v16 = vpop.f32.mrf.mxu1 }
 0x2ee   : > { %v1952_v38 = vpop.f32.mrf.mxu3  ;;  %v7897_v27 = vadd.f32 %v2110_v46, %v1945_v45  ;;  %v7899_v17 = vadd.f32 %v2072_v41, %v1907_v16 }
 0x2f1   : > { %v2077_v0 = vpop.f32.mrf.mxu0 }
 0x2f3   : > { %2293 = vmatmul.bf16.gmra.mxu3 %v7386_v4  ;;  %v2842_v4 = vsel %vm2816_vm1, %v2832_v35, %v2841_v3  ;;  %v2846_v35 = vrot.slane %v2844_v10, 1 }
 0x2f5   : > { %v2112_v45 = vpop.f32.mrf.mxu2  ;;  %v1910_v41 = vpop.f32.mrf.mxu1 }
 0x2f6   : > { %v1955_v46 = vpop.f32.mrf.mxu3  ;;  %v7909_v16 = vadd.f32 %v2112_v45, %v1947_v58  ;;  %v7911_v63 = vadd.f32 %v2075_v60, %v1910_v41  ;;  %v2847_v58 = vshll.u32 %v7524_v39, 16 }
 0x2f8   : > { %9093 = vst [vmem:[#allocation63_spill] sm:$0xff] %v7909_v16  ;;  %2673 = vmatmul.bf16.gmra.mxu1 %v2561_v54  ;;  %v2849_v41 = vrot.slane %v2847_v58, 2  ;;  %v2562_v54 = vrot.slane %v7524_v39, 1 }
 0x2f9   : > { %v2080_v43 = vpop.f32.mrf.mxu0 }
 0x2fa   : > { %3066 = vmatmul.bf16.gmra.mxu2 %v2842_v4 }
 0x2fc   : > { %3726 = vmatmul.bf16.gmra.mxu0 %v3605_v5  ;;  %v2850_v5 = vor.u32 %v2849_v41, %v2846_v35  ;;  %v2853_v35 = vshrl.u32 %v7538_v37, 16 }
 0x2fd   : > { %v2115_v32 = vpop.f32.mrf.mxu2  ;;  %v1912_v15 = vpop.f32.mrf.mxu1 }
 0x2fe   : > { %v1957_v60 = vpop.f32.mrf.mxu3  ;;  %v7919_v45 = vadd.f32 %v2115_v32, %v1950_v24  ;;  %v7921_v33 = vadd.f32 %v2077_v0, %v1912_v15  ;;  %v2563_v32 = vsel %vm2171_vm13, %v2560_v19, %v2562_v54  ;;  %v3606_v15 = vrot.slane %v7585_v61, 2 }
 0x2ff   : > { %v2851_v10 = vsel %vm2816_vm1, %v2841_v3, %v2850_v5  ;;  %v2855_v61 = vrot.slane %v2853_v35, 1  ;;  %v2564_v3 = vrot.slane %v7538_v37, 1 }
 0x301   : > { %v2082_v28 = vpop.f32.mrf.mxu0 }
 0x303   : > { %2298 = vmatmul.bf16.gmra.mxu3 %v7399_v53  ;;  %v3607_v53 = vsel %vm3209_vm14, %v3604_v14, %v3606_v15  ;;  %v6083_v14 = vld [vmem:[%s8860_s7 + $0x228] sm:$0xff] }
 0x304   : > { %4353 = vmatpush.bf16.msra.mxu2 %v6083_v14 }
 0x305   : > { %v2117_v4 = vpop.f32.mrf.mxu2  ;;  %v1915_v21 = vpop.f32.mrf.mxu1 }
 0x306   : > { %v1960_v16 = vpop.f32.mrf.mxu3  ;;  %v7928_v24 = vadd.f32 %v2117_v4, %v1952_v38  ;;  %v7930_v0 = vadd.f32 %v2080_v43, %v1915_v21  ;;  %v2856_v38 = vshll.u32 %v7538_v37, 16  ;;  %v2565_v37 = vsel %vm2171_vm13, %v2562_v54, %v2564_v3 }
 0x307   : > { %v2183_v54 = vrot.slane %v7480_v55, 1 }
 0x308   : > { %9094 = vst [vmem:[#allocation64_spill] sm:$0xff] %v7928_v24  ;;  %2678 = vmatmul.bf16.gmra.mxu1 %v2563_v32  ;;  %v2858_v41 = vrot.slane %v2856_v38, 2 }
 0x309   : > { %v2085_v58 = vpop.f32.mrf.mxu0 }
 0x30a   : > { %3071 = vmatmul.bf16.gmra.mxu2 %v2851_v10  ;;  %v2859_v10 = vor.u32 %v2858_v41, %v2855_v61  ;;  %v2865_v61 = vshll.u32 %v7546_v8, 16 }
 0x30c   : > { %3731 = vmatmul.bf16.gmra.mxu0 %v3607_v53 }
 0x30d   : > { %v2120_v39 = vpop.f32.mrf.mxu2  ;;  %v1917_v49 = vpop.f32.mrf.mxu1 }
 0x30e   : > { %v1962_v21 = vpop.f32.mrf.mxu3  ;;  %v7938_v43 = vadd.f32 %v2120_v39, %v1955_v46  ;;  %v7940_v19 = vadd.f32 %v2082_v28, %v1917_v49  ;;  %v3608_v39 = vrot.slane %v7603_v59, 2  ;;  %v2860_v49 = vsel %vm2816_vm1, %v2850_v5, %v2859_v10 }
 0x310   : > { %v3609_v35 = vsel %vm3209_vm14, %v3606_v15, %v3608_v39 }
 0x311   : > { %v2087_v4 = vpop.f32.mrf.mxu0 }
 0x313   : > { %2303 = vmatmul.bf16.gmra.mxu3 %v7408_v23  ;;  %v6075_v23 = vld [vmem:[%s8860_s7 + $0x1e8] sm:$0xff] }
 0x314   : > { %4093 = vmatpush.bf16.msra.mxu1 %v6075_v23  ;;  %v9097_v23 = vrot.slane %v7389_v13, 1 }
 0x315   : > { %v2122_v32 = vpop.f32.mrf.mxu2  ;;  %v1920_v53 = vpop.f32.mrf.mxu1 }
 0x316   : > { %v1965_v24 = vpop.f32.mrf.mxu3  ;;  %v7947_v46 = vadd.f32 %v2122_v32, %v1957_v60  ;;  %v7949_v28 = vadd.f32 %v2085_v58, %v1920_v53  ;;  %v2862_v58 = vshrl.u32 %v7546_v8, 16  ;;  %v2867_v53 = vrot.slane %v2865_v61, 2 }
 0x317   : > { %v2184_v15 = vsel %vm2171_vm13, %v9097_v23, %v2183_v54 }
 0x318   : > { %9095 = vst [vmem:[#allocation65_spill] sm:$0xff] %v7947_v46  ;;  %2683 = vmatmul.bf16.gmra.mxu1 %v2565_v37  ;;  %v2864_v5 = vrot.slane %v2862_v58, 1  ;;  %v2566_v37 = vrot.slane %v7546_v8, 1  ;;  %v3610_v58 = vrot.slane %v7631_v51, 2 }
 0x319   : > { %v2090_v32 = vpop.f32.mrf.mxu0 }
 0x31a   : > { %3076 = vmatmul.bf16.gmra.mxu2 %v2860_v49  ;;  %v6041_v49 = vld [vmem:[%s8860_s7 + $0x160] sm:$0xff]  ;;  %v2567_v13 = vsel %vm2171_vm13, %v2564_v3, %v2566_v37  ;;  %v3611_v23 = vsel %vm3209_vm14, %v3608_v39, %v3610_v58  ;;  %v2568_v39 = vrot.slane %v7566_v20, 1 }
 0x31b   : > { %3316 = vmatpush.bf16.msra.mxu3 %v6041_v49 }
 0x31c   : > { %3736 = vmatmul.bf16.gmra.mxu0 %v3609_v35  ;;  %v2868_v35 = vor.u32 %v2867_v53, %v2864_v5 }
 0x31d   : > { %v2125_v60 = vpop.f32.mrf.mxu2  ;;  %v1922_v38 = vpop.f32.mrf.mxu1 }
 0x31e   : > { %v1967_v41 = vpop.f32.mrf.mxu3  ;;  %v7960_v14 = vadd.f32 %v2125_v60, %v1960_v16  ;;  %v7963_v59 = vadd.f32 %v2087_v4, %v1922_v38  ;;  %v2869_v8 = vsel %vm2816_vm1, %v2859_v10, %v2868_v35 }
 0x320   : > { %9096 = vst [vmem:[#allocation66_spill] sm:$0xff] %v7960_v14 }
 0x321   : > { %v2092_v61 = vpop.f32.mrf.mxu0 }
 0x323   : > { %2308 = vmatmul.bf16.gmra.mxu3 %v2184_v15  ;;  %v2871_v15 = vshrl.u32 %v7566_v20, 16 }
 0x325   : > { %v2127_v16 = vpop.f32.mrf.mxu2  ;;  %v1925_v60 = vpop.f32.mrf.mxu1  ;;  %v2873_v51 = vrot.slane %v2871_v15, 1  ;;  %v2883_v15 = vshll.u32 %v7582_v48, 16 }
 0x326   : > { %v1970_v55 = vpop.f32.mrf.mxu3  ;;  %v7972_v4 = vadd.f32 %v2127_v16, %v1962_v21  ;;  %v7974_v38 = vadd.f32 %v2090_v32, %v1925_v60  ;;  %v2874_v21 = vshll.u32 %v7566_v20, 16  ;;  %v9099_v60 = vrot.slane %v7329_v52, 1  ;;  %v6082_v52 = vld [vmem:[%s8860_s7 + $0x220] sm:$0xff] }
 0x327   : > { %4354 = vmatpush.bf16.msra.mxu2 %v6082_v52  ;;  %v6074_v20 = vld [vmem:[%s8860_s7 + $0x1e0] sm:$0xff] }
 0x328   : > { %9098 = vst [vmem:[#allocation67_spill] sm:$0xff] %v7972_v4  ;;  %2688 = vmatmul.bf16.gmra.mxu1 %v2567_v13  ;;  %v2876_v16 = vrot.slane %v2874_v21, 2  ;;  %v2186_v10 = vsel %vm2171_vm13, %v2183_v54, %v9099_v60  ;;  %v2885_v60 = vrot.slane %v2883_v15, 2 }
 0x329   : > { %v2095_v13 = vpop.f32.mrf.mxu0  ;;  %4094 = vmatpush.bf16.msra.mxu1 %v6074_v20  ;;  %v6040_v20 = vld [vmem:[%s8860_s7 + $0x158] sm:$0xff] }
 0x32a   : > { %3081 = vmatmul.bf16.gmra.mxu2 %v2869_v8  ;;  %3317 = vmatpush.bf16.msra.mxu3 %v6040_v20 }
 0x32c   : > { %3741 = vmatmul.bf16.gmra.mxu0 %v3611_v23  ;;  %v2877_v23 = vor.u32 %v2876_v16, %v2873_v51 }
 0x32d   : > { %v2130_v5 = vpop.f32.mrf.mxu2  ;;  %v1927_v53 = vpop.f32.mrf.mxu1 }
 0x32e   : > { %v1972_v32 = vpop.f32.mrf.mxu3  ;;  %v7982_v49 = vadd.f32 %v2130_v5, %v1965_v24  ;;  %v7984_v3 = vadd.f32 %v2092_v61, %v1927_v53  ;;  %v2569_v61 = vsel %vm2171_vm13, %v2566_v37, %v2568_v39  ;;  %v3612_v5 = vrot.slane %v7652_v30, 2 }
 0x32f   : > { %v2878_v54 = vsel %vm2816_vm1, %v2868_v35, %v2877_v23  ;;  %v2880_v53 = vshrl.u32 %v7582_v48, 16 }
 0x331   : > { %v2882_v16 = vrot.slane %v2880_v53, 1 }
 0x333   : > { %2313 = vmatmul.bf16.gmra.mxu3 %v2186_v10 }
 0x335   : > { %v2132_v8 = vpop.f32.mrf.mxu2  ;;  %v1930_v4 = vpop.f32.mrf.mxu1 }
 0x336   : > { %v1975_v14 = vpop.f32.mrf.mxu3  ;;  %v7990_v46 = vadd.f32 %v2132_v8, %v1967_v41  ;;  %v7992_v24 = vadd.f32 %v2095_v13, %v1930_v4  ;;  %v3613_v41 = vsel %vm3209_vm14, %v3610_v58, %v3612_v5  ;;  %v2097_v4 = vpop.f32.mrf.mxu0  ;;  %v2570_v58 = vrot.slane %v7582_v48, 1 }
 0x337   : > { %v2886_v13 = vor.u32 %v2885_v60, %v2882_v16 }
 0x338   : > { %2693 = vmatmul.bf16.gmra.mxu1 %v2569_v61 }
 0x33a   : > { %3086 = vmatmul.bf16.gmra.mxu2 %v2878_v54  ;;  %v2571_v54 = vsel %vm2171_vm13, %v2568_v39, %v2570_v58  ;;  %v2892_v39 = vshll.u32 %v7605_v56, 16 }
 0x33c   : > { %3746 = vmatmul.bf16.gmra.mxu0 %v3613_v41  ;;  %v2894_v53 = vrot.slane %v2892_v39, 2 }
 0x33d   : > { %v2135_v37 = vpop.f32.mrf.mxu2  ;;  %v1932_v30 = vpop.f32.mrf.mxu1 }
 0x33e   : > { %v1977_v21 = vpop.f32.mrf.mxu3  ;;  %v8006_v51 = vadd.f32 %v2135_v37, %v1970_v55  ;;  %v8008_v35 = vadd.f32 %v2097_v4, %v1932_v30  ;;  %v3614_v55 = vrot.slane %v7673_v47, 2 }
 0x340   : > { %v3615_v48 = vsel %vm3209_vm14, %v3612_v5, %v3614_v55 }
 0x343   : > { %2318 = vmatmul.bf16.gmra.mxu3 %v7422_v42  ;;  %v2887_v42 = vsel %vm2816_vm1, %v2877_v23, %v2886_v13  ;;  %v2572_v23 = vrot.slane %v7605_v56, 1 }
 0x345   : > { %v2137_v10 = vpop.f32.mrf.mxu2  ;;  %v8012_v8 = vpop.f32.mrf.mxu1  ;;  %v2573_v20 = vsel %vm2171_vm13, %v2570_v58, %v2572_v23  ;;  %v2901_v58 = vshll.u32 %v7618_v9, 16 }
 0x346   : > { %v1980_v61 = vpop.f32.mrf.mxu3  ;;  %v8014_v52 = vadd.f32 %v2137_v10, %v1972_v32  ;;  %v2889_v32 = vshrl.u32 %v7605_v56, 16 }
 0x348   : > { %2698 = vmatmul.bf16.gmra.mxu1 %v2571_v54  ;;  %v2891_v30 = vrot.slane %v2889_v32, 1  ;;  %v6073_v32 = vld [vmem:[%s8860_s7 + $0x1d8] sm:$0xff] }
 0x349   : > { %4095 = vmatpush.bf16.msra.mxu1 %v6073_v32 }
 0x34a   : > { %3091 = vmatmul.bf16.gmra.mxu2 %v2887_v42  ;;  %v2895_v16 = vor.u32 %v2894_v53, %v2891_v30  ;;  %v8053_v30 = vpop.f32.mrf.mxu0  ;;  %v9101_v53 = vld [vmem:[#allocation20_spill] sm:$0xff] }
 0x34b   : > { %9100 = vst [vmem:[#allocation68_spill] sm:$0xff] %v8053_v30 }
 0x34c   : > { %3751 = vmatmul.bf16.gmra.mxu0 %v3615_v48  ;;  %v2896_v42 = vsel %vm2816_vm1, %v2886_v13, %v2895_v16 }
 0x34d   : > { %v2140_v41 = vpop.f32.mrf.mxu2  ;;  %v8023_v4 = vpop.f32.mrf.mxu1 }
 0x34e   : > { %v1982_v47 = vpop.f32.mrf.mxu3  ;;  %v8027_v37 = vadd.f32 %v2140_v41, %v1975_v14  ;;  %v3616_v14 = vrot.slane %v7689_v25, 2 }
 0x350   : > { %v3617_v56 = vsel %vm3209_vm14, %v3614_v55, %v3616_v14  ;;  %v2903_v55 = vrot.slane %v2901_v58, 2 }
 0x352   : > { %v8067_v32 = vpop.f32.mrf.mxu0 }
 0x353   : > { %2323 = vmatmul.bf16.gmra.mxu3 %v7430_v57  ;;  %v6081_v57 = vld [vmem:[%s8860_s7 + $0x218] sm:$0xff]  ;;  %9103 = vst [vmem:[#allocation69_spill] sm:$0xff] %v8067_v32 }
 0x354   : > { %4355 = vmatpush.bf16.msra.mxu2 %v6081_v57 }
 0x355   : > { %v2142_v15 = vpop.f32.mrf.mxu2  ;;  %v8031_v5 = vpop.f32.mrf.mxu1 }
 0x356   : > { %v2284_v60 = vpop.f32.mrf.mxu3  ;;  %v8033_v10 = vadd.f32 %v2142_v15, %v1977_v21  ;;  %v2574_v15 = vrot.slane %v7618_v9, 1 }
 0x357   : > { %v2374_v54 = vadd.f32 %v2284_v60, %v7838_v1  ;;  %v2898_v1 = vshrl.u32 %v7618_v9, 16  ;;  %v6039_v9 = vld [vmem:[%s8860_s7 + $0x150] sm:$0xff] }
 0x358   : > { %2703 = vmatmul.bf16.gmra.mxu1 %v2573_v20  ;;  %3318 = vmatpush.bf16.msra.mxu3 %v6039_v9 }
 0x359   : > { %v2900_v39 = vrot.slane %v2898_v1, 1  ;;  %v3618_v1 = vrot.slane %v7707_v34, 2 }
 0x35a   : > { %3096 = vmatmul.bf16.gmra.mxu2 %v2896_v42 }
 0x35b   : > { %v2904_v20 = vor.u32 %v2903_v55, %v2900_v39 }
 0x35c   : > { %3756 = vmatmul.bf16.gmra.mxu0 %v3617_v56 }
 0x35d   : > { %v2145_v21 = vpop.f32.mrf.mxu2  ;;  %v8043_v48 = vpop.f32.mrf.mxu1  ;;  %v2905_v58 = vsel %vm2816_vm1, %v2895_v16, %v2904_v20 }
 0x35e   : > { %v2286_v25 = vpop.f32.mrf.mxu3  ;;  %v8047_v41 = vadd.f32 %v2145_v21, %v1980_v61  ;;  %v2575_v21 = vsel %vm2171_vm13, %v2572_v23, %v2574_v15 }
 0x35f   : > { %v2375_v13 = vadd.f32 %v2286_v25, %v7856_v12  ;;  %v3619_v25 = vsel %vm3209_vm14, %v3616_v14, %v3618_v1 }
 0x363   : > { %2328 = vmatmul.bf16.gmra.mxu3 %v9101_v53 }
 0x365   : > { %v2147_v60 = vpop.f32.mrf.mxu2  ;;  %v2669_v42 = vpop.f32.mrf.mxu1 }
 0x366   : > { %v2289_v61 = vpop.f32.mrf.mxu3  ;;  %v8057_v57 = vadd.f32 %v2147_v60, %v1982_v47  ;;  %v2759_v12 = vadd.f32 %v2669_v42, %v2374_v54  ;;  %v9104_v54 = vld [vmem:[#allocation21_spill] sm:$0xff] }
 0x367   : > { %v2376_v56 = vadd.f32 %v2289_v61, %v7869_v31  ;;  %v2907_v23 = vshrl.u32 %v9104_v54, 16  ;;  %v2910_v34 = vshll.u32 %v9104_v54, 16  ;;  %v9105_v61 = vld [vmem:[#allocation3_spill] sm:$0xff]  ;;  %v2576_v14 = vrot.slane %v9104_v54, 1 }
 0x368   : > { %9102 = vst [vmem:[#allocation20_spill] sm:$0xff] %v8057_v57  ;;  %2708 = vmatmul.bf16.gmra.mxu1 %v2575_v21 }
 0x369   : > { %v2909_v60 = vrot.slane %v2907_v23, 1  ;;  %v2912_v42 = vrot.slane %v2910_v34, 2 }
 0x36a   : > { %3101 = vmatmul.bf16.gmra.mxu2 %v2905_v58 }
 0x36b   : > { %v2913_v58 = vor.u32 %v2912_v42, %v2909_v60 }
 0x36c   : > { %3761 = vmatmul.bf16.gmra.mxu0 %v3619_v25  ;;  %v8076_v25 = vpop.f32.mrf.mxu0 }
 0x36d   : > { %v3062_v47 = vpop.f32.mrf.mxu2  ;;  %v2671_v31 = vpop.f32.mrf.mxu1 }
 0x36e   : > { %v2291_v39 = vpop.f32.mrf.mxu3  ;;  %v8071_v55 = vadd.f32 %v3062_v47, %v2759_v12  ;;  %v2760_v16 = vadd.f32 %v2671_v31, %v2375_v13  ;;  %v2577_v13 = vsel %vm2171_vm13, %v2574_v15, %v2576_v14  ;;  %v2914_v31 = vsel %vm2816_vm1, %v2904_v20, %v2913_v58  ;;  %v6080_v20 = vld [vmem:[%s8860_s7 + $0x210] sm:$0xff] }
 0x36f   : > { %v2377_v53 = vadd.f32 %v2291_v39, %v7881_v7  ;;  %v9106_v7 = vld [vmem:[#allocation36_spill] sm:$0xff]  ;;  %4356 = vmatpush.bf16.msra.mxu2 %v6080_v20 }
 0x370   : > { %v3620_v47 = vrot.slane %v9106_v7, 2  ;;  %v9107_v39 = vld [vmem:[#allocation24_spill] sm:$0xff] }
 0x371   : > { %v2916_v60 = vshrl.u32 %v9107_v39, 16 }
 0x372   : > { %v3621_v54 = vsel %vm3209_vm14, %v3618_v1, %v3620_v47 }
 0x373   : > { %2333 = vmatmul.bf16.gmra.mxu3 %v9105_v61  ;;  %v2918_v1 = vrot.slane %v2916_v60, 1  ;;  %v9109_v60 = vld [vmem:[#allocation40_spill] sm:$0xff] }
 0x375   : > { %v3064_v21 = vpop.f32.mrf.mxu2  ;;  %v2674_v9 = vpop.f32.mrf.mxu1 }
 0x376   : > { %v2294_v32 = vpop.f32.mrf.mxu3  ;;  %v8078_v30 = vadd.f32 %v3064_v21, %v2760_v16  ;;  %v2761_v57 = vadd.f32 %v2674_v9, %v2376_v56  ;;  %v2919_v16 = vshll.u32 %v9107_v39, 16  ;;  %v9108_v21 = vld [vmem:[#allocation6_spill] sm:$0xff]  ;;  %v2578_v9 = vrot.slane %v9107_v39, 1 }
 0x377   : > { %v2378_v12 = vadd.f32 %v2294_v32, %v7889_v29  ;;  %v8093_v32 = vpop.f32.mrf.mxu0 }
 0x378   : > { %2713 = vmatmul.bf16.gmra.mxu1 %v2577_v13  ;;  %v2921_v61 = vrot.slane %v2919_v16, 2  ;;  %v3622_v16 = vrot.slane %v9109_v60, 2 }
 0x37a   : > { %3106 = vmatmul.bf16.gmra.mxu2 %v2914_v31  ;;  %v2922_v13 = vor.u32 %v2921_v61, %v2918_v1  ;;  %v3623_v20 = vsel %vm3209_vm14, %v3620_v47, %v3622_v16  ;;  %v9111_v47 = vld [vmem:[#allocation4_spill] sm:$0xff] }
 0x37c   : > { %3766 = vmatmul.bf16.gmra.mxu0 %v3621_v54  ;;  %v2923_v39 = vsel %vm2816_vm1, %v2913_v58, %v2922_v13  ;;  %v6038_v58 = vld [vmem:[%s8860_s7 + $0x148] sm:$0xff] }
 0x37d   : > { %v3067_v23 = vpop.f32.mrf.mxu2  ;;  %v2676_v34 = vpop.f32.mrf.mxu1  ;;  %3319 = vmatpush.bf16.msra.mxu3 %v6038_v58 }
 0x37e   : > { %v2296_v56 = vpop.f32.mrf.mxu3  ;;  %v8087_v42 = vadd.f32 %v3067_v23, %v2761_v57  ;;  %v2762_v29 = vadd.f32 %v2676_v34, %v2377_v53  ;;  %v6072_v57 = vld [vmem:[%s8860_s7 + $0x1d0] sm:$0xff]  ;;  %v2579_v34 = vsel %vm2171_vm13, %v2576_v14, %v2578_v9 }
 0x37f   : > { %v2379_v15 = vadd.f32 %v2296_v56, %v7899_v17  ;;  %4096 = vmatpush.bf16.msra.mxu1 %v6072_v57  ;;  %v8106_v56 = vpop.f32.mrf.mxu0 }
 0x383   : > { %2338 = vmatmul.bf16.gmra.mxu3 %v9108_v21 }
 0x385   : > { %v3069_v53 = vpop.f32.mrf.mxu2  ;;  %v2679_v17 = vpop.f32.mrf.mxu1 }
 0x386   : > { %v2299_v7 = vpop.f32.mrf.mxu3  ;;  %v8100_v31 = vadd.f32 %v3069_v53, %v2762_v29  ;;  %v2763_v54 = vadd.f32 %v2679_v17, %v2378_v12  ;;  %v9110_v29 = vld [vmem:[#allocation29_spill] sm:$0xff] }
 0x387   : > { %v2380_v23 = vadd.f32 %v2299_v7, %v7911_v63  ;;  %v2925_v21 = vshrl.u32 %v9110_v29, 16  ;;  %v2928_v12 = vshll.u32 %v9110_v29, 16  ;;  %v8119_v60 = vpop.f32.mrf.mxu0 }
 0x388   : > { %2718 = vmatmul.bf16.gmra.mxu1 %v2579_v34  ;;  %v2580_v34 = vrot.slane %v9110_v29, 1  ;;  %9112 = vst [vmem:[#allocation21_spill] sm:$0xff] %v8119_v60 }
 0x389   : > { %v2927_v17 = vrot.slane %v2925_v21, 1  ;;  %v2930_v7 = vrot.slane %v2928_v12, 2  ;;  %v3624_v21 = vrot.slane %v7751_v18, 2  ;;  %v6257_v18 = vld [vmem:[#allocation2 + $0x70] sm:$0xff] }
 0x38a   : > { %3111 = vmatmul.bf16.gmra.mxu2 %v2923_v39 }
 0x38b   : > { %v3625_v29 = vsel %vm3209_vm14, %v3622_v16, %v3624_v21 }
 0x38c   : > { %3771 = vmatmul.bf16.gmra.mxu0 %v3623_v20  ;;  %v2931_v20 = vor.u32 %v2930_v7, %v2927_v17  ;;  %v8128_v7 = vld [vmem:[#allocation2 + $0x70] sm:$0xff] }
 0x38d   : > { %v3072_v1 = vpop.f32.mrf.mxu2  ;;  %v2681_v61 = vpop.f32.mrf.mxu1  ;;  %v2582_v60 = vrot.slane %v8128_v7, 1 }
 0x38e   : > { %v2301_v63 = vpop.f32.mrf.mxu3  ;;  %v8111_v57 = vadd.f32 %v3072_v1, %v2763_v54  ;;  %v2764_v14 = vadd.f32 %v2681_v61, %v2379_v15  ;;  %v2932_v12 = vsel %vm2816_vm1, %v2922_v13, %v2931_v20 }
 0x38f   : > { %v2381_v53 = vadd.f32 %v2301_v63, %v7921_v33  ;;  %v2581_v63 = vsel %vm2171_vm13, %v2578_v9, %v2580_v34 }
 0x393   : > { %2343 = vmatmul.bf16.gmra.mxu3 %v9111_v47 }
 0x395   : > { %v3074_v39 = vpop.f32.mrf.mxu2  ;;  %v2684_v54 = vpop.f32.mrf.mxu1 }
 0x396   : > { %v2304_v1 = vpop.f32.mrf.mxu3  ;;  %v8121_v15 = vadd.f32 %v3074_v39, %v2764_v14  ;;  %v2765_v33 = vadd.f32 %v2684_v54, %v2380_v23  ;;  %v2934_v14 = vshrl.u32 %v8128_v7, 16  ;;  %v2937_v23 = vshll.u32 %v8128_v7, 16  ;;  %v6071_v7 = vld [vmem:[%s8860_s7 + $0x1c8] sm:$0xff] }
 0x397   : > { %v2382_v61 = vadd.f32 %v2304_v1, %v7930_v0  ;;  %v8132_v0 = vpop.f32.mrf.mxu0  ;;  %v2199_v39 = vrot.slane %v6257_v18, 1  ;;  %4097 = vmatpush.bf16.msra.mxu1 %v6071_v7 }
 0x398   : > { %2723 = vmatmul.bf16.gmra.mxu1 %v2581_v63  ;;  %9113 = vst [vmem:[#allocation3_spill] sm:$0xff] %v8132_v0  ;;  %v2936_v16 = vrot.slane %v2934_v14, 1  ;;  %v2939_v1 = vrot.slane %v2937_v23, 2  ;;  %v9115_v63 = vld [vmem:[#allocation18_spill] sm:$0xff]  ;;  %v6079_v0 = vld [vmem:[%s8860_s7 + $0x208] sm:$0xff]  ;;  %v2583_v23 = vsel %vm2171_vm13, %v2580_v34, %v2582_v60 }
 0x399   : > { %4357 = vmatpush.bf16.msra.mxu2 %v6079_v0 }
 0x39a   : > { %3116 = vmatmul.bf16.gmra.mxu2 %v2932_v12  ;;  %v9116_v12 = vrot.slane %v9115_v63, 1  ;;  %v6259_v63 = vld [vmem:[#allocation2 + $0x78] sm:$0xff] }
 0x39c   : > { %3776 = vmatmul.bf16.gmra.mxu0 %v3625_v29  ;;  %v2200_v29 = vsel %vm2171_vm13, %v9116_v12, %v2199_v39  ;;  %v2201_v12 = vrot.slane %v6259_v63, 1  ;;  %v6261_v63 = vld [vmem:[%s8860_s7 + $0x1b0] sm:$0xff] }
 0x39d   : > { %v3077_v58 = vpop.f32.mrf.mxu2  ;;  %v2686_v17 = vpop.f32.mrf.mxu1 }
 0x39e   : > { %v2306_v9 = vpop.f32.mrf.mxu3  ;;  %v8134_v47 = vadd.f32 %v3077_v58, %v2765_v33  ;;  %v2766_v13 = vadd.f32 %v2686_v17, %v2381_v53  ;;  %v2940_v58 = vor.u32 %v2939_v1, %v2936_v16 }
 0x39f   : > { %v2383_v54 = vadd.f32 %v2306_v9, %v7940_v19  ;;  %v3626_v9 = vrot.slane %v7771_v2, 2  ;;  %v8152_v18 = vpop.f32.mrf.mxu0 }
 0x3a0   : > { %9114 = vst [vmem:[#allocation36_spill] sm:$0xff] %v8134_v47  ;;  %v2941_v16 = vsel %vm2816_vm1, %v2931_v20, %v2940_v58 }
 0x3a1   : > { %v3627_v0 = vsel %vm3209_vm14, %v3624_v21, %v3626_v9 }
 0x3a3   : > { %2348 = vmatmul.bf16.gmra.mxu3 %v2200_v29 }
 0x3a5   : > { %v3079_v33 = vpop.f32.mrf.mxu2  ;;  %v2689_v47 = vpop.f32.mrf.mxu1 }
 0x3a6   : > { %v2309_v53 = vpop.f32.mrf.mxu3  ;;  %v8144_v17 = vadd.f32 %v3079_v33, %v2766_v13  ;;  %v2767_v19 = vadd.f32 %v2689_v47, %v2382_v61  ;;  %v8156_v47 = vld [vmem:[#allocation2 + $0x78] sm:$0xff] }
 0x3a7   : > { %v2384_v14 = vadd.f32 %v2309_v53, %v7949_v28  ;;  %v2943_v2 = vshrl.u32 %v8156_v47, 16  ;;  %v2946_v34 = vshll.u32 %v8156_v47, 16  ;;  %v8163_v21 = vpop.f32.mrf.mxu0  ;;  %v2584_v7 = vrot.slane %v8156_v47, 1 }
 0x3a8   : > { %2728 = vmatmul.bf16.gmra.mxu1 %v2583_v23  ;;  %v2202_v23 = vsel %vm2171_vm13, %v2199_v39, %v2201_v12 }
 0x3a9   : > { %v2945_v33 = vrot.slane %v2943_v2, 1  ;;  %v2948_v53 = vrot.slane %v2946_v34, 2  ;;  %v6260_v2 = vld [vmem:[%s8860_s7 + $0x1b8] sm:$0xff]  ;;  %v2585_v47 = vsel %vm2171_vm13, %v2582_v60, %v2584_v7  ;;  %v8931_v34 = vrot.slane %v7786_v6, 2 }
 0x3aa   : > { %3121 = vmatmul.bf16.gmra.mxu2 %v2941_v16  ;;  %v6037_v16 = vld [vmem:[%s8860_s7 + $0x140] sm:$0xff] }
 0x3ab   : > { %3320 = vmatpush.bf16.msra.mxu3 %v6037_v16 }
 0x3ac   : > { %3781 = vmatmul.bf16.gmra.mxu0 %v3627_v0  ;;  %v2949_v0 = vor.u32 %v2948_v53, %v2945_v33  ;;  %v8187_v33 = vld [vmem:[#allocation2 + $0x80] sm:$0xff] }
 0x3ad   : > { %v3082_v61 = vpop.f32.mrf.mxu2  ;;  %v2691_v28 = vpop.f32.mrf.mxu1  ;;  %v2952_v53 = vshrl.u32 %v8187_v33, 16 }
 0x3ae   : > { %v2311_v13 = vpop.f32.mrf.mxu3  ;;  %v8160_v1 = vadd.f32 %v3082_v61, %v2767_v19  ;;  %v2768_v29 = vadd.f32 %v2691_v28, %v2383_v54 }
 0x3af   : > { %v2385_v20 = vadd.f32 %v2311_v13, %v7963_v59  ;;  %6228 = vmatpush.bf16.msrb.mxu3 %v6260_v2  ;;  %v2950_v13 = vsel %vm2816_vm1, %v2940_v58, %v2949_v0  ;;  %v2955_v58 = vshll.u32 %v8187_v33, 16 }
 0x3b3   : > { %2353 = vmatmul.bf16.gmra.mxu3 %v2202_v23 }
 0x3b4   : > { %6229 = vmatpush.bf16.msrb.mxu3 %v6261_v63 }
 0x3b5   : > { %v3084_v19 = vpop.f32.mrf.mxu2  ;;  %v2694_v61 = vpop.f32.mrf.mxu1 }
 0x3b6   : > { %v2314_v54 = vpop.f32.mrf.mxu3  ;;  %v8170_v28 = vadd.f32 %v3084_v19, %v2768_v29  ;;  %v2769_v59 = vadd.f32 %v2694_v61, %v2384_v14  ;;  %v3629_v14 = vsel %vm3209_vm14, %v3626_v9, %v8931_v34  ;;  %v8185_v29 = vpop.f32.mrf.mxu0  ;;  %v6263_v19 = vld [vmem:[#allocation2 + $0x80] sm:$0xff]  ;;  %v6264_v9 = vld [vmem:[%s8860_s7 + $0x1a8] sm:$0xff] }
 0x3b7   : > { %v2386_v39 = vadd.f32 %v2314_v54, %v7974_v38  ;;  %v2203_v61 = vrot.slane %v6263_v19, 1 }
 0x3b8   : > { %2733 = vmatmul.bf16.gmra.mxu1 %v2585_v47  ;;  %6230 = vmatpush.bf16.msrb.mxu3 %v6264_v9  ;;  %v2954_v47 = vrot.slane %v2952_v53, 1 }
 0x3b9   : > { %v2204_v63 = vsel %vm2171_vm13, %v2201_v12, %v2203_v61 }
 0x3ba   : > { %3126 = vmatmul.bf16.gmra.mxu2 %v2950_v13  ;;  %v2957_v13 = vrot.slane %v2955_v58, 2 }
 0x3bc   : > { %3786 = vmatmul.bf16.gmra.mxu0 %v3629_v14  ;;  %v6265_v14 = vld [vmem:[%s8860_s7 + $0x1a0] sm:$0xff] }
 0x3bd   : > { %v3087_v38 = vpop.f32.mrf.mxu2  ;;  %v2696_v60 = vpop.f32.mrf.mxu1  ;;  %6231 = vmatpush.bf16.msrb.mxu3 %v6265_v14 }
 0x3be   : > { %v2316_v23 = vpop.f32.mrf.mxu3  ;;  %v8191_v16 = vadd.f32 %v3087_v38, %v2769_v59  ;;  %v2770_v54 = vadd.f32 %v2696_v60, %v2385_v20  ;;  %v2586_v59 = vrot.slane %v8187_v33, 1  ;;  %v2958_v38 = vor.u32 %v2957_v13, %v2954_v47  ;;  %v6078_v33 = vld [vmem:[%s8860_s7 + $0x200] sm:$0xff] }
 0x3bf   : > { %v2387_v2 = vadd.f32 %v2316_v23, %v7984_v3  ;;  %v6266_v3 = vld [vmem:[%s8860_s7 + $0x198] sm:$0xff]  ;;  %4358 = vmatpush.bf16.msra.mxu2 %v6078_v33  ;;  %v6267_v23 = vld [vmem:[%s8860_s7 + $0x190] sm:$0xff] }
 0x3c0   : > { %v2587_v53 = vsel %vm2171_vm13, %v2584_v7, %v2586_v59  ;;  %v2959_v58 = vsel %vm2816_vm1, %v2949_v0, %v2958_v38 }
 0x3c1   : > { %6232 = vmatpush.bf16.msrb.mxu3 %v6266_v3 }
 0x3c3   : > { %2358 = vmatmul.bf16.gmra.mxu3 %v2204_v63 }
 0x3c5   : > { %v3089_v20 = vpop.f32.mrf.mxu2  ;;  %v2699_v60 = vpop.f32.mrf.mxu1  ;;  %6233 = vmatpush.bf16.msrb.mxu3 %v6267_v23 }
 0x3c6   : > { %v2319_v19 = vpop.f32.mrf.mxu3  ;;  %v8202_v34 = vadd.f32 %v3089_v20, %v2770_v54  ;;  %v2771_v9 = vadd.f32 %v2699_v60, %v2386_v39  ;;  %v6070_v39 = vld [vmem:[%s8860_s7 + $0x1c0] sm:$0xff]  ;;  %v6268_v54 = vld [vmem:[#allocation2 + $0x88] sm:$0xff] }
 0x3c7   : > { %v2388_v12 = vadd.f32 %v2319_v19, %v7992_v24  ;;  %4098 = vmatpush.bf16.msra.mxu1 %v6070_v39  ;;  %v2961_v47 = vshrl.u32 %v6268_v54, 16  ;;  %v2964_v13 = vshll.u32 %v6268_v54, 16  ;;  %v6269_v20 = vld [vmem:[%s8860_s7 + $0x188] sm:$0xff] }
 0x3c8   : > { %2738 = vmatmul.bf16.gmra.mxu1 %v2587_v53  ;;  %v9117_v53 = vrot.slane %v7473_v62, 1 }
 0x3c9   : > { %6234 = vmatpush.bf16.msrb.mxu3 %v6269_v20  ;;  %v2963_v19 = vrot.slane %v2961_v47, 1  ;;  %v2966_v3 = vrot.slane %v2964_v13, 2 }
 0x3ca   : > { %3131 = vmatmul.bf16.gmra.mxu2 %v2959_v58  ;;  %v2206_v33 = vsel %vm2171_vm13, %v2203_v61, %v9117_v53  ;;  %v6270_v58 = vld [vmem:[%s8860_s7 + $0x180] sm:$0xff] }
 0x3cb   : > { %v2967_v23 = vor.u32 %v2966_v3, %v2963_v19 }
 0x3cd   : > { %v3092_v24 = vpop.f32.mrf.mxu2  ;;  %v2701_v7 = vpop.f32.mrf.mxu1  ;;  %6235 = vmatpush.bf16.msrb.mxu3 %v6270_v58  ;;  %v2968_v13 = vsel %vm2816_vm1, %v2958_v38, %v2967_v23  ;;  %v3188_v38 = vld [vmem:[#allocation2 + $0x8] sm:$0xc] }
 0x3ce   : > { %v2321_v63 = vpop.f32.mrf.mxu3  ;;  %v8219_v14 = vadd.f32 %v3092_v24, %v2771_v9  ;;  %v2772_v0 = vadd.f32 %v2701_v7, %v2387_v2  ;;  %v2588_v2 = vrot.slane %v6268_v54, 1  ;;  %v2101_v9 = vadd.f32 %v7854_v44, %v8012_v8  ;;  %v6271_v44 = vld [vmem:[#allocation2 + $0x90] sm:$0xff] }
 0x3cf   : > { %v2389_v60 = vadd.f32 %v2321_v63, %v8008_v35  ;;  %v2103_v54 = vadd.f32 %v7866_v40, %v8023_v4  ;;  %v2970_v8 = vshrl.u32 %v6271_v44, 16  ;;  %v2973_v19 = vshll.u32 %v6271_v44, 16 }
 0x3d0   : > { %v2589_v61 = vsel %vm2171_vm13, %v2586_v59, %v2588_v2  ;;  %v9118_v59 = vld [vmem:[#allocation7_spill] sm:$0xff] }
 0x3d1   : > { %v2975_v58 = vrot.slane %v2973_v19, 2 }
 0x3d3   : > { %2363 = vmatmul.bf16.gmra.mxu3 %v2206_v33  ;;  %v2972_v33 = vrot.slane %v2970_v8, 1 }
 0x3d5   : > { %v3094_v39 = vpop.f32.mrf.mxu2  ;;  %v2704_v24 = vpop.f32.mrf.mxu1  ;;  %v2976_v4 = vor.u32 %v2975_v58, %v2972_v33 }
 0x3d6   : > { %v2324_v35 = vpop.f32.mrf.mxu3  ;;  %v8233_v7 = vadd.f32 %v3094_v39, %v2772_v0  ;;  %v2773_v47 = vadd.f32 %v2704_v24, %v2388_v12  ;;  %v2106_v39 = vadd.f32 %v7879_v50, %v8031_v5  ;;  %v2108_v5 = vadd.f32 %v7886_v36, %v8043_v48 }
 0x3d7   : > { %v2390_v62 = vadd.f32 %v2324_v35, %v2101_v9  ;;  %v2590_v9 = vrot.slane %v6271_v44, 1  ;;  %v9119_v44 = vunpack.c.l.b16 %v7864_v26 }
 0x3d8   : > { %2743 = vmatmul.bf16.gmra.mxu1 %v2589_v61 }
 0x3da   : > { %3136 = vmatmul.bf16.gmra.mxu2 %v2968_v13 }
 0x3dd   : > { %v3097_v63 = vpop.f32.mrf.mxu2  ;;  %v2706_v20 = vpop.f32.mrf.mxu1 }
 0x3de   : > { %v2326_v3 = vpop.f32.mrf.mxu3  ;;  %v8239_v53 = vadd.f32 %v3097_v63, %v2773_v47  ;;  %v2774_v0 = vadd.f32 %v2706_v20, %v2389_v60  ;;  %v3207_v47 = vunpack.c.l.b16 %v3188_v38  ;;  %v2591_v60 = vsel %vm2171_vm13, %v2588_v2, %v2590_v9 }
 0x3df   : > { %v2391_v12 = vadd.f32 %v2326_v3, %v2103_v54  ;;  %v2446_v54 = vld [vmem:[#allocation2 + $0x98] sm:$0x1]  ;;  %v2977_v20 = vsel %vm2816_vm1, %v2967_v23, %v2976_v4 }
 0x3e0   : > { %v3208_v8 = vpack.c.b16 %v9119_v44, %v3207_v47  ;;  %v2537_v50 = vunpack.c.l.b16 %v2446_v54  ;;  %v9121_v44 = vld [vmem:[#allocation9_spill] sm:$0xff] }
 0x3e2   : > { %v3210_v58 = vrot.slane %v3208_v8, 2  ;;  %v2556_v38 = vpack.c.b16 %v2537_v50, %v2537_v50  ;;  %v3856_v8 = vshrl.u32 %v9121_v44, 16  ;;  %v3859_v50 = vshll.u32 %v9121_v44, 16 }
 0x3e3   : > { %2368 = vmatmul.bf16.gmra.mxu3 %v9118_v59 }
 0x3e4   : > { %v2592_v36 = vrot.slane %v2556_v38, 1  ;;  %v3858_v38 = vrot.slane %v3856_v8, 2 }
 0x3e5   : > { %v3099_v40 = vpop.f32.mrf.mxu2  ;;  %v2709_v24 = vpop.f32.mrf.mxu1 }
 0x3e6   : > { %v2329_v35 = vpop.f32.mrf.mxu3  ;;  %v8244_v61 = vadd.f32 %v3099_v40, %v2774_v0  ;;  %v2775_v13 = vadd.f32 %v2709_v24, %v2390_v62  ;;  %v2979_v62 = vshrl.u32 %v7620_v22, 16  ;;  %v2982_v0 = vshll.u32 %v7620_v22, 16 }
 0x3e7   : > { %v2392_v63 = vadd.f32 %v2329_v35, %v2106_v39  ;;  %v9120_v40 = vrot.slane %v7488_v11, 2  ;;  %v4226_v11 = vld [vmem:[#allocation2 + $0x10] sm:$0x8] }
 0x3e8   : > { %2748 = vmatmul.bf16.gmra.mxu1 %v2591_v60  ;;  %v2981_v39 = vrot.slane %v2979_v62, 1  ;;  %v2984_v26 = vrot.slane %v2982_v0, 2  ;;  %v6272_v62 = vld [vmem:[#allocation2 + $0x18] sm:$0xff] }
 0x3e9   : > { %v3212_v24 = vsel %vm3209_vm14, %v3210_v58, %v9120_v40  ;;  %v3864_v0 = vshrl.u32 %v6272_v62, 16  ;;  %v4249_v8 = vrot.slane %v6272_v62, 3 }
 0x3ea   : > { %3141 = vmatmul.bf16.gmra.mxu2 %v2977_v20  ;;  %v2985_v35 = vor.u32 %v2984_v26, %v2981_v39  ;;  %v9123_v39 = vld [vmem:[#allocation5_spill] sm:$0xff] }
 0x3eb   : > { %v9124_v26 = vunpack.c.l.b16 %v9123_v39 }
 0x3ec   : > { %v2986_v20 = vsel %vm2816_vm1, %v2976_v4, %v2985_v35  ;;  %v3861_v4 = vrot.slane %v3859_v50, 3 }
 0x3ed   : > { %v3102_v19 = vpop.f32.mrf.mxu2  ;;  %v2711_v3 = vpop.f32.mrf.mxu1 }
 0x3ee   : > { %v2331_v33 = vpop.f32.mrf.mxu3  ;;  %v8254_v2 = vadd.f32 %v3102_v19, %v2775_v13  ;;  %v2776_v59 = vadd.f32 %v2711_v3, %v2391_v12  ;;  %v2593_v12 = vsel %vm2171_vm13, %v2590_v9, %v2592_v36  ;;  %v4245_v3 = vunpack.c.l.b16 %v4226_v11  ;;  %v9122_v9 = vld [vmem:[#allocation63_spill] sm:$0xff] }
 0x3ef   : > { %v2393_v23 = vadd.f32 %v2331_v33, %v2108_v5  ;;  %v3867_v33 = vshll.u32 %v6272_v62, 16  ;;  %v3862_v35 = vor.u32 %v3861_v4, %v3858_v38  ;;  %v9126_v4 = vld [vmem:[#allocation64_spill] sm:$0xff]  ;;  %v9127_v62 = vld [vmem:[#allocation11_spill] sm:$0xff] }
 0x3f0   : > { %v4246_v40 = vpack.c.b16 %v9124_v26, %v4245_v3 }
 0x3f1   : > { %v3869_v36 = vrot.slane %v3867_v33, 3 }
 0x3f3   : > { %3321 = vmatmul.bf16.vlgmr.msra.gmra.mxu3 %v3212_v24  ;;  %v3866_v24 = vrot.slane %v3864_v0, 2 }
 0x3f5   : > { %v3104_v48 = vpop.f32.mrf.mxu2  ;;  %v2714_v47 = vpop.f32.mrf.mxu1 }
 0x3f6   : > { %v2334_v60 = vpop.f32.mrf.mxu3  ;;  %v8259_v22 = vadd.f32 %v3104_v48, %v2776_v59  ;;  %v2777_v13 = vadd.f32 %v2714_v47, %v2392_v63  ;;  %v9125_v48 = vld [vmem:[#allocation8_spill] sm:$0xff] }
 0x3f7   : > { %v2394_v54 = vadd.f32 %v2334_v60, %v7897_v27  ;;  %v4248_v60 = vrot.slane %v4246_v40, 3 }
 0x3f8   : > { %2753 = vmatmul.bf16.gmra.mxu1 %v2593_v12 }
 0x3fa   : > { %3146 = vmatmul.bf16.gmra.mxu2 %v2986_v20  ;;  %v3870_v20 = vor.u32 %v3869_v36, %v3866_v24 }
 0x3fc   : > { %v3871_v50 = vsel %vm3854_vm0, %v3862_v35, %v3870_v20 }
 0x3fd   : > { %v3107_v5 = vpop.f32.mrf.mxu2  ;;  %v2716_v19 = vpop.f32.mrf.mxu1 }
 0x3fe   : > { %v2336_v63 = vpop.f32.mrf.mxu3  ;;  %v8266_v58 = vadd.f32 %v3107_v5, %v2777_v13  ;;  %v2778_v27 = vadd.f32 %v2716_v19, %v2393_v23  ;;  %v4250_v5 = vsel %vm4247_vm15, %v4248_v60, %v4249_v8  ;;  %v6273_v19 = vld [vmem:[#allocation2 + $0x20] sm:$0xff] }
 0x3ff   : > { %v2395_v59 = vadd.f32 %v2336_v63, %v9122_v9  ;;  %v3873_v3 = vshrl.u32 %v6273_v19, 16  ;;  %v3876_v0 = vshll.u32 %v6273_v19, 16  ;;  %v4251_v24 = vrot.slane %v6273_v19, 3 }
 0x401   : > { %v3875_v39 = vrot.slane %v3873_v3, 2 }
 0x403   : > { %3326 = vmatmul.bf16.gmra.mxu3 %v9125_v48 }
 0x405   : > { %v3109_v47 = vpop.f32.mrf.mxu2  ;;  %v2719_v12 = vpop.f32.mrf.mxu1 }
 0x406   : > { %v2339_v11 = vpop.f32.mrf.mxu3  ;;  %v8272_v13 = vadd.f32 %v3109_v47, %v2778_v27  ;;  %v2779_v23 = vadd.f32 %v2719_v12, %v2394_v54 }
 0x407   : > { %v2396_v44 = vadd.f32 %v2339_v11, %v7919_v45  ;;  %v3878_v45 = vrot.slane %v3876_v0, 3  ;;  %v6274_v11 = vld [vmem:[#allocation2 + $0x28] sm:$0xff] }
 0x408   : > { %4099 = vmatmul.bf16.vlgmr.msra.gmra.mxu1 %v3871_v50  ;;  %v3885_v50 = vshll.u32 %v6274_v11, 16 }
 0x409   : > { %v3879_v26 = vor.u32 %v3878_v45, %v3875_v39  ;;  %v4253_v39 = vrot.slane %v6274_v11, 3 }
 0x40a   : > { %4359 = vmatmul.bf16.vlgmr.msra.gmra.mxu2 %v4250_v5 }
 0x40b   : > { %v3880_v12 = vsel %vm3854_vm0, %v3870_v20, %v3879_v26 }
 0x40d   : > { %v3112_v33 = vpop.f32.mrf.mxu2  ;;  %v2721_v63 = vpop.f32.mrf.mxu1 }
 0x40e   : > { %v2341_v9 = vpop.f32.mrf.mxu3  ;;  %v8277_v38 = vadd.f32 %v3112_v33, %v2779_v23  ;;  %v2780_v27 = vadd.f32 %v2721_v63, %v2395_v59  ;;  %v4252_v59 = vsel %vm4247_vm15, %v4249_v8, %v4251_v24  ;;  %v3882_v23 = vshrl.u32 %v6274_v11, 16  ;;  %v9128_v63 = vld [vmem:[#allocation65_spill] sm:$0xff]  ;;  %v9131_v11 = vld [vmem:[#allocation67_spill] sm:$0xff] }
 0x40f   : > { %v2397_v54 = vadd.f32 %v2341_v9, %v9126_v4 }
 0x413   : > { %3331 = vmatmul.bf16.gmra.mxu3 %v9127_v62 }
 0x415   : > { %v3114_v40 = vpop.f32.mrf.mxu2  ;;  %v2724_v36 = vpop.f32.mrf.mxu1 }
 0x416   : > { %v2344_v48 = vpop.f32.mrf.mxu3  ;;  %v8281_v35 = vadd.f32 %v3114_v40, %v2780_v27  ;;  %v2781_v47 = vadd.f32 %v2724_v36, %v2396_v44  ;;  %v3884_v44 = vrot.slane %v3882_v23, 2  ;;  %v3887_v27 = vrot.slane %v3885_v50, 3  ;;  %v9130_v36 = vld [vmem:[#allocation66_spill] sm:$0xff] }
 0x417   : > { %v2398_v60 = vadd.f32 %v2344_v48, %v7938_v43  ;;  %v9129_v43 = vld [vmem:[#allocation12_spill] sm:$0xff] }
 0x418   : > { %4104 = vmatmul.bf16.gmra.mxu1 %v3880_v12  ;;  %v3888_v20 = vor.u32 %v3887_v27, %v3884_v44 }
 0x41a   : > { %4364 = vmatmul.bf16.gmra.mxu2 %v4252_v59 }
 0x41d   : > { %v3117_v5 = vpop.f32.mrf.mxu2  ;;  %v2726_v3 = vpop.f32.mrf.mxu1 }
 0x41e   : > { %v2346_v0 = vpop.f32.mrf.mxu3  ;;  %v8286_v19 = vadd.f32 %v3117_v5, %v2781_v47  ;;  %v2782_v33 = vadd.f32 %v2726_v3, %v2397_v54  ;;  %v3889_v47 = vsel %vm3854_vm0, %v3879_v26, %v3888_v20  ;;  %v4254_v54 = vsel %vm4247_vm15, %v4251_v24, %v4253_v39  ;;  %v9133_v24 = vld [vmem:[#allocation16_spill] sm:$0xff] }
 0x41f   : > { %v2399_v9 = vadd.f32 %v2346_v0, %v9128_v63  ;;  %v9132_v0 = vld [vmem:[#allocation13_spill] sm:$0xff] }
 0x423   : > { %3336 = vmatmul.bf16.gmra.mxu3 %v9129_v43  ;;  %v3898_v43 = vsel %vm3854_vm0, %v3888_v20, %v9133_v24  ;;  %v9139_v24 = vld [vmem:[#allocation17_spill] sm:$0xff] }
 0x425   : > { %v3119_v4 = vpop.f32.mrf.mxu2  ;;  %v2729_v8 = vpop.f32.mrf.mxu1 }
 0x426   : > { %v2349_v45 = vpop.f32.mrf.mxu3  ;;  %v8290_v62 = vadd.f32 %v3119_v4, %v2782_v33  ;;  %v2783_v40 = vadd.f32 %v2729_v8, %v2398_v60  ;;  %v9134_v4 = vld [vmem:[#allocation10_spill] sm:$0xff] }
 0x427   : > { %v2400_v48 = vadd.f32 %v2349_v45, %v9130_v36  ;;  %v9135_v8 = vrot.slane %v9134_v4, 3 }
 0x428   : > { %4109 = vmatmul.bf16.gmra.mxu1 %v3889_v47 }
 0x42a   : > { %4369 = vmatmul.bf16.gmra.mxu2 %v4254_v54 }
 0x42d   : > { %v3122_v12 = vpop.f32.mrf.mxu2  ;;  %v2731_v59 = vpop.f32.mrf.mxu1 }
 0x42e   : > { %v2351_v23 = vpop.f32.mrf.mxu3  ;;  %v8295_v50 = vadd.f32 %v3122_v12, %v2783_v40  ;;  %v2784_v5 = vadd.f32 %v2731_v59, %v2399_v9  ;;  %v4256_v9 = vsel %vm4247_vm15, %v4253_v39, %v9135_v8  ;;  %v9137_v39 = vld [vmem:[#allocation25_spill] sm:$0xff] }
 0x42f   : > { %v2401_v3 = vadd.f32 %v2351_v23, %v9131_v11 }
 0x433   : > { %3341 = vmatmul.bf16.gmra.mxu3 %v9132_v0  ;;  %v9138_v0 = vld [vmem:[#allocation15_spill] sm:$0xff] }
 0x435   : > { %v3124_v33 = vpop.f32.mrf.mxu2  ;;  %v2734_v60 = vpop.f32.mrf.mxu1 }
 0x436   : > { %v2354_v63 = vpop.f32.mrf.mxu3  ;;  %v8299_v44 = vadd.f32 %v3124_v33, %v2784_v5  ;;  %v2785_v26 = vadd.f32 %v2734_v60, %v2400_v48  ;;  %v9136_v48 = vld [vmem:[#allocation14_spill] sm:$0xff] }
 0x437   : > { %v2402_v27 = vadd.f32 %v2354_v63, %v7982_v49 }
 0x438   : > { %4114 = vmatmul.bf16.gmra.mxu1 %v3898_v43 }
 0x43a   : > { %4374 = vmatmul.bf16.gmra.mxu2 %v4256_v9 }
 0x43d   : > { %v3127_v45 = vpop.f32.mrf.mxu2  ;;  %v2736_v40 = vpop.f32.mrf.mxu1 }
 0x43e   : > { %v2356_v36 = vpop.f32.mrf.mxu3  ;;  %v8307_v47 = vadd.f32 %v3127_v45, %v2785_v26  ;;  %v2786_v54 = vadd.f32 %v2736_v40, %v2401_v3  ;;  %v9140_v45 = vld [vmem:[#allocation27_spill] sm:$0xff] }
 0x43f   : > { %v2403_v12 = vadd.f32 %v2356_v36, %v7990_v46  ;;  %v9141_v40 = vld [vmem:[#allocation19_spill] sm:$0xff] }
 0x443   : > { %3346 = vmatmul.bf16.gmra.mxu3 %v9136_v48 }
 0x445   : > { %v3129_v49 = vpop.f32.mrf.mxu2  ;;  %v2739_v59 = vpop.f32.mrf.mxu1 }
 0x446   : > { %v2359_v23 = vpop.f32.mrf.mxu3  ;;  %v8311_v20 = vadd.f32 %v3129_v49, %v2786_v54  ;;  %v2787_v5 = vadd.f32 %v2739_v59, %v2402_v27  ;;  %v9142_v59 = vld [vmem:[#allocation22_spill] sm:$0xff] }
 0x447   : > { %v2404_v11 = vadd.f32 %v2359_v23, %v8006_v51 }
 0x448   : > { %4119 = vmatmul.bf16.gmra.mxu1 %v9137_v39 }
 0x44a   : > { %4379 = vmatmul.bf16.gmra.mxu2 %v9138_v0 }
 0x44d   : > { %v3132_v33 = vpop.f32.mrf.mxu2  ;;  %v2741_v60 = vpop.f32.mrf.mxu1 }
 0x44e   : > { %v2361_v63 = vpop.f32.mrf.mxu3  ;;  %v8316_v3 = vadd.f32 %v3132_v33, %v2787_v5  ;;  %v2788_v46 = vadd.f32 %v2741_v60, %v2403_v12  ;;  %v9144_v33 = vld [vmem:[#allocation32_spill] sm:$0xff]  ;;  %v9145_v60 = vld [vmem:[#allocation23_spill] sm:$0xff] }
 0x44f   : > { %v2405_v26 = vadd.f32 %v2361_v63, %v8014_v52 }
 0x453   : > { %3351 = vmatmul.bf16.gmra.mxu3 %v9139_v24 }
 0x455   : > { %v3134_v43 = vpop.f32.mrf.mxu2  ;;  %v2744_v4 = vpop.f32.mrf.mxu1 }
 0x456   : > { %v2364_v8 = vpop.f32.mrf.mxu3  ;;  %v8320_v27 = vadd.f32 %v3134_v43, %v2788_v46  ;;  %v2789_v51 = vadd.f32 %v2744_v4, %v2404_v11  ;;  %v9147_v43 = vld [vmem:[#allocation20_spill] sm:$0xff] }
 0x457   : > { %v2406_v9 = vadd.f32 %v2364_v8, %v8027_v37  ;;  %v9148_v8 = vld [vmem:[#allocation26_spill] sm:$0xff] }
 0x458   : > { %4124 = vmatmul.bf16.gmra.mxu1 %v9140_v45 }
 0x45a   : > { %4384 = vmatmul.bf16.gmra.mxu2 %v9141_v40 }
 0x45d   : > { %v3137_v36 = vpop.f32.mrf.mxu2  ;;  %v2746_v54 = vpop.f32.mrf.mxu1 }
 0x45e   : > { %v2366_v48 = vpop.f32.mrf.mxu3  ;;  %v8325_v12 = vadd.f32 %v3137_v36, %v2789_v51  ;;  %v2790_v52 = vadd.f32 %v2746_v54, %v2405_v26  ;;  %v9150_v54 = vld [vmem:[#allocation34_spill] sm:$0xff] }
 0x45f   : > { %v2407_v49 = vadd.f32 %v2366_v48, %v8033_v10  ;;  %v9151_v48 = vld [vmem:[#allocation28_spill] sm:$0xff] }
 0x463   : > { %3356 = vmatmul.bf16.gmra.mxu3 %v9142_v59 }
 0x465   : > { %v3139_v23 = vpop.f32.mrf.mxu2  ;;  %v2749_v5 = vpop.f32.mrf.mxu1 }
 0x466   : > { %v2369_v39 = vpop.f32.mrf.mxu3  ;;  %v8329_v11 = vadd.f32 %v3139_v23, %v2790_v52  ;;  %v2791_v37 = vadd.f32 %v2749_v5, %v2406_v9 }
 0x467   : > { %v2408_v0 = vadd.f32 %v2369_v39, %v8047_v41 }
 0x468   : > { %9143 = vst [vmem:[#allocation24_spill] sm:$0xff] %v8329_v11  ;;  %4129 = vmatmul.bf16.gmra.mxu1 %v9144_v33  ;;  %v9154_v33 = vld [vmem:[#allocation68_spill] sm:$0xff] }
 0x46a   : > { %4389 = vmatmul.bf16.gmra.mxu2 %v9145_v60 }
 0x46d   : > { %v3142_v63 = vpop.f32.mrf.mxu2  ;;  %v2751_v46 = vpop.f32.mrf.mxu1 }
 0x46e   : > { %v2371_v24 = vpop.f32.mrf.mxu3  ;;  %v8334_v26 = vadd.f32 %v3142_v63, %v2791_v37  ;;  %v2792_v10 = vadd.f32 %v2751_v46, %v2407_v49  ;;  %v9153_v37 = vld [vmem:[#allocation30_spill] sm:$0xff] }
 0x46f   : > { %v2409_v4 = vadd.f32 %v2371_v24, %v9147_v43  ;;  %v9156_v43 = vld [vmem:[#allocation39_spill] sm:$0xff] }
 0x470   : > { %9146 = vst [vmem:[#allocation6_spill] sm:$0xff] %v8334_v26 }
 0x473   : > { %3361 = vmatmul.bf16.gmra.mxu3 %v9148_v8  ;;  %v9157_v8 = vld [vmem:[#allocation31_spill] sm:$0xff] }
 0x475   : > { %v3144_v51 = vpop.f32.mrf.mxu2  ;;  %v2754_v45 = vpop.f32.mrf.mxu1 }
 0x476   : > { %v3322_v40 = vpop.f32.mrf.mxu3  ;;  %v8338_v9 = vadd.f32 %v3144_v51, %v2792_v10  ;;  %v2793_v41 = vadd.f32 %v2754_v45, %v2408_v0  ;;  %v9158_v51 = vld [vmem:[#allocation69_spill] sm:$0xff] }
 0x477   : > { %v3412_v36 = vadd.f32 %v3322_v40, %v8071_v55 }
 0x478   : > { %9149 = vst [vmem:[#allocation40_spill] sm:$0xff] %v8338_v9  ;;  %4134 = vmatmul.bf16.gmra.mxu1 %v9150_v54 }
 0x479   : > { %v3797_v60 = vadd.f32 %v9154_v33, %v3412_v36  ;;  %v9160_v33 = vld [vmem:[#allocation42_spill] sm:$0xff] }
 0x47a   : > { %4394 = vmatmul.bf16.gmra.mxu2 %v9151_v48  ;;  %v9159_v48 = vld [vmem:[#allocation33_spill] sm:$0xff] }
 0x47d   : > { %v3147_v52 = vpop.f32.mrf.mxu2  ;;  %v2756_v59 = vpop.f32.mrf.mxu1 }
 0x47e   : > { %v3324_v23 = vpop.f32.mrf.mxu3  ;;  %v8343_v49 = vadd.f32 %v3147_v52, %v2793_v41  ;;  %v2794_v5 = vadd.f32 %v2756_v59, %v2409_v4 }
 0x47f   : > { %v3413_v39 = vadd.f32 %v3324_v23, %v8078_v30 }
 0x480   : > { %9152 = vst [vmem:[#allocation29_spill] sm:$0xff] %v8343_v49 }
 0x481   : > { %v3798_v4 = vadd.f32 %v9158_v51, %v3413_v39 }
 0x483   : > { %3366 = vmatmul.bf16.gmra.mxu3 %v9153_v37 }
 0x485   : > { %v3149_v63 = vpop.f32.mrf.mxu2  ;;  %v4100_v0 = vpop.f32.mrf.mxu1 }
 0x486   : > { %v3327_v46 = vpop.f32.mrf.mxu3  ;;  %v8348_v55 = vadd.f32 %v3149_v63, %v2794_v5  ;;  %v4190_v24 = vadd.f32 %v4100_v0, %v3797_v60  ;;  %v9161_v60 = vld [vmem:[#allocation35_spill] sm:$0xff] }
 0x487   : > { %v3414_v10 = vadd.f32 %v3327_v46, %v8087_v42 }
 0x488   : > { %9155 = vst [vmem:[#allocation4_spill] sm:$0xff] %v8348_v55  ;;  %4139 = vmatmul.bf16.gmra.mxu1 %v9156_v43  ;;  %v9162_v43 = vld [vmem:[#allocation37_spill] sm:$0xff] }
 0x489   : > { %v3799_v52 = vadd.f32 %v8076_v25, %v3414_v10 }
 0x48a   : > { %4399 = vmatmul.bf16.gmra.mxu2 %v9157_v8 }
 0x48d   : > { %v4360_v45 = vpop.f32.mrf.mxu2  ;;  %v4102_v30 = vpop.f32.mrf.mxu1 }
 0x48e   : > { %v3329_v40 = vpop.f32.mrf.mxu3  ;;  %v8354_v41 = vadd.f32 %v4360_v45, %v4190_v24  ;;  %v4191_v36 = vadd.f32 %v4102_v30, %v3798_v4 }
 0x48f   : > { %v3415_v54 = vadd.f32 %v3329_v40, %v8100_v31  ;;  %v9163_v40 = vld [vmem:[#allocation36_spill] sm:$0xff] }
 0x491   : > { %v3800_v63 = vadd.f32 %v8093_v32, %v3415_v54  ;;  %v9164_v54 = vld [vmem:[#allocation46_spill] sm:$0xff] }
 0x493   : > { %3371 = vmatmul.bf16.gmra.mxu3 %v9159_v48  ;;  %v9165_v48 = vld [vmem:[#allocation38_spill] sm:$0xff] }
 0x495   : > { %v4362_v59 = vpop.f32.mrf.mxu2  ;;  %v4105_v42 = vpop.f32.mrf.mxu1 }
 0x496   : > { %v3332_v23 = vpop.f32.mrf.mxu3  ;;  %v8359_v5 = vadd.f32 %v4362_v59, %v4191_v36  ;;  %v4192_v37 = vadd.f32 %v4105_v42, %v3799_v52  ;;  %v3732_v36 = vpop.f32.mrf.mxu0  ;;  %v9166_v52 = vld [vmem:[#allocation21_spill] sm:$0xff] }
 0x497   : > { %v3416_v39 = vadd.f32 %v3332_v23, %v8111_v57 }
 0x498   : > { %4144 = vmatmul.bf16.gmra.mxu1 %v9160_v33 }
 0x499   : > { %v3801_v8 = vadd.f32 %v8106_v56, %v3416_v39 }
 0x49a   : > { %4404 = vmatmul.bf16.gmra.mxu2 %v9161_v60  ;;  %v9167_v60 = vld [vmem:[#allocation41_spill] sm:$0xff] }
 0x49d   : > { %v4365_v0 = vpop.f32.mrf.mxu2  ;;  %v4107_v31 = vpop.f32.mrf.mxu1 }
 0x49e   : > { %v3334_v46 = vpop.f32.mrf.mxu3  ;;  %v8365_v24 = vadd.f32 %v4365_v0, %v4192_v37  ;;  %v4193_v25 = vadd.f32 %v4107_v31, %v3800_v63  ;;  %v3734_v33 = vpop.f32.mrf.mxu0  ;;  %v9168_v63 = vld [vmem:[#allocation3_spill] sm:$0xff] }
 0x49f   : > { %v3417_v10 = vadd.f32 %v3334_v46, %v8121_v15 }
 0x4a1   : > { %v3802_v59 = vadd.f32 %v9166_v52, %v3417_v10 }
 0x4a3   : > { %3376 = vmatmul.bf16.gmra.mxu3 %v9162_v43 }
 0x4a5   : > { %v4367_v51 = vpop.f32.mrf.mxu2  ;;  %v4110_v57 = vpop.f32.mrf.mxu1 }
 0x4a6   : > { %v3337_v4 = vpop.f32.mrf.mxu3  ;;  %v8370_v45 = vadd.f32 %v4367_v51, %v4193_v25  ;;  %v4194_v30 = vadd.f32 %v4110_v57, %v3801_v8  ;;  %v9169_v51 = vld [vmem:[#allocation48_spill] sm:$0xff]  ;;  %v9170_v57 = vld [vmem:[#allocation43_spill] sm:$0xff] }
 0x4a7   : > { %v3418_v32 = vadd.f32 %v3337_v4, %v9163_v40  ;;  %v3737_v4 = vpop.f32.mrf.mxu0 }
 0x4a8   : > { %4149 = vmatmul.bf16.gmra.mxu1 %v9164_v54 }
 0x4a9   : > { %v3803_v0 = vadd.f32 %v9168_v63, %v3418_v32 }
 0x4aa   : > { %4409 = vmatmul.bf16.gmra.mxu2 %v9165_v48 }
 0x4ad   : > { %v4370_v15 = vpop.f32.mrf.mxu2  ;;  %v4112_v42 = vpop.f32.mrf.mxu1 }
 0x4ae   : > { %v3339_v23 = vpop.f32.mrf.mxu3  ;;  %v8376_v37 = vadd.f32 %v4370_v15, %v4194_v30  ;;  %v4195_v56 = vadd.f32 %v4112_v42, %v3802_v59  ;;  %v9171_v59 = vld [vmem:[#allocation44_spill] sm:$0xff] }
 0x4af   : > { %v3419_v39 = vadd.f32 %v3339_v23, %v8144_v17  ;;  %v3739_v23 = vpop.f32.mrf.mxu0 }
 0x4b1   : > { %v3804_v17 = vadd.f32 %v8152_v18, %v3419_v39  ;;  %v9172_v39 = vld [vmem:[#allocation52_spill] sm:$0xff] }
 0x4b3   : > { %3381 = vmatmul.bf16.gmra.mxu3 %v9167_v60 }
 0x4b5   : > { %v4372_v31 = vpop.f32.mrf.mxu2  ;;  %v4115_v46 = vpop.f32.mrf.mxu1 }
 0x4b6   : > { %v3342_v25 = vpop.f32.mrf.mxu3  ;;  %v8381_v43 = vadd.f32 %v4372_v31, %v4195_v56  ;;  %v4196_v8 = vadd.f32 %v4115_v46, %v3803_v0  ;;  %v9173_v0 = vld [vmem:[#allocation45_spill] sm:$0xff] }
 0x4b7   : > { %v3420_v10 = vadd.f32 %v3342_v25, %v8160_v1 }
 0x4b8   : > { %4154 = vmatmul.bf16.gmra.mxu1 %v9169_v51  ;;  %v3742_v51 = vpop.f32.mrf.mxu0 }
 0x4b9   : > { %v3805_v15 = vadd.f32 %v8163_v21, %v3420_v10 }
 0x4ba   : > { %4414 = vmatmul.bf16.gmra.mxu2 %v9170_v57  ;;  %v9174_v57 = vld [vmem:[#allocation47_spill] sm:$0xff] }
 0x4bd   : > { %v4375_v30 = vpop.f32.mrf.mxu2  ;;  %v4117_v40 = vpop.f32.mrf.mxu1 }
 0x4be   : > { %v3344_v54 = vpop.f32.mrf.mxu3  ;;  %v8387_v48 = vadd.f32 %v4375_v30, %v4196_v8  ;;  %v4197_v32 = vadd.f32 %v4117_v40, %v3804_v17 }
 0x4bf   : > { %v3421_v52 = vadd.f32 %v3344_v54, %v8170_v28 }
 0x4c1   : > { %v3806_v31 = vadd.f32 %v8185_v29, %v3421_v52  ;;  %v9175_v52 = vld [vmem:[#allocation54_spill] sm:$0xff] }
 0x4c3   : > { %3386 = vmatmul.bf16.gmra.mxu3 %v9171_v59  ;;  %v3744_v59 = vpop.f32.mrf.mxu0 }
 0x4c5   : > { %v4377_v1 = vpop.f32.mrf.mxu2  ;;  %v4120_v42 = vpop.f32.mrf.mxu1 }
 0x4c6   : > { %v3347_v56 = vpop.f32.mrf.mxu3  ;;  %v8392_v60 = vadd.f32 %v4377_v1, %v4197_v32  ;;  %v4198_v63 = vadd.f32 %v4120_v42, %v3805_v15  ;;  %v9176_v15 = vld [vmem:[#allocation49_spill] sm:$0xff] }
 0x4c7   : > { %v3422_v18 = vadd.f32 %v3347_v56, %v8191_v16 }
 0x4c8   : > { %4159 = vmatmul.bf16.gmra.mxu1 %v9172_v39  ;;  %v9177_v39 = vld [vmem:[#allocation50_spill] sm:$0xff] }
 0x4c9   : > { %v3807_v17 = vadd.f32 %v3732_v36, %v3422_v18 }
 0x4ca   : > { %4419 = vmatmul.bf16.gmra.mxu2 %v9173_v0 }
 0x4cb   : > { %v3747_v0 = vpop.f32.mrf.mxu0 }
 0x4cd   : > { %v4380_v28 = vpop.f32.mrf.mxu2  ;;  %v4122_v46 = vpop.f32.mrf.mxu1 }
 0x4ce   : > { %v3349_v25 = vpop.f32.mrf.mxu3  ;;  %v8398_v8 = vadd.f32 %v4380_v28, %v4198_v63  ;;  %v4199_v21 = vadd.f32 %v4122_v46, %v3806_v31 }
 0x4cf   : > { %v3423_v10 = vadd.f32 %v3349_v25, %v8202_v34 }
 0x4d1   : > { %v3808_v1 = vadd.f32 %v3734_v33, %v3423_v10  ;;  %v9178_v10 = vld [vmem:[#allocation58_spill] sm:$0xff] }
 0x4d3   : > { %3391 = vmatmul.bf16.gmra.mxu3 %v9174_v57  ;;  %v9179_v57 = vld [vmem:[#allocation51_spill] sm:$0xff] }
 0x4d5   : > { %v4382_v30 = vpop.f32.mrf.mxu2  ;;  %v4125_v16 = vpop.f32.mrf.mxu1 }
 0x4d6   : > { %v3352_v40 = vpop.f32.mrf.mxu3  ;;  %v8402_v54 = vadd.f32 %v4382_v30, %v4199_v21  ;;  %v4200_v32 = vadd.f32 %v4125_v16, %v3807_v17 }
 0x4d7   : > { %v3424_v29 = vadd.f32 %v3352_v40, %v8219_v14 }
 0x4d8   : > { %4164 = vmatmul.bf16.gmra.mxu1 %v9175_v52  ;;  %v9180_v52 = vld [vmem:[#allocation53_spill] sm:$0xff] }
 0x4d9   : > { %v3809_v31 = vadd.f32 %v3737_v4, %v3424_v29 }
 0x4da   : > { %4424 = vmatmul.bf16.gmra.mxu2 %v9176_v15 }
 0x4dd   : > { %v4385_v42 = vpop.f32.mrf.mxu2  ;;  %v4127_v34 = vpop.f32.mrf.mxu1 }
 0x4de   : > { %v3354_v56 = vpop.f32.mrf.mxu3  ;;  %v8407_v63 = vadd.f32 %v4385_v42, %v4200_v32  ;;  %v4201_v36 = vadd.f32 %v4127_v34, %v3808_v1 }
 0x4df   : > { %v3425_v18 = vadd.f32 %v3354_v56, %v8233_v7  ;;  %v3749_v7 = vpop.f32.mrf.mxu0 }
 0x4e1   : > { %v3810_v17 = vadd.f32 %v3739_v23, %v3425_v18  ;;  %v9181_v18 = vld [vmem:[#allocation59_spill] sm:$0xff] }
 0x4e3   : > { %3396 = vmatmul.bf16.gmra.mxu3 %v9177_v39  ;;  %v9182_v39 = vld [vmem:[#allocation55_spill] sm:$0xff] }
 0x4e5   : > { %v4387_v28 = vpop.f32.mrf.mxu2  ;;  %v4130_v14 = vpop.f32.mrf.mxu1 }
 0x4e6   : > { %v3357_v46 = vpop.f32.mrf.mxu3  ;;  %v8411_v25 = vadd.f32 %v4387_v28, %v4201_v36  ;;  %v4202_v21 = vadd.f32 %v4130_v14, %v3809_v31 }
 0x4e7   : > { %v3426_v33 = vadd.f32 %v3357_v46, %v8239_v53  ;;  %v3752_v36 = vpop.f32.mrf.mxu0 }
 0x4e8   : > { %4169 = vmatmul.bf16.gmra.mxu1 %v9178_v10  ;;  %v9183_v10 = vld [vmem:[#allocation56_spill] sm:$0xff] }
 0x4e9   : > { %v3811_v15 = vadd.f32 %v3742_v51, %v3426_v33 }
 0x4ea   : > { %4429 = vmatmul.bf16.gmra.mxu2 %v9179_v57  ;;  %v3484_v57 = vld [vmem:[#allocation2 + $0xa0] sm:$0x3] }
 0x4ed   : > { %v4390_v30 = vpop.f32.mrf.mxu2  ;;  %v4132_v16 = vpop.f32.mrf.mxu1 }
 0x4ee   : > { %v3359_v40 = vpop.f32.mrf.mxu3  ;;  %v8416_v32 = vadd.f32 %v4390_v30, %v4202_v21  ;;  %v4203_v4 = vadd.f32 %v4132_v16, %v3810_v17 }
 0x4ef   : > { %v3427_v29 = vadd.f32 %v3359_v40, %v8244_v61  ;;  %v3754_v33 = vpop.f32.mrf.mxu0 }
 0x4f1   : > { %v3812_v31 = vadd.f32 %v3744_v59, %v3427_v29  ;;  %v3575_v59 = vunpack.c.l.b16 %v3484_v57 }
 0x4f3   : > { %3401 = vmatmul.bf16.gmra.mxu3 %v9180_v52  ;;  %v9184_v52 = vld [vmem:[#allocation60_spill] sm:$0xff] }
 0x4f5   : > { %v4392_v1 = vpop.f32.mrf.mxu2  ;;  %v4135_v42 = vpop.f32.mrf.mxu1 }
 0x4f6   : > { %v3362_v53 = vpop.f32.mrf.mxu3  ;;  %v8420_v34 = vadd.f32 %v4392_v1, %v4203_v4  ;;  %v4204_v56 = vadd.f32 %v4135_v42, %v3811_v15  ;;  %v9185_v15 = vld [vmem:[#allocation57_spill] sm:$0xff]  ;;  %v3594_v1 = vpack.c.b16 %v3575_v59, %v3575_v59 }
 0x4f7   : > { %v3428_v23 = vadd.f32 %v3362_v53, %v8254_v2 }
 0x4f8   : > { %4174 = vmatmul.bf16.gmra.mxu1 %v9181_v18 }
 0x4f9   : > { %v3813_v17 = vadd.f32 %v3747_v0, %v3428_v23  ;;  %v3630_v23 = vrot.slane %v3594_v1, 2 }
 0x4fa   : > { %4434 = vmatmul.bf16.gmra.mxu2 %v9182_v39 }
 0x4fd   : > { %v4395_v28 = vpop.f32.mrf.mxu2  ;;  %v4137_v14 = vpop.f32.mrf.mxu1 }
 0x4fe   : > { %v3364_v61 = vpop.f32.mrf.mxu3  ;;  %v8425_v46 = vadd.f32 %v4395_v28, %v4204_v56  ;;  %v4205_v51 = vadd.f32 %v4137_v14, %v3812_v31  ;;  %v9186_v28 = vrot.slane %v7786_v6, 2 }
 0x4ff   : > { %v3429_v21 = vadd.f32 %v3364_v61, %v8259_v22  ;;  %v3757_v22 = vpop.f32.mrf.mxu0 }
 0x501   : > { %v3814_v42 = vadd.f32 %v3749_v7, %v3429_v21 }
 0x503   : > { %3406 = vmatmul.bf16.gmra.mxu3 %v9183_v10 }
 0x505   : > { %v4397_v2 = vpop.f32.mrf.mxu2  ;;  %v4140_v30 = vpop.f32.mrf.mxu1 }
 0x506   : > { %v3367_v16 = vpop.f32.mrf.mxu3  ;;  %v8429_v40 = vadd.f32 %v4397_v2, %v4205_v51  ;;  %v4206_v4 = vadd.f32 %v4140_v30, %v3813_v17  ;;  %v9187_v2 = vld [vmem:[#allocation62_spill] sm:$0xff]  ;;  %v9188_v30 = vld [vmem:[#allocation61_spill] sm:$0xff] }
 0x507   : > { %v3430_v29 = vadd.f32 %v3367_v16, %v8266_v58  ;;  %v3631_v58 = vsel %vm3209_vm14, %v9186_v28, %v3630_v23  ;;  %v3759_v10 = vpop.f32.mrf.mxu0 }
 0x508   : > { %4179 = vmatmul.bf16.gmra.mxu1 %v9184_v52 }
 0x509   : > { %v3815_v14 = vadd.f32 %v3752_v36, %v3430_v29 }
 0x50a   : > { %4439 = vmatmul.bf16.gmra.mxu2 %v9185_v15 }
 0x50d   : > { %v4400_v53 = vpop.f32.mrf.mxu2  ;;  %v4142_v56 = vpop.f32.mrf.mxu1 }
 0x50e   : > { %v3369_v18 = vpop.f32.mrf.mxu3  ;;  %v8434_v0 = vadd.f32 %v4400_v53, %v4206_v4  ;;  %v4207_v39 = vadd.f32 %v4142_v56, %v3814_v42 }
 0x50f   : > { %v3431_v31 = vadd.f32 %v3369_v18, %v8272_v13  ;;  %v3762_v52 = vpop.f32.mrf.mxu0 }
 0x511   : > { %v3816_v13 = vadd.f32 %v3754_v33, %v3431_v31 }
 0x513   : > { %3791 = vmatmul.bf16.vlgmr.msrb.gmra.mxu3 %v3631_v58 }
 0x515   : > { %v4402_v61 = vpop.f32.mrf.mxu2  ;;  %v4145_v51 = vpop.f32.mrf.mxu1 }
 0x516   : > { %v3372_v57 = vpop.f32.mrf.mxu3  ;;  %v8440_v7 = vadd.f32 %v4402_v61, %v4207_v39  ;;  %v4208_v21 = vadd.f32 %v4145_v51, %v3815_v14 }
 0x517   : > { %v3432_v17 = vadd.f32 %v3372_v57, %v8277_v38  ;;  %v3764_v33 = vpop.f32.mrf.mxu0 }
 0x518   : > { %4184 = vmatmul.bf16.gmra.mxu1 %v9187_v2 }
 0x519   : > { %v3817_v15 = vadd.f32 %v3757_v22, %v3432_v17 }
 0x51a   : > { %4444 = vmatmul.bf16.gmra.mxu2 %v9188_v30 }
 0x51d   : > { %v4405_v16 = vpop.f32.mrf.mxu2  ;;  %v4147_v6 = vpop.f32.mrf.mxu1 }
 0x51e   : > { %v3374_v4 = vpop.f32.mrf.mxu3  ;;  %v8445_v59 = vadd.f32 %v4405_v16, %v4208_v21  ;;  %v4209_v36 = vadd.f32 %v4147_v6, %v3816_v13  ;;  %v4673_v21 = vpop.permute.xlu2 %4672 }
 0x51f   : > { %v3433_v29 = vadd.f32 %v3374_v4, %v8281_v35  ;;  %v3767_v22 = vpop.f32.mrf.mxu0  ;;  %v4678_v13 = vpop.permute.xlu0 %4677 }
 0x521   : > { %v3818_v39 = vadd.f32 %v3759_v10, %v3433_v29  ;;  %v4683_v10 = vpop.permute.xlu1 %4682 }
 0x525   : > { %v4407_v1 = vpop.f32.mrf.mxu2  ;;  %v4150_v42 = vpop.f32.mrf.mxu1 }
 0x526   : > { %v3377_v53 = vpop.f32.mrf.mxu3  ;;  %v8448_v56 = vadd.f32 %v4407_v1, %v4209_v36  ;;  %v4210_v38 = vadd.f32 %v4150_v42, %v3817_v15  ;;  %v4688_v1 = vpop.permute.xlu2 %4687 }
 0x527   : > { %v3434_v18 = vadd.f32 %v3377_v53, %v8286_v19  ;;  %v8457_v36 = vpop.f32.mrf.mxu0  ;;  %v4693_v42 = vpop.permute.xlu0 %4692 }
 0x529   : > { %v3819_v23 = vadd.f32 %v3762_v52, %v3434_v18 }
 0x52d   : > { %v4410_v31 = vpop.f32.mrf.mxu2  ;;  %v4152_v28 = vpop.f32.mrf.mxu1 }
 0x52e   : > { %v3379_v58 = vpop.f32.mrf.mxu3  ;;  %v8451_v14 = vadd.f32 %v4410_v31, %v4210_v38  ;;  %v4211_v61 = vadd.f32 %v4152_v28, %v3818_v39 }
 0x52f   : > { %v3435_v35 = vadd.f32 %v3379_v58, %v8290_v62 }
 0x531   : > { %v3820_v16 = vadd.f32 %v3764_v33, %v3435_v35 }
 0x535   : > { %v4412_v51 = vpop.f32.mrf.mxu2  ;;  %v4155_v57 = vpop.f32.mrf.mxu1 }
 0x536   : > { %v3382_v17 = vpop.f32.mrf.mxu3  ;;  %v8454_v2 = vadd.f32 %v4412_v51, %v4211_v61  ;;  %v4212_v30 = vadd.f32 %v4155_v57, %v3819_v23  ;;  %v8469_v23 = vld [vmem:[%s8861_s8] ss:$0 sm:$0xff]  ;;  %v8480_v61 = vpop.permute.xlu2 %4702 }
 0x537   : > { %v3436_v19 = vadd.f32 %v3382_v17, %v8295_v50  ;;  %v8464_v50 = vpop.permute.xlu1 %4697  ;;  %v4491_v58 = vadd.f32 %v8469_v23, %v8359_v5  ;;  %v4490_v35 = vadd.f32 %v8469_v23, %v8354_v41  ;;  %v8486_v51 = vpop.permute.xlu0 %4707 }
 0x539   : > { %v3821_v53 = vadd.f32 %v3767_v22, %v3436_v19  ;;  %v4492_v22 = vadd.f32 %v8469_v23, %v8365_v24  ;;  %v4563_v57 = vmul.f32 0.01, %v4491_v58  ;;  %v4562_v19 = vmul.f32 0.01, %v4490_v35 }
 0x53a   : > { %vm4527_vm2 = vcmp.ge.f32.partialorder %v4491_v58, 0.0  ;;  %vm4526_vm3 = vcmp.ge.f32.partialorder %v4490_v35, 0.0  ;;  %v4494_v24 = vadd.f32 %v8469_v23, %v8376_v37  ;;  %v4496_v37 = vadd.f32 %v8469_v23, %v8387_v48 }
 0x53b   : > { %v4564_v41 = vmul.f32 0.01, %v4492_v22  ;;  %vm4528_vm4 = vcmp.ge.f32.partialorder %v4492_v22, 0.0 }
 0x53c   : > { %vm4530_vm6 = vcmp.ge.f32.partialorder %v4494_v24, 0.0  ;;  %vm4532_vm8 = vcmp.ge.f32.partialorder %v4496_v37, 0.0 }
 0x53d   : > { %v4415_v6 = vpop.f32.mrf.mxu2  ;;  %v4157_v4 = vpop.f32.mrf.mxu1 }
 0x53e   : > { %v3384_v29 = vpop.f32.mrf.mxu3  ;;  %v8459_v52 = vadd.f32 %v4415_v6, %v4212_v30  ;;  %v4213_v62 = vadd.f32 %v4157_v4, %v3820_v16  ;;  %v8500_v4 = vsel %vm4527_vm2, %v4491_v58, %v4563_v57 }
 0x53f   : > { %v8462_v15 = vadd.f32 %v3384_v29, %v8299_v44  ;;  %v8476_v44 = vpop.f32.mrf.mxu0  ;;  %v8498_v6 = vpop.permute.xlu1 %4712  ;;  %9189 = vst [vmem:[#allocation18_spill] sm:$0xff] %v8500_v4  ;;  %v4495_v29 = vadd.f32 %v8469_v23, %v8381_v43 }
 0x541   : > { %v4567_v43 = vmul.f32 0.01, %v4495_v29  ;;  %vm4531_vm7 = vcmp.ge.f32.partialorder %v4495_v29, 0.0 }
 0x545   : > { %v4417_v38 = vpop.f32.mrf.mxu2  ;;  %v4160_v18 = vpop.f32.mrf.mxu1 }
 0x546   : > { %v3387_v33 = vpop.f32.mrf.mxu3  ;;  %v8471_v39 = vadd.f32 %v4417_v38, %v4213_v62  ;;  %v4214_v31 = vadd.f32 %v4160_v18, %v3821_v53  ;;  %v8506_v53 = vsel %vm4526_vm3, %v4490_v35, %v4562_v19  ;;  %v8508_v38 = vsel %vm4528_vm4, %v4492_v22, %v4564_v41  ;;  %v8524_v19 = vpop.permute.xlu0 %4722 }
 0x547   : > { %v8474_v28 = vadd.f32 %v3387_v33, %v8307_v47  ;;  %v4493_v47 = vadd.f32 %v8469_v23, %v8370_v45  ;;  %v8504_v62 = vpop.f32.mrf.mxu0  ;;  %9190 = vst [vmem:[#allocation7_spill] sm:$0xff] %v8506_v53  ;;  %v4566_v18 = vmul.f32 0.01, %v4494_v24  ;;  %v8512_v33 = vpop.permute.xlu2 %4717  ;;  %v4850_v58 = vmul.f32 %v4673_v21, %v8506_v53 }
 0x548   : > { %9191 = vst [vmem:[#allocation9_spill] sm:$0xff] %v8508_v38  ;;  %v4497_v35 = vadd.f32 %v8469_v23, %v8392_v60  ;;  %v4852_v48 = vmul.f32 %v4683_v10, %v8508_v38  ;;  %v4568_v21 = vmul.f32 0.01, %v4496_v37  ;;  %v4498_v60 = vadd.f32 %v8469_v23, %v8398_v8  ;;  %v8536_v49 = vpop.permute.xlu1 %4727 }
 0x549   : > { %v4565_v45 = vmul.f32 0.01, %v4493_v47  ;;  %vm4529_vm5 = vcmp.ge.f32.partialorder %v4493_v47, 0.0  ;;  %v8534_v53 = vsel %vm4531_vm7, %v4495_v29, %v4567_v43 }
 0x54a   : > { %9194 = vst [vmem:[#allocation8_spill] sm:$0xff] %v8534_v53  ;;  %v4569_v55 = vmul.f32 0.01, %v4497_v35  ;;  %v4930_v10 = vmul.f32 %v4852_v48, %v4852_v48  ;;  %vm4533_vm9 = vcmp.ge.f32.partialorder %v4497_v35, 0.0  ;;  %v8541_v9 = vsel %vm4532_vm8, %v4496_v37, %v4568_v21 }
 0x54b   : > { %v8516_v57 = vsel %vm4529_vm5, %v4493_v47, %v4565_v45  ;;  %9195 = vst [vmem:[#allocation64_spill] sm:$0xff] %v8541_v9  ;;  %v4855_v29 = vmul.f32 %v8464_v50, %v8534_v53  ;;  %v4570_v43 = vmul.f32 0.01, %v4498_v60  ;;  %vm4534_vm10 = vcmp.ge.f32.partialorder %v4498_v60, 0.0 }
 0x54c   : > { %9192 = vst [vmem:[#allocation63_spill] sm:$0xff] %v8516_v57  ;;  %v4853_v45 = vmul.f32 %v4688_v1, %v8516_v57  ;;  %v8547_v11 = vsel %vm4533_vm9, %v4497_v35, %v4569_v55  ;;  %v4501_v55 = vadd.f32 %v8469_v23, %v8411_v25 }
 0x54d   : > { %v4420_v17 = vpop.f32.mrf.mxu2  ;;  %v8490_v30 = vpop.f32.mrf.mxu1  ;;  %9197 = vst [vmem:[#allocation65_spill] sm:$0xff] %v8547_v11 }
 0x54e   : > { %v8492_v5 = vpop.f32.mrf.mxu3  ;;  %v8494_v16 = vadd.f32 %v4420_v17, %v4214_v31  ;;  %v4851_v31 = vmul.f32 %v4678_v13, %v8500_v4  ;;  %v8529_v13 = vsel %vm4530_vm6, %v4494_v24, %v4566_v18  ;;  %v4928_v4 = vmul.f32 %v4850_v58, %v4850_v58  ;;  %v8561_v35 = vpop.permute.xlu0 %4737 }
 0x54f   : > { %9193 = vst [vmem:[#allocation5_spill] sm:$0xff] %v8529_v13  ;;  %v4854_v38 = vmul.f32 %v4693_v42, %v8529_v13  ;;  %v4499_v24 = vadd.f32 %v8469_v23, %v8402_v54  ;;  %v8543_v1 = vpop.f32.mrf.mxu0  ;;  %v4931_v8 = vmul.f32 %v4853_v45, %v4853_v45  ;;  %v4500_v42 = vadd.f32 %v8469_v23, %v8407_v63  ;;  %v4733_v37 = vpop.permute.xlu2 %4732 }
 0x550   : > { %v4929_v47 = vmul.f32 %v4851_v31, %v4851_v31  ;;  %v4886_v18 = vadd.f32 %v4851_v31, %v4850_v58  ;;  %9196 = vst [vmem:[#allocation11_spill] sm:$0xff] %v8543_v1  ;;  %v4743_v1 = vpop.permute.xlu1 %4742  ;;  %vm4537_vm13 = vcmp.ge.f32.partialorder %v4501_v55, 0.0 }
 0x551   : > { %v4932_v58 = vmul.f32 %v4854_v38, %v4854_v38  ;;  %v4571_v21 = vmul.f32 0.01, %v4499_v24  ;;  %vm4535_vm11 = vcmp.ge.f32.partialorder %v4499_v24, 0.0  ;;  %vm4536_vm12 = vcmp.ge.f32.partialorder %v4500_v42, 0.0 }
 0x552   : > { %v4964_v57 = vadd.f32 %v4929_v47, %v4928_v4  ;;  %v4887_v26 = vadd.f32 %v4886_v18, %v4852_v48  ;;  %v4856_v4 = vmul.f32 %v8480_v61, %v8541_v9  ;;  %v4933_v47 = vmul.f32 %v4855_v29, %v4855_v29 }
 0x553   : > { %v4857_v18 = vmul.f32 %v8486_v51, %v8547_v11  ;;  %v4572_v61 = vmul.f32 0.01, %v4500_v42  ;;  %v4502_v9 = vadd.f32 %v8469_v23, %v8416_v32  ;;  %v8570_v53 = vsel %vm4535_vm11, %v4499_v24, %v4571_v21 }
 0x554   : > { %v4965_v31 = vadd.f32 %v4964_v57, %v4930_v10  ;;  %v4888_v48 = vadd.f32 %v4887_v26, %v4853_v45  ;;  %v8566_v57 = vsel %vm4534_vm10, %v4498_v60, %v4570_v43  ;;  %v4934_v45 = vmul.f32 %v4856_v4, %v4856_v4  ;;  %9198 = vst [vmem:[#allocation12_spill] sm:$0xff] %v8570_v53 }
 0x555   : > { %v8520_v17 = vpop.f32.mrf.mxu2  ;;  %v8522_v22 = vpop.f32.mrf.mxu1  ;;  %v4935_v11 = vmul.f32 %v4857_v18, %v4857_v18  ;;  %v4859_v32 = vmul.f32 %v8512_v33, %v8570_v53  ;;  %v8578_v43 = vsel %vm4536_vm12, %v4500_v42, %v4572_v61  ;;  %v4574_v24 = vmul.f32 0.01, %v4502_v9 }
 0x556   : > { %v8527_v41 = vpop.f32.mrf.mxu3  ;;  %v4966_v63 = vadd.f32 %v4965_v31, %v4931_v8  ;;  %v4889_v10 = vadd.f32 %v4888_v48, %v4854_v38  ;;  %v4858_v8 = vmul.f32 %v8498_v6, %v8566_v57  ;;  %v4573_v31 = vmul.f32 0.01, %v4501_v55  ;;  %9199 = vst [vmem:[#allocation66_spill] sm:$0xff] %v8578_v43 }
 0x557   : > { %v4503_v38 = vadd.f32 %v8469_v23, %v8420_v34  ;;  %v8584_v6 = vpop.f32.mrf.mxu0  ;;  %vm4538_vm14 = vcmp.ge.f32.partialorder %v4502_v9, 0.0  ;;  %v4504_v48 = vadd.f32 %v8469_v23, %v8425_v46  ;;  %v4748_v33 = vpop.permute.xlu2 %4747 }
 0x558   : > { %v4967_v26 = vadd.f32 %v4966_v63, %v4932_v58  ;;  %v4890_v25 = vadd.f32 %v4889_v10, %v4855_v29  ;;  %v4860_v10 = vmul.f32 %v8524_v19, %v8578_v43  ;;  %v4753_v46 = vpop.permute.xlu0 %4752 }
 0x559   : > { %v4575_v61 = vmul.f32 0.01, %v4503_v38  ;;  %vm4539_vm15 = vcmp.ge.f32.partialorder %v4503_v38, 0.0  ;;  %vm4540_vm0 = vcmp.ge.f32.partialorder %v4504_v48, 0.0 }
 0x55a   : > { %v4968_v51 = vadd.f32 %v4967_v26, %v4933_v47  ;;  %v4891_v60 = vadd.f32 %v4890_v25, %v4856_v4  ;;  %v4936_v4 = vmul.f32 %v4858_v8, %v4858_v8  ;;  %v8590_v47 = vsel %vm4537_vm13, %v4501_v55, %v4573_v31 }
 0x55b   : > { %9200 = vst [vmem:[#allocation67_spill] sm:$0xff] %v8590_v47  ;;  %v4505_v26 = vadd.f32 %v8469_v23, %v8429_v40  ;;  %v4937_v25 = vmul.f32 %v4859_v32, %v4859_v32  ;;  %v4576_v55 = vmul.f32 0.01, %v4504_v48  ;;  %v4938_v19 = vmul.f32 %v4860_v10, %v4860_v10 }
 0x55c   : > { %v4969_v21 = vadd.f32 %v4968_v51, %v4934_v45  ;;  %v4892_v34 = vadd.f32 %v4891_v60, %v4857_v18  ;;  %v8596_v51 = vsel %vm4538_vm14, %v4502_v9, %v4574_v24  ;;  %v4861_v18 = vmul.f32 %v8536_v49, %v8590_v47 }
 0x55d   : > { %v8551_v13 = vpop.f32.mrf.mxu2  ;;  %v8553_v54 = vpop.f32.mrf.mxu1  ;;  %9201 = vst [vmem:[#allocation13_spill] sm:$0xff] %v8596_v51  ;;  %v8603_v40 = vsel %vm4539_vm15, %v4503_v38, %v4575_v61  ;;  %vm4541_vm1 = vcmp.ge.f32.partialorder %v4505_v26, 0.0  ;;  %v4507_v24 = vadd.f32 %v8469_v23, %v8440_v7  ;;  %v4508_v38 = vadd.f32 %v8469_v23, %v8445_v59 }
 0x55e   : > { %v8557_v50 = vpop.f32.mrf.mxu3  ;;  %v4970_v42 = vadd.f32 %v4969_v21, %v4935_v11  ;;  %v4893_v45 = vadd.f32 %v4892_v34, %v4858_v8  ;;  %v4506_v11 = vadd.f32 %v8469_v23, %v8434_v0  ;;  %v4862_v21 = vmul.f32 %v4733_v37, %v8596_v51  ;;  %9202 = vst [vmem:[#allocation16_spill] sm:$0xff] %v8603_v40  ;;  %v4758_v61 = vpop.permute.xlu1 %4757 }
 0x55f   : > { %v4577_v8 = vmul.f32 0.01, %v4505_v26  ;;  %v4939_v0 = vmul.f32 %v4861_v18, %v4861_v18  ;;  %v4863_v37 = vmul.f32 %v8561_v35, %v8603_v40  ;;  %v8619_v7 = vpop.f32.mrf.mxu0  ;;  %v4763_v35 = vpop.permute.xlu2 %4762  ;;  %vm4543_vm3 = vcmp.ge.f32.partialorder %v4507_v24, 0.0 }
 0x560   : > { %v4971_v31 = vadd.f32 %v4970_v42, %v4936_v4  ;;  %v4894_v60 = vadd.f32 %v4893_v45, %v4859_v32  ;;  %v8611_v4 = vsel %vm4540_vm0, %v4504_v48, %v4576_v55  ;;  %v4578_v32 = vmul.f32 0.01, %v4506_v11 }
 0x561   : > { %9203 = vst [vmem:[#allocation10_spill] sm:$0xff] %v8611_v4  ;;  %vm4542_vm2 = vcmp.ge.f32.partialorder %v4506_v11, 0.0  ;;  %v4864_v48 = vmul.f32 %v4743_v1, %v8611_v4  ;;  %v4579_v55 = vmul.f32 0.01, %v4507_v24  ;;  %v4941_v59 = vmul.f32 %v4863_v37, %v4863_v37 }
 0x562   : > { %v4972_v9 = vadd.f32 %v4971_v31, %v4937_v25  ;;  %v4895_v47 = vadd.f32 %v4894_v60, %v4860_v10  ;;  %v4940_v31 = vmul.f32 %v4862_v21, %v4862_v21  ;;  %v8622_v10 = vsel %vm4541_vm1, %v4505_v26, %v4577_v8 }
 0x563   : > { %v4509_v60 = vadd.f32 %v8469_v23, %v8448_v56  ;;  %v8627_v43 = vsel %vm4542_vm2, %v4506_v11, %v4578_v32  ;;  %vm4544_vm4 = vcmp.ge.f32.partialorder %v4508_v38, 0.0  ;;  %v4942_v8 = vmul.f32 %v4864_v48, %v4864_v48 }
 0x564   : > { %v4973_v45 = vadd.f32 %v4972_v9, %v4938_v19  ;;  %v4896_v25 = vadd.f32 %v4895_v47, %v4861_v18  ;;  %9204 = vst [vmem:[#allocation14_spill] sm:$0xff] %v8627_v43  ;;  %v4865_v19 = vmul.f32 %v4748_v33, %v8622_v10  ;;  %v4580_v47 = vmul.f32 0.01, %v4508_v38  ;;  %v4768_v18 = vpop.permute.xlu0 %4767 }
 0x565   : > { %v8580_v58 = vpop.f32.mrf.mxu2  ;;  %v8582_v29 = vpop.f32.mrf.mxu1  ;;  %v4866_v1 = vmul.f32 %v4753_v46, %v8627_v43  ;;  %v8631_v4 = vsel %vm4543_vm3, %v4507_v24, %v4579_v55  ;;  %v4581_v56 = vmul.f32 0.01, %v4509_v60  ;;  %vm4545_vm5 = vcmp.ge.f32.partialorder %v4509_v60, 0.0 }
 0x566   : > { %v8588_v63 = vpop.f32.mrf.mxu3  ;;  %v4974_v40 = vadd.f32 %v4973_v45, %v4939_v0  ;;  %v4897_v51 = vadd.f32 %v4896_v25, %v4862_v21  ;;  %v4510_v11 = vadd.f32 %v8469_v23, %v8451_v14  ;;  %v8641_v32 = vsel %vm4544_vm4, %v4508_v38, %v4580_v47 }
 0x567   : > { %v4867_v46 = vmul.f32 %v4758_v61, %v8631_v4  ;;  %v4944_v45 = vmul.f32 %v4866_v1, %v4866_v1  ;;  %v8644_v25 = vsel %vm4545_vm5, %v4509_v60, %v4581_v56  ;;  %v8646_v55 = vpop.f32.mrf.mxu0  ;;  %v4868_v43 = vmul.f32 %v4763_v35, %v8641_v32  ;;  %v4778_v38 = vpop.permute.xlu2 %4777 }
 0x568   : > { %v4975_v9 = vadd.f32 %v4974_v40, %v4940_v31  ;;  %v4898_v26 = vadd.f32 %v4897_v51, %v4863_v37  ;;  %v4943_v51 = vmul.f32 %v4865_v19, %v4865_v19  ;;  %v4773_v31 = vpop.permute.xlu1 %4772  ;;  %v4582_v14 = vmul.f32 0.01, %v4510_v11 }
 0x569   : > { %vm4546_vm6 = vcmp.ge.f32.partialorder %v4510_v11, 0.0  ;;  %v4945_v47 = vmul.f32 %v4867_v46, %v4867_v46  ;;  %v4869_v61 = vmul.f32 %v4768_v18, %v8644_v25  ;;  %v3822_v60 = vadd.f32 %v8457_v36, %v8462_v15 }
 0x56a   : > { %v4976_v0 = vadd.f32 %v4975_v9, %v4941_v59  ;;  %v4899_v40 = vadd.f32 %v4898_v26, %v4864_v48  ;;  %v4511_v59 = vadd.f32 %v8469_v23, %v8454_v2  ;;  %v3439_v18 = vadd.f32 %v8492_v5, %v8311_v20 }
 0x56b   : > { %v3823_v36 = vadd.f32 %v8476_v44, %v8474_v28  ;;  %v3440_v20 = vadd.f32 %v8527_v41, %v8316_v3  ;;  %v4514_v28 = vadd.f32 %v8469_v23, %v8494_v16 }
 0x56c   : > { %v4977_v24 = vadd.f32 %v4976_v0, %v4942_v8  ;;  %v4900_v37 = vadd.f32 %v4899_v40, %v4865_v19  ;;  %v4783_v35 = vpop.permute.xlu0 %4782  ;;  %v4946_v0 = vmul.f32 %v4868_v43, %v4868_v43  ;;  %v8658_v40 = vsel %vm4546_vm6, %v4510_v11, %v4582_v14 }
 0x56d   : > { %v8607_v34 = vpop.f32.mrf.mxu2  ;;  %v8609_v49 = vpop.f32.mrf.mxu1  ;;  %vm4547_vm7 = vcmp.ge.f32.partialorder %v4511_v59, 0.0  ;;  %v4583_v2 = vmul.f32 0.01, %v4511_v59  ;;  %v4870_v11 = vmul.f32 %v4773_v31, %v8658_v40  ;;  %v3824_v5 = vadd.f32 %v8504_v62, %v3439_v18 }
 0x56e   : > { %v8613_v42 = vpop.f32.mrf.mxu3  ;;  %v4978_v48 = vadd.f32 %v4977_v24, %v4943_v51  ;;  %v4901_v9 = vadd.f32 %v4900_v37, %v4866_v1  ;;  %v4512_v51 = vadd.f32 %v8469_v23, %v8459_v52  ;;  %v4947_v24 = vmul.f32 %v4869_v61, %v4869_v61 }
 0x56f   : > { %v4513_v52 = vadd.f32 %v8469_v23, %v8471_v39  ;;  %v3787_v31 = vpop.f32.mrf.mxu0  ;;  %v4948_v39 = vmul.f32 %v4870_v11, %v4870_v11  ;;  %v4217_v41 = vadd.f32 %v8553_v54, %v3824_v5  ;;  %vm4550_vm10 = vcmp.ge.f32.partialorder %v4514_v28, 0.0  ;;  %v9206_v54 = vld [vmem:[#allocation24_spill] sm:$0xff] }
 0x570   : > { %v4979_v19 = vadd.f32 %v4978_v48, %v4944_v45  ;;  %v4902_v26 = vadd.f32 %v4901_v9, %v4867_v46  ;;  %v4215_v46 = vadd.f32 %v8490_v30, %v3822_v60  ;;  %v4216_v45 = vadd.f32 %v8522_v22, %v3823_v36  ;;  %v9205_v60 = vld [vmem:[#allocation11_spill] sm:$0xff] }
 0x571   : > { %v8669_v48 = vsel %vm4547_vm7, %v4511_v59, %v4583_v2  ;;  %v4584_v30 = vmul.f32 0.01, %v4512_v51  ;;  %vm4548_vm8 = vcmp.ge.f32.partialorder %v4512_v51, 0.0  ;;  %v3441_v59 = vadd.f32 %v8557_v50, %v8320_v27 }
 0x572   : > { %v4980_v15 = vadd.f32 %v4979_v19, %v4945_v47  ;;  %v4903_v37 = vadd.f32 %v4902_v26, %v4868_v43  ;;  %v4475_v44 = vadd.f32 %v8520_v17, %v4215_v46  ;;  %v4788_v43 = vpop.permute.xlu1 %4787  ;;  %v4871_v47 = vmul.f32 %v4778_v38, %v8669_v48  ;;  %v4793_v17 = vpop.permute.xlu2 %4792 }
 0x573   : > { %v4476_v3 = vadd.f32 %v8551_v13, %v4216_v45  ;;  %v4585_v62 = vmul.f32 0.01, %v4513_v52  ;;  %v8689_v27 = vsel %vm4548_vm8, %v4512_v51, %v4584_v30  ;;  %vm4549_vm9 = vcmp.ge.f32.partialorder %v4513_v52, 0.0  ;;  %v9208_v30 = vld [vmem:[#allocation40_spill] sm:$0xff] }
 0x574   : > { %v4981_v14 = vadd.f32 %v4980_v15, %v4946_v0  ;;  %v4904_v22 = vadd.f32 %v4903_v37, %v4869_v61  ;;  %v3442_v61 = vadd.f32 %v8588_v63, %v8325_v12  ;;  %v3825_v0 = vadd.f32 %v9205_v60, %v3440_v20  ;;  %v4798_v38 = vpop.permute.xlu0 %4797  ;;  %v9207_v37 = vld [vmem:[#allocation6_spill] sm:$0xff] }
 0x575   : > { %v8633_v53 = vpop.f32.mrf.mxu2  ;;  %v8635_v21 = vpop.f32.mrf.mxu1  ;;  %v4586_v50 = vmul.f32 0.01, %v4514_v28  ;;  %v4515_v13 = vadd.f32 %v8469_v23, %v4475_v44  ;;  %v3443_v18 = vadd.f32 %v8613_v42, %v9206_v54  ;;  %v3826_v36 = vadd.f32 %v8584_v6, %v3441_v59 }
 0x576   : > { %v8639_v33 = vpop.f32.mrf.mxu3  ;;  %v4982_v9 = vadd.f32 %v4981_v14, %v4947_v24  ;;  %v4905_v26 = vadd.f32 %v4904_v22, %v4870_v11  ;;  %v4218_v46 = vadd.f32 %v8582_v29, %v3825_v0  ;;  %v4949_v63 = vmul.f32 %v4871_v47, %v4871_v47 }
 0x577   : > { %v4516_v15 = vadd.f32 %v8469_v23, %v4476_v3  ;;  %v4477_v51 = vadd.f32 %v8580_v58, %v4217_v41  ;;  %v8698_v24 = vsel %vm4549_vm9, %v4513_v52, %v4585_v62  ;;  %v3444_v11 = vadd.f32 %v8639_v33, %v9207_v37 }
 0x578   : > { %v4983_v12 = vadd.f32 %v4982_v9, %v4948_v39  ;;  %v4219_v45 = vadd.f32 %v8609_v49, %v3826_v36  ;;  %v3827_v14 = vadd.f32 %v8619_v7, %v3442_v61  ;;  %v4872_v42 = vmul.f32 %v4783_v35, %v8689_v27 }
 0x579   : > { %v8705_v29 = vsel %vm4550_vm10, %v4514_v28, %v4586_v50  ;;  %vm4551_vm11 = vcmp.ge.f32.partialorder %v4515_v13, 0.0  ;;  %v4587_v6 = vmul.f32 0.01, %v4515_v13  ;;  %v4478_v20 = vadd.f32 %v8607_v34, %v4218_v46 }
 0x57a   : > { %v4220_v58 = vadd.f32 %v8635_v21, %v3827_v14  ;;  %v3828_v52 = vadd.f32 %v8646_v55, %v3443_v18  ;;  %v4906_v5 = vadd.f32 %v4905_v26, %v4871_v47  ;;  %v4873_v33 = vmul.f32 %v4788_v43, %v8698_v24  ;;  %v4803_v28 = vpop.permute.xlu1 %4802  ;;  %v3789_v21 = vpop.f32.mrf.mxu0 }
 0x57b   : > { %v4588_v49 = vmul.f32 0.01, %v4516_v15  ;;  %v4517_v7 = vadd.f32 %v8469_v23, %v4477_v51  ;;  %vm4552_vm12 = vcmp.ge.f32.partialorder %v4516_v15, 0.0  ;;  %v4479_v9 = vadd.f32 %v8633_v53, %v4219_v45  ;;  %v4808_v3 = vpop.permute.xlu2 %4807 }
 0x57c   : > { %v4984_v39 = vadd.f32 %v4983_v12, %v4949_v63  ;;  %v4950_v55 = vmul.f32 %v4872_v42, %v4872_v42  ;;  %v4874_v47 = vmul.f32 %v4793_v17, %v8705_v29  ;;  %v8719_v43 = vsel %vm4551_vm11, %v4515_v13, %v4587_v6  ;;  %v4813_v0 = vpop.permute.xlu0 %4812 }
 0x57d   : > { %v8654_v8 = vpop.f32.mrf.mxu2  ;;  %v8656_v56 = vpop.f32.mrf.mxu1  ;;  %v4518_v41 = vadd.f32 %v8469_v23, %v4478_v20  ;;  %v4907_v61 = vadd.f32 %v4906_v5, %v4872_v42  ;;  %v8724_v60 = vsel %vm4552_vm12, %v4516_v15, %v4588_v49  ;;  %vm4553_vm13 = vcmp.ge.f32.partialorder %v4517_v7, 0.0 }
 0x57e   : > { %v3404_v1 = vpop.f32.mrf.mxu3  ;;  %v4221_v34 = vadd.f32 %v8656_v56, %v3828_v52  ;;  %v4480_v26 = vadd.f32 %v8654_v8, %v4220_v58  ;;  %v4951_v56 = vmul.f32 %v4873_v33, %v4873_v33  ;;  %v4519_v17 = vadd.f32 %v8469_v23, %v4479_v9 }
 0x57f   : > { %v3445_v44 = vadd.f32 %v3404_v1, %v9208_v30  ;;  %v3829_v1 = vadd.f32 %v3787_v31, %v3444_v11  ;;  %v4589_v31 = vmul.f32 0.01, %v4517_v7  ;;  %v4985_v54 = vadd.f32 %v4984_v39, %v4950_v55 }
 0x580   : > { %v4952_v18 = vmul.f32 %v4874_v47, %v4874_v47  ;;  %v4875_v46 = vmul.f32 %v4798_v38, %v8719_v43  ;;  %v4908_v36 = vadd.f32 %v4907_v61, %v4873_v33  ;;  %v4590_v8 = vmul.f32 0.01, %v4518_v41 }
 0x581   : > { %v3830_v53 = vadd.f32 %v3789_v21, %v3445_v44  ;;  %v4986_v63 = vadd.f32 %v4985_v54, %v4951_v56  ;;  %v4876_v15 = vmul.f32 %v4803_v28, %v8724_v60  ;;  %v8730_v51 = vsel %vm4553_vm13, %v4517_v7, %v4589_v31  ;;  %v9210_v31 = vld [vmem:[#allocation4_spill] sm:$0xff] }
 0x582   : > { %vm4554_vm14 = vcmp.ge.f32.partialorder %v4518_v41, 0.0  ;;  %v4591_v45 = vmul.f32 0.01, %v4519_v17  ;;  %v4909_v20 = vadd.f32 %v4908_v36, %v4874_v47  ;;  %v4953_v44 = vmul.f32 %v4875_v46, %v4875_v46  ;;  %v4818_v58 = vpop.permute.xlu1 %4817 }
 0x583   : > { %v4987_v30 = vadd.f32 %v4986_v63, %v4952_v18  ;;  %vm4555_vm15 = vcmp.ge.f32.partialorder %v4519_v17, 0.0  ;;  %v8735_v52 = vsel %vm4554_vm14, %v4518_v41, %v4590_v8 }
 0x584   : > { %v4910_v7 = vadd.f32 %v4909_v20, %v4875_v46  ;;  %v8739_v28 = vsel %vm4555_vm15, %v4519_v17, %v4591_v45  ;;  %v4878_v39 = vmul.f32 %v4813_v0, %v8735_v52  ;;  %v4828_v55 = vpop.permute.xlu0 %4827 }
 0x585   : > { %v4437_v16 = vpop.f32.mrf.mxu2  ;;  %v4180_v19 = vpop.f32.mrf.mxu1  ;;  %v4988_v21 = vadd.f32 %v4987_v30, %v4953_v44 }
 0x586   : > { %v8687_v2 = vpop.f32.mrf.mxu3  ;;  %v4222_v62 = vadd.f32 %v4180_v19, %v3829_v1  ;;  %v4481_v50 = vadd.f32 %v4437_v16, %v4221_v34  ;;  %v4520_v19 = vadd.f32 %v8469_v23, %v4480_v26  ;;  %v9209_v16 = vld [vmem:[#allocation29_spill] sm:$0xff]  ;;  %v4911_v47 = vadd.f32 %v4910_v7, %v4876_v15 }
 0x587   : > { %v3446_v14 = vadd.f32 %v8687_v2, %v9209_v16  ;;  %v4823_v2 = vpop.permute.xlu2 %4822  ;;  %v4956_v18 = vmul.f32 %v4878_v39, %v4878_v39 }
 0x588   : > { %v4521_v42 = vadd.f32 %v8469_v23, %v4481_v50  ;;  %v4592_v5 = vmul.f32 0.01, %v4520_v19  ;;  %vm4556_vm0 = vcmp.ge.f32.partialorder %v4520_v19, 0.0 }
 0x58a   : > { %v4593_v9 = vmul.f32 0.01, %v4521_v42  ;;  %vm4557_vm1 = vcmp.ge.f32.partialorder %v4521_v42, 0.0  ;;  %v8743_v41 = vsel %vm4556_vm0, %v4520_v19, %v4592_v5 }
 0x58b   : > { %v4880_v46 = vmul.f32 %v4823_v2, %v8743_v41 }
 0x58c   : > { %v8746_v56 = vsel %vm4557_vm1, %v4521_v42, %v4593_v9 }
 0x58d   : > { %v4440_v22 = vpop.f32.mrf.mxu2  ;;  %v4182_v35 = vpop.f32.mrf.mxu1 }
 0x58e   : > { %v8715_v59 = vpop.f32.mrf.mxu3  ;;  %v4223_v13 = vadd.f32 %v4182_v35, %v3830_v53  ;;  %v4482_v12 = vadd.f32 %v4440_v22, %v4222_v62  ;;  %v4954_v22 = vmul.f32 %v4876_v15, %v4876_v15  ;;  %v4877_v35 = vmul.f32 %v4808_v3, %v8730_v51 }
 0x58f   : > { %v4879_v3 = vmul.f32 %v4818_v58, %v8739_v28  ;;  %v3447_v17 = vadd.f32 %v8715_v59, %v9210_v31  ;;  %v4833_v59 = vpop.permute.xlu1 %4832  ;;  %v4838_v30 = vpop.permute.xlu2 %4837 }
 0x590   : > { %v4522_v33 = vadd.f32 %v8469_v23, %v4482_v12  ;;  %v4989_v62 = vadd.f32 %v4988_v21, %v4954_v22  ;;  %v4955_v53 = vmul.f32 %v4877_v35, %v4877_v35  ;;  %v4912_v54 = vadd.f32 %v4911_v47, %v4877_v35  ;;  %v4843_v22 = vpop.permute.xlu0 %4842 }
 0x592   : > { %v4594_v26 = vmul.f32 0.01, %v4522_v33  ;;  %vm4558_vm2 = vcmp.ge.f32.partialorder %v4522_v33, 0.0  ;;  %v4990_v63 = vadd.f32 %v4989_v62, %v4955_v53  ;;  %v4913_v15 = vadd.f32 %v4912_v54, %v4878_v39 }
 0x594   : > { %v8751_v8 = vsel %vm4558_vm2, %v4522_v33, %v4594_v26  ;;  %v4991_v42 = vadd.f32 %v4990_v63, %v4956_v18 }
 0x595   : > { %v4442_v37 = vpop.f32.mrf.mxu2  ;;  %v4185_v11 = vpop.f32.mrf.mxu1  ;;  %v4882_v20 = vmul.f32 %v4833_v59, %v8751_v8 }
 0x596   : > { %v3792_v38 = vpop.f32.mrf.mxu3  ;;  %v4483_v6 = vadd.f32 %v4442_v37, %v4223_v13  ;;  %v4957_v37 = vmul.f32 %v4879_v3, %v4879_v3 }
 0x597   : > { %v3831_v49 = vadd.f32 %v3792_v38, %v3446_v14  ;;  %v4914_v38 = vadd.f32 %v4913_v15, %v4879_v3 }
 0x598   : > { %v4523_v34 = vadd.f32 %v8469_v23, %v4483_v6  ;;  %v4958_v6 = vmul.f32 %v4880_v46, %v4880_v46  ;;  %v4992_v58 = vadd.f32 %v4991_v42, %v4957_v37 }
 0x599   : > { %v4224_v1 = vadd.f32 %v4185_v11, %v3831_v49  ;;  %v4881_v11 = vmul.f32 %v4828_v55, %v8746_v56  ;;  %v4915_v5 = vadd.f32 %v4914_v38, %v4880_v46 }
 0x59a   : > { %v4595_v50 = vmul.f32 0.01, %v4523_v34  ;;  %vm4559_vm3 = vcmp.ge.f32.partialorder %v4523_v34, 0.0  ;;  %v4993_v2 = vadd.f32 %v4992_v58, %v4958_v6 }
 0x59b   : > { %v4959_v33 = vmul.f32 %v4881_v11, %v4881_v11  ;;  %v4916_v9 = vadd.f32 %v4915_v5, %v4881_v11 }
 0x59c   : > { %v8755_v45 = vsel %vm4559_vm3, %v4523_v34, %v4595_v50  ;;  %v4960_v34 = vmul.f32 %v4882_v20, %v4882_v20 }
 0x59d   : > { %v4445_v61 = vpop.f32.mrf.mxu2  ;;  %v4187_v36 = vpop.f32.mrf.mxu1  ;;  %v4883_v49 = vmul.f32 %v4838_v30, %v8755_v45  ;;  %v4994_v39 = vadd.f32 %v4993_v2, %v4959_v33  ;;  %v4917_v55 = vadd.f32 %v4916_v9, %v4882_v20  ;;  %v5009_v2 = vld [vmem:[%s8862_s9] sm:$0x1] }
 0x59e   : > { %v3794_v13 = vpop.f32.mrf.mxu3  ;;  %v4484_v0 = vadd.f32 %v4445_v61, %v4224_v1  ;;  %v4848_v61 = vpop.permute.xlu1 %4847 }
 0x59f   : > { %v3832_v19 = vadd.f32 %v3794_v13, %v3447_v17  ;;  %v4961_v47 = vmul.f32 %v4883_v49, %v4883_v49  ;;  %v4995_v62 = vadd.f32 %v4994_v39, %v4960_v34  ;;  %v4918_v53 = vadd.f32 %v4917_v55, %v4883_v49  ;;  %v9211_v55 = vld [vmem:[#allocation7_spill] sm:$0xff] }
 0x5a0   : > { %v4524_v12 = vadd.f32 %v8469_v23, %v4484_v0 }
 0x5a1   : > { %v4225_v14 = vadd.f32 %v4187_v36, %v3832_v19  ;;  %v4996_v17 = vadd.f32 %v4995_v62, %v4961_v47 }
 0x5a2   : > { %vm4560_vm4 = vcmp.ge.f32.partialorder %v4524_v12, 0.0  ;;  %v4596_v16 = vmul.f32 0.01, %v4524_v12 }
 0x5a4   : > { %v8758_v44 = vsel %vm4560_vm4, %v4524_v12, %v4596_v16 }
 0x5a5   : > { %v4447_v7 = vpop.f32.mrf.mxu2  ;;  %v4884_v1 = vmul.f32 %v4843_v22, %v8758_v44 }
 0x5a6   : > { %v4485_v35 = vadd.f32 %v4447_v7, %v4225_v14 }
 0x5a7   : > { %v4962_v3 = vmul.f32 %v4884_v1, %v4884_v1  ;;  %v4919_v50 = vadd.f32 %v4918_v53, %v4884_v1  ;;  %v9213_v53 = vld [vmem:[#allocation9_spill] sm:$0xff] }
 0x5a8   : > { %v4525_v21 = vadd.f32 %v8469_v23, %v4485_v35 }
 0x5a9   : > { %v4997_v0 = vadd.f32 %v4996_v17, %v4962_v3 }
 0x5aa   : > { %vm4561_vm5 = vcmp.ge.f32.partialorder %v4525_v21, 0.0  ;;  %v4597_v26 = vmul.f32 0.01, %v4525_v21 }
 0x5ac   : > { %v8763_v31 = vsel %vm4561_vm5, %v4525_v21, %v4597_v26  ;;  %v9212_v26 = vld [vmem:[#allocation18_spill] sm:$0xff] }
 0x5ad   : > { %v4885_v13 = vmul.f32 %v4848_v61, %v8763_v31  ;;  %v9214_v61 = vld [vmem:[#allocation63_spill] sm:$0xff] }
 0x5af   : > { %v4920_v54 = vadd.f32 %v4919_v50, %v4885_v13  ;;  %v4963_v18 = vmul.f32 %v4885_v13, %v4885_v13  ;;  %v9215_v50 = vld [vmem:[#allocation5_spill] sm:$0xff] }
 0x5b1   : > { %v4921_v46 = vrot.slane %v4920_v54, 4  ;;  %v4998_v23 = vadd.f32 %v4997_v0, %v4963_v18  ;;  %v9216_v0 = vld [vmem:[#allocation8_spill] sm:$0xff] }
 0x5b2   : > { %v9217_v18 = vld [vmem:[#allocation64_spill] sm:$0xff] }
 0x5b3   : > { %v4922_v36 = vadd.f32 %v4921_v46, %v4920_v54  ;;  %v4999_v19 = vrot.slane %v4998_v23, 4 }
 0x5b5   : > { %v4923_v12 = vrot.slane %v4922_v36, 2  ;;  %v5000_v63 = vadd.f32 %v4999_v19, %v4998_v23  ;;  %v9218_v23 = vld [vmem:[#allocation65_spill] sm:$0xff] }
 0x5b7   : > { %v4924_v15 = vadd.f32 %v4923_v12, %v4922_v36  ;;  %v5001_v37 = vrot.slane %v5000_v63, 2  ;;  %v9219_v12 = vld [vmem:[#allocation12_spill] sm:$0xff] }
 0x5b9   : > { %v4925_v11 = vrot.slane %v4924_v15, 1  ;;  %v5002_v59 = vadd.f32 %v5001_v37, %v5000_v63 }
 0x5bb   : > { %v4926_v16 = vadd.f32 %v4925_v11, %v4924_v15  ;;  %v5003_v14 = vrot.slane %v5002_v59, 1  ;;  %v9220_v15 = vld [vmem:[#allocation66_spill] sm:$0xff]  ;;  %v9221_v11 = vld [vmem:[#allocation67_spill] sm:$0xff] }
 0x5bd   : > { %v4927_v42 = vmul.f32 0.00390625, %v4926_v16  ;;  %v5004_v38 = vadd.f32 %v5003_v14, %v5002_v59  ;;  %v9222_v16 = vld [vmem:[#allocation13_spill] sm:$0xff] }
 0x5bf   : > { %v5005_v6 = vmul.f32 0.00390625, %v5004_v38  ;;  %v5006_v20 = vmul.f32 %v4927_v42, %v4927_v42 }
 0x5c1   : > { %v5007_v30 = vsub.f32 %v5005_v6, %v5006_v20  ;;  %v5061_v6 = vld [vmem:[%s8863_s10] sm:$0x1] }
 0x5c2   : > { %v9224_v20 = vld [vmem:[#allocation10_spill] sm:$0xff] }
 0x5c3   : > { %v5008_v58 = vmax.f32 %v5007_v30, 0.0 }
 0x5c5   : > { %v5010_v5 = vadd.f32 1e-05, %v5008_v58 }
 0x5c7   : > { %6254 = vrsqrt.f32 %v5010_v5  ;;  %vm5017_vm7 = vweird.f32 %v5010_v5 }
 0x5cd   : > { %v6255_v33 = vpop.eup %6254 }
 0x5ce   : > { %v5012_v49 = vmul.f32 %v6255_v33, %v5010_v5  ;;  %vm5018_vm6 = vweird.f32 %v6255_v33  ;;  %v9225_v5 = vld [vmem:[#allocation14_spill] sm:$0xff] }
 0x5cf   : > { %vm5019_vm8 = vmor %vm5017_vm7, %vm5018_vm6 }
 0x5d0   : > { %v5013_v7 = vmul.f32 %v6255_v33, %v5012_v49 }
 0x5d2   : > { %v5014_v22 = vmul.f32 0.5, %v5013_v7 }
 0x5d4   : > { %v5015_v35 = vsub.f32 1.5, %v5014_v22 }
 0x5d6   : > { %v5016_v9 = vmul.f32 %v6255_v33, %v5015_v35 }
 0x5d8   : > { %v5020_v34 = vsel %vm5019_vm8, %v6255_v33, %v5016_v9 }
 0x5d9   : > { %v5021_v1 = vmul.f32 %v5020_v34, %v5009_v2 }
 0x5db   : > { %v5062_v21 = vmul.f32 %v5021_v1, %v4927_v42  ;;  %v5023_v39 = vperm.slane %v5021_v1, 0  ;;  %v9223_v42 = vld [vmem:[#allocation16_spill] sm:$0xff] }
 0x5dd   : > { %v5025_v47 = vmul.f32 %v5023_v39, %v9211_v55  ;;  %v5026_v62 = vmul.f32 %v5023_v39, %v9212_v26  ;;  %v5027_v3 = vmul.f32 %v5023_v39, %v9213_v53  ;;  %v5028_v17 = vmul.f32 %v5023_v39, %v9214_v61 }
 0x5de   : > { %v5029_v13 = vmul.f32 %v5023_v39, %v9215_v50  ;;  %v5030_v54 = vmul.f32 %v5023_v39, %v9216_v0  ;;  %v5031_v46 = vmul.f32 %v5023_v39, %v9217_v18  ;;  %v5032_v36 = vmul.f32 %v5023_v39, %v9218_v23 }
 0x5df   : > { %v5033_v19 = vmul.f32 %v5023_v39, %v8566_v57  ;;  %v5034_v63 = vmul.f32 %v5023_v39, %v9219_v12  ;;  %v5035_v37 = vmul.f32 %v5023_v39, %v9220_v15  ;;  %v5036_v59 = vmul.f32 %v5023_v39, %v9221_v11 }
 0x5e0   : > { %v5037_v14 = vmul.f32 %v5023_v39, %v9222_v16  ;;  %v5038_v38 = vmul.f32 %v5023_v39, %v9223_v42  ;;  %v5039_v30 = vmul.f32 %v5023_v39, %v9224_v20  ;;  %v5040_v58 = vmul.f32 %v5023_v39, %v8622_v10 }
 0x5e1   : > { %v5041_v57 = vmul.f32 %v5023_v39, %v9225_v5  ;;  %v5042_v33 = vmul.f32 %v5023_v39, %v8631_v4  ;;  %v5043_v49 = vmul.f32 %v5023_v39, %v8641_v32  ;;  %v5044_v7 = vmul.f32 %v5023_v39, %v8644_v25 }
 0x5e2   : > { %v5059_v22 = vmul.f32 %v5023_v39, %v8758_v44  ;;  %v5060_v35 = vmul.f32 %v5023_v39, %v8763_v31  ;;  %v5045_v2 = vmul.f32 %v5023_v39, %v8658_v40  ;;  %v5046_v9 = vmul.f32 %v5023_v39, %v8669_v48 }
 0x5e3   : > { %v5047_v34 = vmul.f32 %v5023_v39, %v8689_v27  ;;  %v5063_v10 = vsub.f32 %v5061_v6, %v5062_v21  ;;  %v5048_v1 = vmul.f32 %v5023_v39, %v8698_v24  ;;  %v5049_v4 = vmul.f32 %v5023_v39, %v8705_v29 }
 0x5e4   : > { %v5050_v55 = vmul.f32 %v5023_v39, %v8719_v43  ;;  %v5051_v32 = vmul.f32 %v5023_v39, %v8724_v60  ;;  %v5052_v25 = vmul.f32 %v5023_v39, %v8730_v51  ;;  %v5053_v44 = vmul.f32 %v5023_v39, %v8735_v52 }
 0x5e5   : > { %v5054_v31 = vmul.f32 %v5023_v39, %v8739_v28  ;;  %v5065_v40 = vperm.slane %v5063_v10, 0  ;;  %v5055_v48 = vmul.f32 %v5023_v39, %v8743_v41  ;;  %v5056_v27 = vmul.f32 %v5023_v39, %v8746_v56 }
 0x5e6   : > { %v5057_v24 = vmul.f32 %v5023_v39, %v8751_v8  ;;  %v5058_v29 = vmul.f32 %v5023_v39, %v8755_v45 }
 0x5e7   : > { %v5067_v43 = vadd.f32 %v5065_v40, %v5025_v47  ;;  %v5068_v60 = vadd.f32 %v5065_v40, %v5026_v62  ;;  %v5069_v51 = vadd.f32 %v5065_v40, %v5027_v3  ;;  %v5070_v52 = vadd.f32 %v5065_v40, %v5028_v17 }
 0x5e8   : > { %v5071_v28 = vadd.f32 %v5065_v40, %v5029_v13  ;;  %v5072_v21 = vadd.f32 %v5065_v40, %v5030_v54  ;;  %v5073_v26 = vadd.f32 %v5065_v40, %v5031_v46  ;;  %v5074_v53 = vadd.f32 %v5065_v40, %v5032_v36 }
 0x5e9   : > { %v5075_v61 = vadd.f32 %v5065_v40, %v5033_v19  ;;  %v5076_v50 = vadd.f32 %v5065_v40, %v5034_v63  ;;  %v5077_v41 = vadd.f32 %v5065_v40, %v5035_v37  ;;  %v5078_v0 = vadd.f32 %v5065_v40, %v5036_v59  ;;  %5103 = vst [vmem:[%s8808_s16] sm:$0xff] %v5067_v43 }
 0x5ea   : > { %v5079_v56 = vadd.f32 %v5065_v40, %v5037_v14  ;;  %v5080_v8 = vadd.f32 %v5065_v40, %v5038_v38  ;;  %v5081_v18 = vadd.f32 %v5065_v40, %v5039_v30  ;;  %v5082_v45 = vadd.f32 %v5065_v40, %v5040_v58  ;;  %5104 = vst [vmem:[%s8808_s16 + $0x8] sm:$0xff] %v5068_v60 }
 0x5eb   : > { %v5083_v39 = vadd.f32 %v5065_v40, %v5041_v57  ;;  %v5084_v47 = vadd.f32 %v5065_v40, %v5042_v33  ;;  %v5085_v62 = vadd.f32 %v5065_v40, %v5043_v49  ;;  %v5086_v3 = vadd.f32 %v5065_v40, %v5044_v7  ;;  %5105 = vst [vmem:[%s8808_s16 + $0x10] sm:$0xff] %v5069_v51 }
 0x5ec   : > { %v5087_v17 = vadd.f32 %v5065_v40, %v5045_v2  ;;  %v5088_v13 = vadd.f32 %v5065_v40, %v5046_v9  ;;  %v5089_v54 = vadd.f32 %v5065_v40, %v5047_v34  ;;  %v5090_v46 = vadd.f32 %v5065_v40, %v5048_v1  ;;  %5106 = vst [vmem:[%s8808_s16 + $0x18] sm:$0xff] %v5070_v52 }
 0x5ed   : > { %v5091_v23 = vadd.f32 %v5065_v40, %v5049_v4  ;;  %v5092_v36 = vadd.f32 %v5065_v40, %v5050_v55  ;;  %v5093_v19 = vadd.f32 %v5065_v40, %v5051_v32  ;;  %v5094_v12 = vadd.f32 %v5065_v40, %v5052_v25  ;;  %5107 = vst [vmem:[%s8808_s16 + $0x20] sm:$0xff] %v5071_v28 }
 0x5ee   : > { %v5095_v63 = vadd.f32 %v5065_v40, %v5053_v44  ;;  %v5096_v15 = vadd.f32 %v5065_v40, %v5054_v31  ;;  %v5097_v37 = vadd.f32 %v5065_v40, %v5055_v48  ;;  %v5098_v11 = vadd.f32 %v5065_v40, %v5056_v27  ;;  %5108 = vst [vmem:[%s8808_s16 + $0x28] sm:$0xff] %v5072_v21 }
 0x5ef   : > { %v5099_v59 = vadd.f32 %v5065_v40, %v5057_v24  ;;  %v5100_v16 = vadd.f32 %v5065_v40, %v5058_v29  ;;  %v5101_v14 = vadd.f32 %v5065_v40, %v5059_v22  ;;  %v5102_v42 = vadd.f32 %v5065_v40, %v5060_v35  ;;  %5109 = vst [vmem:[%s8808_s16 + $0x30] sm:$0xff] %v5073_v26 }
 0x5f0   : > { %5110 = vst [vmem:[%s8808_s16 + $0x38] sm:$0xff] %v5074_v53 }
 0x5f1   : > { %5111 = vst [vmem:[%s8808_s16 + $0x40] sm:$0xff] %v5075_v61 }
 0x5f2   : > { %5112 = vst [vmem:[%s8808_s16 + $0x48] sm:$0xff] %v5076_v50 }
 0x5f3   : > { %5113 = vst [vmem:[%s8808_s16 + $0x50] sm:$0xff] %v5077_v41 }
 0x5f4   : > { %5114 = vst [vmem:[%s8808_s16 + $0x58] sm:$0xff] %v5078_v0 }
 0x5f5   : > { %5115 = vst [vmem:[%s8808_s16 + $0x60] sm:$0xff] %v5079_v56 }
 0x5f6   : > { %5116 = vst [vmem:[%s8808_s16 + $0x68] sm:$0xff] %v5080_v8 }
 0x5f7   : > { %5117 = vst [vmem:[%s8808_s16 + $0x70] sm:$0xff] %v5081_v18 }
 0x5f8   : > { %5118 = vst [vmem:[%s8808_s16 + $0x78] sm:$0xff] %v5082_v45 }
 0x5f9   : > { %5119 = vst [vmem:[%s8808_s16 + $0x80] sm:$0xff] %v5083_v39 }
 0x5fa   : > { %5120 = vst [vmem:[%s8808_s16 + $0x88] sm:$0xff] %v5084_v47 }
 0x5fb   : > { %5121 = vst [vmem:[%s8808_s16 + $0x90] sm:$0xff] %v5085_v62 }
 0x5fc   : > { %5122 = vst [vmem:[%s8808_s16 + $0x98] sm:$0xff] %v5086_v3 }
 0x5fd   : > { %5123 = vst [vmem:[%s8808_s16 + $0xa0] sm:$0xff] %v5087_v17 }
 0x5fe   : > { %5124 = vst [vmem:[%s8808_s16 + $0xa8] sm:$0xff] %v5088_v13 }
 0x5ff   : > { %5125 = vst [vmem:[%s8808_s16 + $0xb0] sm:$0xff] %v5089_v54 }
 0x600   : > { %5126 = vst [vmem:[%s8808_s16 + $0xb8] sm:$0xff] %v5090_v46 }
 0x601   : > { %5127 = vst [vmem:[%s8808_s16 + $0xc0] sm:$0xff] %v5091_v23 }
 0x602   : > { %5128 = vst [vmem:[%s8808_s16 + $0xc8] sm:$0xff] %v5092_v36 }
 0x603   : > { %5129 = vst [vmem:[%s8808_s16 + $0xd0] sm:$0xff] %v5093_v19 }
 0x604   : > { %5130 = vst [vmem:[%s8808_s16 + $0xd8] sm:$0xff] %v5094_v12 }
 0x605   : > { %5131 = vst [vmem:[%s8808_s16 + $0xe0] sm:$0xff] %v5095_v63 }
 0x606   : > { %5132 = vst [vmem:[%s8808_s16 + $0xe8] sm:$0xff] %v5096_v15 }
 0x607   : > { %5133 = vst [vmem:[%s8808_s16 + $0xf0] sm:$0xff] %v5097_v37 }
 0x608   : > { %5134 = vst [vmem:[%s8808_s16 + $0xf8] sm:$0xff] %v5098_v11 }
 0x609   : > { %5135 = vst [vmem:[%s8808_s16 + $0x100] sm:$0xff] %v5099_v59 }
 0x60a   : > { %5136 = vst [vmem:[%s8808_s16 + $0x108] sm:$0xff] %v5100_v16 }
 0x60b   : > { %5137 = vst [vmem:[%s8808_s16 + $0x110] sm:$0xff] %v5101_v14 }
 0x60c   : > { %5138 = vst [vmem:[%s8808_s16 + $0x118] sm:$0xff] %v5102_v42 }
 0x60d PF: > { %s21_s17 = sadd.s32 1, %s6281_s17  }
 0x60e   : > { %p18_p4 = scmp.ge.s32.totalorder %s21_s17, 4  }
 0x610   :  { %20 = sbr.rel (!%p18_p4) target bundleno = 1 (0x1), region = 102 }

</bundles_post_ra>
